<compile_context>
chip_gen: v6e
topology: v6e:2x2x1
jax: 0.10.0
libtpu: 0.0.40
codegen_flags: <defaults>
</compile_context>

<pallas_src>
import functools

import jax
import jax.numpy as jnp
from jax.experimental import pallas as pl
from jax.experimental.pallas import tpu as pltpu


# ---------------------------------------------------------------------------
# In-kernel helpers
# ---------------------------------------------------------------------------
def _mish(y):
    # mish(y) = y * tanh(softplus(y)).  With e = exp(y):
    #   tanh(log(1+e)) = ((1+e)^2 - 1) / ((1+e)^2 + 1) = (e^2 + 2e) / (e^2 + 2e + 2)
    # -> one exp + one approx reciprocal on the EUP, VPU for the rest.
    e = jnp.exp(jnp.minimum(y, 20.0))          # clamp: exp(20)^2 stays finite in f32
    num = e * (e + 2.0)
    return y * (num * pl.reciprocal(num + 2.0, approx=True))


# ---------------------------------------------------------------------------
# Compiler params (generation-dependent VMEM limit)
# ---------------------------------------------------------------------------
@functools.lru_cache(maxsize=None)
def _vmem_limit_bytes():
    cap = None
    try:
        cap = int(pltpu.get_tpu_info().vmem_capacity_bytes)
    except Exception:  # pragma: no cover - info query unavailable
        cap = None
    if not cap:
        return 48 * 1024 * 1024                       # safe on every generation
    # 3/4 of physical, capped: 48 MiB on v7x (64 MiB), 96 MiB on v5e/v6e (128 MiB).
    return min(cap * 3 // 4, 100 * 1024 * 1024)


def _compiler_params():
    return pltpu.CompilerParams(
        dimension_semantics=("parallel",),            # batch axis is independent
        vmem_limit_bytes=_vmem_limit_bytes(),
    )


# ---------------------------------------------------------------------------
# Kernel bodies
# ---------------------------------------------------------------------------
def _make_conv_kernel(kh, kw, stride, pad, h_in, w_in, h_out, w_out,
                      c_in, c_out, use_pad_scratch):
    """Fused conv + folded-BN(bias only; scale pre-folded into W) + Mish."""
    s = stride

    def kernel(*refs):
        idx = 0
        x_ref = refs[idx]; idx += 1
        w_ref = refs[idx]; idx += 1
        bias_ref = refs[idx]; idx += 1
        out_ref = refs[idx]; idx += 1

        if use_pad_scratch:
            # Build the zero-padded tile in VMEM: zero only the 4 border strips,
            # copy the interior once (no whole-tile zeros + full overwrite).
            xp_ref = refs[idx]; idx += 1
            hp_, wp_ = h_in + 2 * pad, w_in + 2 * pad
            xp_ref[0:pad, :, :] = jnp.zeros((pad, wp_, c_in), xp_ref.dtype)
            xp_ref[pad + h_in:hp_, :, :] = jnp.zeros((pad, wp_, c_in), xp_ref.dtype)
            xp_ref[pad:pad + h_in, 0:pad, :] = jnp.zeros((h_in, pad, c_in),
                                                         xp_ref.dtype)
            xp_ref[pad:pad + h_in, pad + w_in:wp_, :] = jnp.zeros(
                (h_in, pad, c_in), xp_ref.dtype)
            xp_ref[pad:pad + h_in, pad:pad + w_in, :] = x_ref[...]
            src = xp_ref
        else:
            src = x_ref

        acc = jnp.zeros((h_out * w_out, c_out), jnp.float32)
        # Static tap loop: contiguous VMEM slices, bf16 MXU matmuls, f32 accum.
        for i in range(kh):
            for j in range(kw):
                if s == 1:
                    patch = src[i:i + h_out, j:j + w_out, :]
                else:
                    # Polyphase layout: plane (i%s)*s + (j%s) holds rows/cols
                    # congruent to (i%s, j%s) of the padded input.
                    ph = (i % s) * s + (j % s)
                    patch = src[ph, i // s:i // s + h_out, j // s:j // s + w_out, :]
                patch = patch.reshape(h_out * w_out, c_in)
                acc = acc + jnp.dot(patch, w_ref[i * kw + j],
                                    preferred_element_type=jnp.float32)

        y = _mish(acc + bias_ref[...])        # BN scale already folded into W
        out_ref[...] = y.reshape(h_out, w_out, c_out).astype(out_ref.dtype)

    return kernel


def _make_res_block_kernel(h, w, c):
    """One ResModule block, fully fused:
        t = Mish(BN(conv1x1(x)))            (kept only in a VMEM pad scratch)
        y = x + Mish(BN(conv3x3(t, pad=1)))
    """
    def kernel(x_ref, w1_ref, b1_ref, w3_ref, b3_ref, out_ref, hp_ref):
        hw = h * w
        x = x_ref[...]                                          # (h, w, c) bf16

        # ---- 1x1 conv + bias + Mish (intermediate never touches HBM) ----
        t = jnp.dot(x.reshape(hw, c), w1_ref[...],
                    preferred_element_type=jnp.float32)
        t = _mish(t + b1_ref[...])

        # ---- zero-padded halo in VMEM: border strips only + one interior copy
        hp_ref[0:1, :, :] = jnp.zeros((1, w + 2, c), hp_ref.dtype)
        hp_ref[h + 1:h + 2, :, :] = jnp.zeros((1, w + 2, c), hp_ref.dtype)
        hp_ref[1:h + 1, 0:1, :] = jnp.zeros((h, 1, c), hp_ref.dtype)
        hp_ref[1:h + 1, w + 1:w + 2, :] = jnp.zeros((h, 1, c), hp_ref.dtype)
        hp_ref[1:h + 1, 1:w + 1, :] = t.reshape(h, w, c).astype(hp_ref.dtype)

        # ---- 3x3 conv + bias + Mish + residual add (f32 arithmetic) ----
        acc = jnp.zeros((hw, c), jnp.float32)
        for i in range(3):
            for j in range(3):
                patch = hp_ref[i:i + h, j:j + w, :].reshape(hw, c)
                acc = acc + jnp.dot(patch, w3_ref[i * 3 + j],
                                    preferred_element_type=jnp.float32)
        y = _mish(acc + b3_ref[...]).reshape(h, w, c) + x.astype(jnp.float32)
        out_ref[...] = y.astype(out_ref.dtype)

    return kernel


def _make_cat_conv_kernel(h, w, c, c_out):
    """cat([b1, b2], channel) -> 1x1 conv + bias + Mish, without the concat."""
    def kernel(b1_ref, b2_ref, w1_ref, w2_ref, bias_ref, out_ref):
        hw = h * w
        acc = jnp.dot(b1_ref[...].reshape(hw, c), w1_ref[...],
                      preferred_element_type=jnp.float32)
        acc = acc + jnp.dot(b2_ref[...].reshape(hw, c), w2_ref[...],
                            preferred_element_type=jnp.float32)
        y = _mish(acc + bias_ref[...])
        out_ref[...] = y.reshape(h, w, c_out).astype(out_ref.dtype)
    return kernel


# ---------------------------------------------------------------------------
# Wrappers calling pallas_call
# ---------------------------------------------------------------------------
def conv_bn_act(x, w, scale, bias, *, stride=1, padding=0,
                out_dtype=jnp.bfloat16):
    """Fused Conv2d(no bias) + folded BatchNorm + Mish on NHWC input.

    x:          (N, H, W, C_in)
    w:          (kh, kw, C_in, C_out)
    scale/bias: folded BN parameters, shape (C_out,)
    """
    kh, kw, c_in, c_out = w.shape
    n, h, w_sp, _ = x.shape
    h_out = (h + 2 * padding - kh) // stride + 1
    w_out = (w_sp + 2 * padding - kw) // stride + 1

    x = x.astype(jnp.bfloat16)

    if stride == 1:
        x_arg = x
        in_spec_x = pl.BlockSpec((None, h, w_sp, c_in), lambda b: (b, 0, 0, 0))
    else:
        # Polyphase (space-to-depth) split of the padded input: ~1x the input
        # bytes (vs. kh*kw = 9x for HBM im2col).  Phase p = (i%s)*s + (j%s)
        # holds rows/cols congruent to (i%s, j%s).
        # TODO(synk): move this split in-kernel (strided pl.ds) to drop the
        # wrapper-side HBM pad/transpose round trip of the largest tensor.
        s = stride
        need_h = ((kh - 1) // s + h_out) * s
        need_w = ((kw - 1) // s + w_out) * s
        hp = max(h + 2 * padding, need_h)
        wp = max(w_sp + 2 * padding, need_w)
        hp = -(-hp // s) * s
        wp = -(-wp // s) * s
        xp = jnp.pad(x, ((0, 0),
                         (padding, hp - h - padding),
                         (padding, wp - w_sp - padding),
                         (0, 0)))
        xp = xp.reshape(n, hp // s, s, wp // s, s, c_in)
        x_arg = jnp.transpose(xp, (0, 2, 4, 1, 3, 5)).reshape(
            n, s * s, hp // s, wp // s, c_in)
        in_spec_x = pl.BlockSpec((None, s * s, hp // s, wp // s, c_in),
                                 lambda b: (b, 0, 0, 0, 0))

    # Fold the BN scale into the conv weights (epilogue becomes +bias, Mish).
    w_flat = (w * scale[None, None, None, :]).reshape(
        kh * kw, c_in, c_out).astype(jnp.bfloat16)
    bias2 = bias.reshape(1, c_out).astype(jnp.float32)

    use_pad_scratch = (stride == 1 and padding > 0)
    kernel = _make_conv_kernel(kh, kw, stride, padding, h, w_sp, h_out, w_out,
                               c_in, c_out, use_pad_scratch)

    in_specs = [
        in_spec_x,
        pl.BlockSpec((kh * kw, c_in, c_out), lambda b: (0, 0, 0)),
        pl.BlockSpec((1, c_out), lambda b: (0, 0)),
    ]
    args = [x_arg, w_flat, bias2]

    scratch_shapes = []
    if use_pad_scratch:
        scratch_shapes.append(
            pltpu.VMEM((h + 2 * padding, w_sp + 2 * padding, c_in),
                       jnp.bfloat16))

    return pl.pallas_call(
        kernel,
        out_shape=jax.ShapeDtypeStruct((n, h_out, w_out, c_out), out_dtype),
        grid=(n,),
        in_specs=in_specs,
        out_specs=pl.BlockSpec((None, h_out, w_out, c_out),
                               lambda b: (b, 0, 0, 0)),
        scratch_shapes=scratch_shapes,
        compiler_params=_compiler_params(),
    )(*args)


def res_block(x, p1, p2, *, out_dtype=jnp.bfloat16):
    """One fused ResModule block: x + ConvBNAct3x3(ConvBNAct1x1(x))."""
    n, h, w_sp, c = x.shape
    w1 = (p1["w"].reshape(c, c) * p1["scale"][None, :]).astype(jnp.bfloat16)
    b1 = p1["bias"].reshape(1, c).astype(jnp.float32)
    w3 = (p2["w"] * p2["scale"][None, None, None, :]).reshape(
        9, c, c).astype(jnp.bfloat16)
    b3 = p2["bias"].reshape(1, c).astype(jnp.float32)

    kernel = _make_res_block_kernel(h, w_sp, c)

    return pl.pallas_call(
        kernel,
        out_shape=jax.ShapeDtypeStruct((n, h, w_sp, c), out_dtype),
        grid=(n,),
        in_specs=[
            pl.BlockSpec((None, h, w_sp, c), lambda b: (b, 0, 0, 0)),
            pl.BlockSpec((c, c), lambda b: (0, 0)),
            pl.BlockSpec((1, c), lambda b: (0, 0)),
            pl.BlockSpec((9, c, c), lambda b: (0, 0, 0)),
            pl.BlockSpec((1, c), lambda b: (0, 0)),
        ],
        out_specs=pl.BlockSpec((None, h, w_sp, c), lambda b: (b, 0, 0, 0)),
        scratch_shapes=[pltpu.VMEM((h + 2, w_sp + 2, c), jnp.bfloat16)],
        compiler_params=_compiler_params(),
    )(x.astype(jnp.bfloat16), w1, b1, w3, b3)


def cat_conv_bn_act(b1, b2, w, scale, bias, *, out_dtype=jnp.float32):
    """ConvBNAct(2*C, C_out, 1) applied to channel-concat([b1, b2]) — fused,
    the concatenated feature map is never materialized in HBM."""
    n, h, w_sp, c = b1.shape
    c_out = w.shape[-1]
    w1 = (w[0, 0, :c, :] * scale[None, :]).astype(jnp.bfloat16)
    w2 = (w[0, 0, c:, :] * scale[None, :]).astype(jnp.bfloat16)
    bias2 = bias.reshape(1, c_out).astype(jnp.float32)

    kernel = _make_cat_conv_kernel(h, w_sp, c, c_out)

    return pl.pallas_call(
        kernel,
        out_shape=jax.ShapeDtypeStruct((n, h, w_sp, c_out), out_dtype),
        grid=(n,),
        in_specs=[
            pl.BlockSpec((None, h, w_sp, c), lambda b: (b, 0, 0, 0)),
            pl.BlockSpec((None, h, w_sp, c), lambda b: (b, 0, 0, 0)),
            pl.BlockSpec((c, c_out), lambda b: (0, 0)),
            pl.BlockSpec((c, c_out), lambda b: (0, 0)),
            pl.BlockSpec((1, c_out), lambda b: (0, 0)),
        ],
        out_specs=pl.BlockSpec((None, h, w_sp, c_out), lambda b: (b, 0, 0, 0)),
        compiler_params=_compiler_params(),
    )(b1.astype(jnp.bfloat16), b2.astype(jnp.bfloat16), w1, w2, bias2)


# ---------------------------------------------------------------------------
# Deterministic parameter initialization (synthetic, no checkpoint).
# ---------------------------------------------------------------------------
def init_conv_bn_act(key, c_in, c_out, k):
    k1, k2, k3, k4, k5 = jax.random.split(key, 5)
    w = jax.random.normal(k1, (k, k, c_in, c_out), jnp.float32) / jnp.sqrt(
        float(k * k * c_in))
    gamma = jax.random.uniform(k2, (c_out,), jnp.float32, 0.5, 1.5)
    beta = 0.1 * jax.random.normal(k3, (c_out,), jnp.float32)
    mean = 0.1 * jax.random.normal(k4, (c_out,), jnp.float32)
    var = jax.random.uniform(k5, (c_out,), jnp.float32, 0.5, 1.5)
    eps = 1e-5  # PyTorch BatchNorm2d default
    fold_scale = gamma / jnp.sqrt(var + eps)
    fold_bias = beta - mean * fold_scale
    return {"w": w, "scale": fold_scale, "bias": fold_bias}


def init_downsample(key, c_in, c_out, num_res):
    keys = jax.random.split(key, 3 + 2 * num_res)
    return {
        "extractor": init_conv_bn_act(keys[0], c_in, c_out, 3),
        "branch_conv": init_conv_bn_act(keys[1], c_out, c_out, 3),
        "cat_conv": init_conv_bn_act(keys[2], 2 * c_out, c_out, 1),
        "res": [
            {
                "conv1": init_conv_bn_act(keys[3 + 2 * i], c_out, c_out, 1),
                "conv2": init_conv_bn_act(keys[4 + 2 * i], c_out, c_out, 3),
            }
            for i in range(num_res)
        ],
    }


# ---------------------------------------------------------------------------
# DownSample forward (matches the PyTorch module; NCHW in / NCHW out).
# ---------------------------------------------------------------------------
@jax.jit
def downsample_forward(params, x_nchw):
    # NCHW (PyTorch) -> NHWC for the TPU kernels, back to NCHW at the end.
    x = jnp.transpose(x_nchw, (0, 2, 3, 1))

    p = params["extractor"]
    x = conv_bn_act(x, p["w"], p["scale"], p["bias"], stride=2, padding=1)

    # branch1 = ResModule(x): fused residual blocks (no HBM intermediate).
    b1 = x
    for rp in params["res"]:
        b1 = res_block(b1, rp["conv1"], rp["conv2"])

    # branch2 = branch_conv(x)
    p = params["branch_conv"]
    b2 = conv_bn_act(x, p["w"], p["scale"], p["bias"], stride=1, padding=1)

    # torch.cat([branch1, branch2], dim=1) + cat_conv  (fused, no HBM concat).
    p = params["cat_conv"]
    out = cat_conv_bn_act(b1, b2, p["w"], p["scale"], p["bias"],
                          out_dtype=jnp.float32)

    return jnp.transpose(out, (0, 3, 1, 2))


if __name__ == "__main__":
    key = jax.random.PRNGKey(0)
    k_param, k_x = jax.random.split(key)

    in_channels, out_channels, num_res = 4, 8, 2
    params = init_downsample(k_param, in_channels, out_channels, num_res)

    # PyTorch-style NCHW input.
    x = jax.random.normal(k_x, (2, in_channels, 16, 16), jnp.float32)

    out = downsample_forward(params, x)
    out = jax.block_until_ready(out)

    assert out.shape == (2, out_channels, 8, 8), out.shape
    assert out.dtype == jnp.float32
    assert bool(jnp.all(jnp.isfinite(out)))
    print("KERNEL_OK")
</pallas_src>

<mosaic_0001>
module attributes {stable_mosaic.version = 11 : i64} {
  func.func @kernel(%arg0: i32, %arg1: memref<1x4x9x9x4xbf16, #tpu.memory_space<vmem>>, %arg2: memref<9x4x8xbf16, #tpu.memory_space<vmem>>, %arg3: memref<1x8xf32, #tpu.memory_space<vmem>>, %arg4: memref<1x8x8x8xbf16, #tpu.memory_space<vmem>>) attributes {dimension_semantics = [#tpu.dimension_semantics<parallel>], iteration_bounds = array<i64: 2>, scalar_prefetch = 0 : i64, scratch_operands = 0 : i64, tpu.core_type = #tpu.core_type<tc>, window_params = [{transform_indices = @transform_0, window_bounds = array<i64: 1, 4, 9, 9, 4>}, {pipeline_mode = #tpu.pipeline_mode<synchronous>, transform_indices = @transform_1, window_bounds = array<i64: 9, 4, 8>}, {pipeline_mode = #tpu.pipeline_mode<synchronous>, transform_indices = @transform_2, window_bounds = array<i64: 1, 8>}, {transform_indices = @transform_3, window_bounds = array<i64: 1, 8, 8, 8>}]} {
    %cst = arith.constant 0.000000e+00 : f32
    %0 = vector.broadcast %cst : f32 to vector<64x8xf32>
    %c0 = arith.constant 0 : index
    %c0_0 = arith.constant 0 : index
    %c0_1 = arith.constant 0 : index
    %c0_2 = arith.constant 0 : index
    %c0_3 = arith.constant 0 : index
    %1 = vector.load %arg1[%c0, %c0_0, %c0_1, %c0_2, %c0_3] : memref<1x4x9x9x4xbf16, #tpu.memory_space<vmem>>, vector<1x1x8x8x4xbf16>
    %2 = vector.shape_cast %1 : vector<1x1x8x8x4xbf16> to vector<8x8x4xbf16>
    %3 = vector.shape_cast %2 : vector<8x8x4xbf16> to vector<64x4xbf16>
    %c0_4 = arith.constant 0 : index
    %c0_5 = arith.constant 0 : index
    %c0_6 = arith.constant 0 : index
    %4 = vector.load %arg2[%c0_4, %c0_5, %c0_6] : memref<9x4x8xbf16, #tpu.memory_space<vmem>>, vector<1x4x8xbf16>
    %5 = vector.shape_cast %4 : vector<1x4x8xbf16> to vector<4x8xbf16>
    %cst_7 = arith.constant dense<0.000000e+00> : vector<64x8xf32>
    %6 = tpu.matmul %3, %5, %cst_7 {dimension_numbers = #tpu.dot_dimension_numbers<[1], [0], [0], [1], [0, 0, 1, 1], [], []>} : vector<64x4xbf16>, vector<4x8xbf16>, vector<64x8xf32> -> vector<64x8xf32>
    %7 = arith.addf %0, %6 : vector<64x8xf32>
    %c0_8 = arith.constant 0 : index
    %c1 = arith.constant 1 : index
    %c0_9 = arith.constant 0 : index
    %c0_10 = arith.constant 0 : index
    %c0_11 = arith.constant 0 : index
    %8 = vector.load %arg1[%c0_8, %c1, %c0_9, %c0_10, %c0_11] : memref<1x4x9x9x4xbf16, #tpu.memory_space<vmem>>, vector<1x1x8x8x4xbf16>
    %9 = vector.shape_cast %8 : vector<1x1x8x8x4xbf16> to vector<8x8x4xbf16>
    %10 = vector.shape_cast %9 : vector<8x8x4xbf16> to vector<64x4xbf16>
    %c1_12 = arith.constant 1 : index
    %c0_13 = arith.constant 0 : index
    %c0_14 = arith.constant 0 : index
    %11 = vector.load %arg2[%c1_12, %c0_13, %c0_14] : memref<9x4x8xbf16, #tpu.memory_space<vmem>>, vector<1x4x8xbf16>
    %12 = vector.shape_cast %11 : vector<1x4x8xbf16> to vector<4x8xbf16>
    %cst_15 = arith.constant dense<0.000000e+00> : vector<64x8xf32>
    %13 = tpu.matmul %10, %12, %cst_15 {dimension_numbers = #tpu.dot_dimension_numbers<[1], [0], [0], [1], [0, 0, 1, 1], [], []>} : vector<64x4xbf16>, vector<4x8xbf16>, vector<64x8xf32> -> vector<64x8xf32>
    %14 = arith.addf %7, %13 : vector<64x8xf32>
    %c0_16 = arith.constant 0 : index
    %c0_17 = arith.constant 0 : index
    %c0_18 = arith.constant 0 : index
    %c1_19 = arith.constant 1 : index
    %c0_20 = arith.constant 0 : index
    %15 = vector.load %arg1[%c0_16, %c0_17, %c0_18, %c1_19, %c0_20] : memref<1x4x9x9x4xbf16, #tpu.memory_space<vmem>>, vector<1x1x8x8x4xbf16>
    %16 = vector.shape_cast %15 : vector<1x1x8x8x4xbf16> to vector<8x8x4xbf16>
    %17 = vector.shape_cast %16 : vector<8x8x4xbf16> to vector<64x4xbf16>
    %c2 = arith.constant 2 : index
    %c0_21 = arith.constant 0 : index
    %c0_22 = arith.constant 0 : index
    %18 = vector.load %arg2[%c2, %c0_21, %c0_22] : memref<9x4x8xbf16, #tpu.memory_space<vmem>>, vector<1x4x8xbf16>
    %19 = vector.shape_cast %18 : vector<1x4x8xbf16> to vector<4x8xbf16>
    %cst_23 = arith.constant dense<0.000000e+00> : vector<64x8xf32>
    %20 = tpu.matmul %17, %19, %cst_23 {dimension_numbers = #tpu.dot_dimension_numbers<[1], [0], [0], [1], [0, 0, 1, 1], [], []>} : vector<64x4xbf16>, vector<4x8xbf16>, vector<64x8xf32> -> vector<64x8xf32>
    %21 = arith.addf %14, %20 : vector<64x8xf32>
    %c0_24 = arith.constant 0 : index
    %c2_25 = arith.constant 2 : index
    %c0_26 = arith.constant 0 : index
    %c0_27 = arith.constant 0 : index
    %c0_28 = arith.constant 0 : index
    %22 = vector.load %arg1[%c0_24, %c2_25, %c0_26, %c0_27, %c0_28] : memref<1x4x9x9x4xbf16, #tpu.memory_space<vmem>>, vector<1x1x8x8x4xbf16>
    %23 = vector.shape_cast %22 : vector<1x1x8x8x4xbf16> to vector<8x8x4xbf16>
    %24 = vector.shape_cast %23 : vector<8x8x4xbf16> to vector<64x4xbf16>
    %c3 = arith.constant 3 : index
    %c0_29 = arith.constant 0 : index
    %c0_30 = arith.constant 0 : index
    %25 = vector.load %arg2[%c3, %c0_29, %c0_30] : memref<9x4x8xbf16, #tpu.memory_space<vmem>>, vector<1x4x8xbf16>
    %26 = vector.shape_cast %25 : vector<1x4x8xbf16> to vector<4x8xbf16>
    %cst_31 = arith.constant dense<0.000000e+00> : vector<64x8xf32>
    %27 = tpu.matmul %24, %26, %cst_31 {dimension_numbers = #tpu.dot_dimension_numbers<[1], [0], [0], [1], [0, 0, 1, 1], [], []>} : vector<64x4xbf16>, vector<4x8xbf16>, vector<64x8xf32> -> vector<64x8xf32>
    %28 = arith.addf %21, %27 : vector<64x8xf32>
    %c0_32 = arith.constant 0 : index
    %c3_33 = arith.constant 3 : index
    %c0_34 = arith.constant 0 : index
    %c0_35 = arith.constant 0 : index
    %c0_36 = arith.constant 0 : index
    %29 = vector.load %arg1[%c0_32, %c3_33, %c0_34, %c0_35, %c0_36] : memref<1x4x9x9x4xbf16, #tpu.memory_space<vmem>>, vector<1x1x8x8x4xbf16>
    %30 = vector.shape_cast %29 : vector<1x1x8x8x4xbf16> to vector<8x8x4xbf16>
    %31 = vector.shape_cast %30 : vector<8x8x4xbf16> to vector<64x4xbf16>
    %c4 = arith.constant 4 : index
    %c0_37 = arith.constant 0 : index
    %c0_38 = arith.constant 0 : index
    %32 = vector.load %arg2[%c4, %c0_37, %c0_38] : memref<9x4x8xbf16, #tpu.memory_space<vmem>>, vector<1x4x8xbf16>
    %33 = vector.shape_cast %32 : vector<1x4x8xbf16> to vector<4x8xbf16>
    %cst_39 = arith.constant dense<0.000000e+00> : vector<64x8xf32>
    %34 = tpu.matmul %31, %33, %cst_39 {dimension_numbers = #tpu.dot_dimension_numbers<[1], [0], [0], [1], [0, 0, 1, 1], [], []>} : vector<64x4xbf16>, vector<4x8xbf16>, vector<64x8xf32> -> vector<64x8xf32>
    %35 = arith.addf %28, %34 : vector<64x8xf32>
    %c0_40 = arith.constant 0 : index
    %c2_41 = arith.constant 2 : index
    %c0_42 = arith.constant 0 : index
    %c1_43 = arith.constant 1 : index
    %c0_44 = arith.constant 0 : index
    %36 = vector.load %arg1[%c0_40, %c2_41, %c0_42, %c1_43, %c0_44] : memref<1x4x9x9x4xbf16, #tpu.memory_space<vmem>>, vector<1x1x8x8x4xbf16>
    %37 = vector.shape_cast %36 : vector<1x1x8x8x4xbf16> to vector<8x8x4xbf16>
    %38 = vector.shape_cast %37 : vector<8x8x4xbf16> to vector<64x4xbf16>
    %c5 = arith.constant 5 : index
    %c0_45 = arith.constant 0 : index
    %c0_46 = arith.constant 0 : index
    %39 = vector.load %arg2[%c5, %c0_45, %c0_46] : memref<9x4x8xbf16, #tpu.memory_space<vmem>>, vector<1x4x8xbf16>
    %40 = vector.shape_cast %39 : vector<1x4x8xbf16> to vector<4x8xbf16>
    %cst_47 = arith.constant dense<0.000000e+00> : vector<64x8xf32>
    %41 = tpu.matmul %38, %40, %cst_47 {dimension_numbers = #tpu.dot_dimension_numbers<[1], [0], [0], [1], [0, 0, 1, 1], [], []>} : vector<64x4xbf16>, vector<4x8xbf16>, vector<64x8xf32> -> vector<64x8xf32>
    %42 = arith.addf %35, %41 : vector<64x8xf32>
    %c0_48 = arith.constant 0 : index
    %c0_49 = arith.constant 0 : index
    %c1_50 = arith.constant 1 : index
    %c0_51 = arith.constant 0 : index
    %c0_52 = arith.constant 0 : index
    %43 = vector.load %arg1[%c0_48, %c0_49, %c1_50, %c0_51, %c0_52] : memref<1x4x9x9x4xbf16, #tpu.memory_space<vmem>>, vector<1x1x8x8x4xbf16>
    %44 = vector.shape_cast %43 : vector<1x1x8x8x4xbf16> to vector<8x8x4xbf16>
    %45 = vector.shape_cast %44 : vector<8x8x4xbf16> to vector<64x4xbf16>
    %c6 = arith.constant 6 : index
    %c0_53 = arith.constant 0 : index
    %c0_54 = arith.constant 0 : index
    %46 = vector.load %arg2[%c6, %c0_53, %c0_54] : memref<9x4x8xbf16, #tpu.memory_space<vmem>>, vector<1x4x8xbf16>
    %47 = vector.shape_cast %46 : vector<1x4x8xbf16> to vector<4x8xbf16>
    %cst_55 = arith.constant dense<0.000000e+00> : vector<64x8xf32>
    %48 = tpu.matmul %45, %47, %cst_55 {dimension_numbers = #tpu.dot_dimension_numbers<[1], [0], [0], [1], [0, 0, 1, 1], [], []>} : vector<64x4xbf16>, vector<4x8xbf16>, vector<64x8xf32> -> vector<64x8xf32>
    %49 = arith.addf %42, %48 : vector<64x8xf32>
    %c0_56 = arith.constant 0 : index
    %c1_57 = arith.constant 1 : index
    %c1_58 = arith.constant 1 : index
    %c0_59 = arith.constant 0 : index
    %c0_60 = arith.constant 0 : index
    %50 = vector.load %arg1[%c0_56, %c1_57, %c1_58, %c0_59, %c0_60] : memref<1x4x9x9x4xbf16, #tpu.memory_space<vmem>>, vector<1x1x8x8x4xbf16>
    %51 = vector.shape_cast %50 : vector<1x1x8x8x4xbf16> to vector<8x8x4xbf16>
    %52 = vector.shape_cast %51 : vector<8x8x4xbf16> to vector<64x4xbf16>
    %c7 = arith.constant 7 : index
    %c0_61 = arith.constant 0 : index
    %c0_62 = arith.constant 0 : index
    %53 = vector.load %arg2[%c7, %c0_61, %c0_62] : memref<9x4x8xbf16, #tpu.memory_space<vmem>>, vector<1x4x8xbf16>
    %54 = vector.shape_cast %53 : vector<1x4x8xbf16> to vector<4x8xbf16>
    %cst_63 = arith.constant dense<0.000000e+00> : vector<64x8xf32>
    %55 = tpu.matmul %52, %54, %cst_63 {dimension_numbers = #tpu.dot_dimension_numbers<[1], [0], [0], [1], [0, 0, 1, 1], [], []>} : vector<64x4xbf16>, vector<4x8xbf16>, vector<64x8xf32> -> vector<64x8xf32>
    %56 = arith.addf %49, %55 : vector<64x8xf32>
    %c0_64 = arith.constant 0 : index
    %c0_65 = arith.constant 0 : index
    %c1_66 = arith.constant 1 : index
    %c1_67 = arith.constant 1 : index
    %c0_68 = arith.constant 0 : index
    %57 = vector.load %arg1[%c0_64, %c0_65, %c1_66, %c1_67, %c0_68] : memref<1x4x9x9x4xbf16, #tpu.memory_space<vmem>>, vector<1x1x8x8x4xbf16>
    %58 = vector.shape_cast %57 : vector<1x1x8x8x4xbf16> to vector<8x8x4xbf16>
    %59 = vector.shape_cast %58 : vector<8x8x4xbf16> to vector<64x4xbf16>
    %c8 = arith.constant 8 : index
    %c0_69 = arith.constant 0 : index
    %c0_70 = arith.constant 0 : index
    %60 = vector.load %arg2[%c8, %c0_69, %c0_70] : memref<9x4x8xbf16, #tpu.memory_space<vmem>>, vector<1x4x8xbf16>
    %61 = vector.shape_cast %60 : vector<1x4x8xbf16> to vector<4x8xbf16>
    %cst_71 = arith.constant dense<0.000000e+00> : vector<64x8xf32>
    %62 = tpu.matmul %59, %61, %cst_71 {dimension_numbers = #tpu.dot_dimension_numbers<[1], [0], [0], [1], [0, 0, 1, 1], [], []>} : vector<64x4xbf16>, vector<4x8xbf16>, vector<64x8xf32> -> vector<64x8xf32>
    %63 = arith.addf %56, %62 : vector<64x8xf32>
    %c0_72 = arith.constant 0 : index
    %c0_73 = arith.constant 0 : index
    %64 = vector.load %arg3[%c0_72, %c0_73] : memref<1x8xf32, #tpu.memory_space<vmem>>, vector<1x8xf32>
    %65 = vector.broadcast %64 : vector<1x8xf32> to vector<64x8xf32>
    %66 = arith.addf %63, %65 : vector<64x8xf32>
    %cst_74 = arith.constant 2.000000e+01 : f32
    %67 = vector.broadcast %cst_74 : f32 to vector<64x8xf32>
    %68 = arith.minimumf %66, %67 : vector<64x8xf32>
    %69 = math.exp %68 : vector<64x8xf32>
    %cst_75 = arith.constant 2.000000e+00 : f32
    %70 = vector.broadcast %cst_75 : f32 to vector<64x8xf32>
    %71 = arith.addf %69, %70 : vector<64x8xf32>
    %72 = arith.mulf %69, %71 : vector<64x8xf32>
    %cst_76 = arith.constant 2.000000e+00 : f32
    %73 = vector.broadcast %cst_76 : f32 to vector<64x8xf32>
    %74 = arith.addf %72, %73 : vector<64x8xf32>
    %75 = tpu.reciprocal %74 {approx = true} : vector<64x8xf32> -> vector<64x8xf32>
    %76 = arith.mulf %72, %75 : vector<64x8xf32>
    %77 = arith.mulf %66, %76 : vector<64x8xf32>
    %78 = vector.shape_cast %77 : vector<64x8xf32> to vector<8x8x8xf32>
    %79 = arith.truncf %78 : vector<8x8x8xf32> to vector<8x8x8xbf16>
    %c0_77 = arith.constant 0 : index
    %c0_78 = arith.constant 0 : index
    %c0_79 = arith.constant 0 : index
    %c0_80 = arith.constant 0 : index
    %80 = vector.load %arg4[%c0_77, %c0_78, %c0_79, %c0_80] : memref<1x8x8x8xbf16, #tpu.memory_space<vmem>>, vector<1x8x8x8xbf16>
    %81 = vector.shape_cast %80 : vector<1x8x8x8xbf16> to vector<8x8x8xbf16>
    %82 = vector.shape_cast %79 : vector<8x8x8xbf16> to vector<1x8x8x8xbf16>
    tpu.vector_store %arg4[%c0_77, %c0_78, %c0_79, %c0_80], %82 {strides = array<i32>} : memref<1x8x8x8xbf16, #tpu.memory_space<vmem>>, vector<1x8x8x8xbf16>,
    return
  }
  func.func @transform_0(%arg0: i32) -> (i32, i32, i32, i32, i32) {
    %c0_i32 = arith.constant 0 : i32
    %c0_i32_0 = arith.constant 0 : i32
    %c0_i32_1 = arith.constant 0 : i32
    %c0_i32_2 = arith.constant 0 : i32
    %c0_i32_3 = arith.constant 0 : i32
    return %arg0, %c0_i32, %c0_i32_0, %c0_i32_1, %c0_i32_2 : i32, i32, i32, i32, i32
  }
  func.func @transform_1(%arg0: i32) -> (i32, i32, i32) {
    %c0_i32 = arith.constant 0 : i32
    %c0_i32_0 = arith.constant 0 : i32
    %c0_i32_1 = arith.constant 0 : i32
    %c0_i32_2 = arith.constant 0 : i32
    return %c0_i32, %c0_i32_0, %c0_i32_1 : i32, i32, i32
  }
  func.func @transform_2(%arg0: i32) -> (i32, i32) {
    %c0_i32 = arith.constant 0 : i32
    %c0_i32_0 = arith.constant 0 : i32
    %c0_i32_1 = arith.constant 0 : i32
    return %c0_i32, %c0_i32_0 : i32, i32
  }
  func.func @transform_3(%arg0: i32) -> (i32, i32, i32, i32) {
    %c0_i32 = arith.constant 0 : i32
    %c0_i32_0 = arith.constant 0 : i32
    %c0_i32_1 = arith.constant 0 : i32
    %c0_i32_2 = arith.constant 0 : i32
    return %arg0, %c0_i32, %c0_i32_0, %c0_i32_1 : i32, i32, i32, i32
  }
}

module attributes {stable_mosaic.version = 11 : i64} {
  func.func @kernel(%arg0: i32, %arg1: memref<1x8x8x8xbf16, #tpu.memory_space<vmem>>, %arg2: memref<8x8xbf16, #tpu.memory_space<vmem>>, %arg3: memref<1x8xf32, #tpu.memory_space<vmem>>, %arg4: memref<9x8x8xbf16, #tpu.memory_space<vmem>>, %arg5: memref<1x8xf32, #tpu.memory_space<vmem>>, %arg6: memref<1x8x8x8xbf16, #tpu.memory_space<vmem>>, %arg7: memref<10x10x8xbf16, #tpu.memory_space<vmem>>) attributes {dimension_semantics = [#tpu.dimension_semantics<parallel>], iteration_bounds = array<i64: 2>, scalar_prefetch = 0 : i64, scratch_operands = 1 : i64, tpu.core_type = #tpu.core_type<tc>, window_params = [{transform_indices = @transform_0, window_bounds = array<i64: 1, 8, 8, 8>}, {pipeline_mode = #tpu.pipeline_mode<synchronous>, transform_indices = @transform_1, window_bounds = array<i64: 8, 8>}, {pipeline_mode = #tpu.pipeline_mode<synchronous>, transform_indices = @transform_2, window_bounds = array<i64: 1, 8>}, {pipeline_mode = #tpu.pipeline_mode<synchronous>, transform_indices = @transform_3, window_bounds = array<i64: 9, 8, 8>}, {pipeline_mode = #tpu.pipeline_mode<synchronous>, transform_indices = @transform_4, window_bounds = array<i64: 1, 8>}, {transform_indices = @transform_5, window_bounds = array<i64: 1, 8, 8, 8>}]} {
    %c0 = arith.constant 0 : index
    %c0_0 = arith.constant 0 : index
    %c0_1 = arith.constant 0 : index
    %c0_2 = arith.constant 0 : index
    %0 = vector.load %arg1[%c0, %c0_0, %c0_1, %c0_2] : memref<1x8x8x8xbf16, #tpu.memory_space<vmem>>, vector<1x8x8x8xbf16>
    %1 = vector.shape_cast %0 : vector<1x8x8x8xbf16> to vector<8x8x8xbf16>
    %2 = vector.shape_cast %1 : vector<8x8x8xbf16> to vector<64x8xbf16>
    %c0_3 = arith.constant 0 : index
    %c0_4 = arith.constant 0 : index
    %3 = vector.load %arg2[%c0_3, %c0_4] : memref<8x8xbf16, #tpu.memory_space<vmem>>, vector<8x8xbf16>
    %cst = arith.constant dense<0.000000e+00> : vector<64x8xf32>
    %4 = tpu.matmul %2, %3, %cst {dimension_numbers = #tpu.dot_dimension_numbers<[1], [0], [0], [1], [0, 0, 1, 1], [], []>} : vector<64x8xbf16>, vector<8x8xbf16>, vector<64x8xf32> -> vector<64x8xf32>
    %c0_5 = arith.constant 0 : index
    %c0_6 = arith.constant 0 : index
    %5 = vector.load %arg3[%c0_5, %c0_6] : memref<1x8xf32, #tpu.memory_space<vmem>>, vector<1x8xf32>
    %6 = vector.broadcast %5 : vector<1x8xf32> to vector<64x8xf32>
    %7 = arith.addf %4, %6 : vector<64x8xf32>
    %cst_7 = arith.constant 2.000000e+01 : f32
    %8 = vector.broadcast %cst_7 : f32 to vector<64x8xf32>
    %9 = arith.minimumf %7, %8 : vector<64x8xf32>
    %10 = math.exp %9 : vector<64x8xf32>
    %cst_8 = arith.constant 2.000000e+00 : f32
    %11 = vector.broadcast %cst_8 : f32 to vector<64x8xf32>
    %12 = arith.addf %10, %11 : vector<64x8xf32>
    %13 = arith.mulf %10, %12 : vector<64x8xf32>
    %cst_9 = arith.constant 2.000000e+00 : f32
    %14 = vector.broadcast %cst_9 : f32 to vector<64x8xf32>
    %15 = arith.addf %13, %14 : vector<64x8xf32>
    %16 = tpu.reciprocal %15 {approx = true} : vector<64x8xf32> -> vector<64x8xf32>
    %17 = arith.mulf %13, %16 : vector<64x8xf32>
    %18 = arith.mulf %7, %17 : vector<64x8xf32>
    %cst_10 = arith.constant 0.000000e+00 : bf16
    %19 = vector.broadcast %cst_10 : bf16 to vector<1x10x8xbf16>
    %c0_11 = arith.constant 0 : index
    %c0_12 = arith.constant 0 : index
    %c0_13 = arith.constant 0 : index
    %20 = vector.load %arg7[%c0_11, %c0_12, %c0_13] : memref<10x10x8xbf16, #tpu.memory_space<vmem>>, vector<1x10x8xbf16>
    tpu.vector_store %arg7[%c0_11, %c0_12, %c0_13], %19 {strides = array<i32>} : memref<10x10x8xbf16, #tpu.memory_space<vmem>>, vector<1x10x8xbf16>,
    %cst_14 = arith.constant 0.000000e+00 : bf16
    %21 = vector.broadcast %cst_14 : bf16 to vector<1x10x8xbf16>
    %c9 = arith.constant 9 : index
    %c0_15 = arith.constant 0 : index
    %c0_16 = arith.constant 0 : index
    %22 = vector.load %arg7[%c9, %c0_15, %c0_16] : memref<10x10x8xbf16, #tpu.memory_space<vmem>>, vector<1x10x8xbf16>
    tpu.vector_store %arg7[%c9, %c0_15, %c0_16], %21 {strides = array<i32>} : memref<10x10x8xbf16, #tpu.memory_space<vmem>>, vector<1x10x8xbf16>,
    %cst_17 = arith.constant 0.000000e+00 : bf16
    %23 = vector.broadcast %cst_17 : bf16 to vector<8x1x8xbf16>
    %c1 = arith.constant 1 : index
    %c0_18 = arith.constant 0 : index
    %c0_19 = arith.constant 0 : index
    %24 = vector.load %arg7[%c1, %c0_18, %c0_19] : memref<10x10x8xbf16, #tpu.memory_space<vmem>>, vector<8x1x8xbf16>
    tpu.vector_store %arg7[%c1, %c0_18, %c0_19], %23 {strides = array<i32>} : memref<10x10x8xbf16, #tpu.memory_space<vmem>>, vector<8x1x8xbf16>,
    %cst_20 = arith.constant 0.000000e+00 : bf16
    %25 = vector.broadcast %cst_20 : bf16 to vector<8x1x8xbf16>
    %c1_21 = arith.constant 1 : index
    %c9_22 = arith.constant 9 : index
    %c0_23 = arith.constant 0 : index
    %26 = vector.load %arg7[%c1_21, %c9_22, %c0_23] : memref<10x10x8xbf16, #tpu.memory_space<vmem>>, vector<8x1x8xbf16>
    tpu.vector_store %arg7[%c1_21, %c9_22, %c0_23], %25 {strides = array<i32>} : memref<10x10x8xbf16, #tpu.memory_space<vmem>>, vector<8x1x8xbf16>,
    %27 = vector.shape_cast %18 : vector<64x8xf32> to vector<8x8x8xf32>
    %28 = arith.truncf %27 : vector<8x8x8xf32> to vector<8x8x8xbf16>
    %c1_24 = arith.constant 1 : index
    %c1_25 = arith.constant 1 : index
    %c0_26 = arith.constant 0 : index
    %29 = vector.load %arg7[%c1_24, %c1_25, %c0_26] : memref<10x10x8xbf16, #tpu.memory_space<vmem>>, vector<8x8x8xbf16>
    tpu.vector_store %arg7[%c1_24, %c1_25, %c0_26], %28 {strides = array<i32>} : memref<10x10x8xbf16, #tpu.memory_space<vmem>>, vector<8x8x8xbf16>,
    %cst_27 = arith.constant 0.000000e+00 : f32
    %30 = vector.broadcast %cst_27 : f32 to vector<64x8xf32>
    %c0_28 = arith.constant 0 : index
    %c0_29 = arith.constant 0 : index
    %c0_30 = arith.constant 0 : index
    %31 = vector.load %arg7[%c0_28, %c0_29, %c0_30] : memref<10x10x8xbf16, #tpu.memory_space<vmem>>, vector<8x8x8xbf16>
    %32 = vector.shape_cast %31 : vector<8x8x8xbf16> to vector<64x8xbf16>
    %c0_31 = arith.constant 0 : index
    %c0_32 = arith.constant 0 : index
    %c0_33 = arith.constant 0 : index
    %33 = vector.load %arg4[%c0_31, %c0_32, %c0_33] : memref<9x8x8xbf16, #tpu.memory_space<vmem>>, vector<1x8x8xbf16>
    %34 = vector.shape_cast %33 : vector<1x8x8xbf16> to vector<8x8xbf16>
    %cst_34 = arith.constant dense<0.000000e+00> : vector<64x8xf32>
    %35 = tpu.matmul %32, %34, %cst_34 {dimension_numbers = #tpu.dot_dimension_numbers<[1], [0], [0], [1], [0, 0, 1, 1], [], []>} : vector<64x8xbf16>, vector<8x8xbf16>, vector<64x8xf32> -> vector<64x8xf32>
    %36 = arith.addf %30, %35 : vector<64x8xf32>
    %c0_35 = arith.constant 0 : index
    %c1_36 = arith.constant 1 : index
    %c0_37 = arith.constant 0 : index
    %37 = vector.load %arg7[%c0_35, %c1_36, %c0_37] : memref<10x10x8xbf16, #tpu.memory_space<vmem>>, vector<8x8x8xbf16>
    %38 = vector.shape_cast %37 : vector<8x8x8xbf16> to vector<64x8xbf16>
    %c1_38 = arith.constant 1 : index
    %c0_39 = arith.constant 0 : index
    %c0_40 = arith.constant 0 : index
    %39 = vector.load %arg4[%c1_38, %c0_39, %c0_40] : memref<9x8x8xbf16, #tpu.memory_space<vmem>>, vector<1x8x8xbf16>
    %40 = vector.shape_cast %39 : vector<1x8x8xbf16> to vector<8x8xbf16>
    %cst_41 = arith.constant dense<0.000000e+00> : vector<64x8xf32>
    %41 = tpu.matmul %38, %40, %cst_41 {dimension_numbers = #tpu.dot_dimension_numbers<[1], [0], [0], [1], [0, 0, 1, 1], [], []>} : vector<64x8xbf16>, vector<8x8xbf16>, vector<64x8xf32> -> vector<64x8xf32>
    %42 = arith.addf %36, %41 : vector<64x8xf32>
    %c0_42 = arith.constant 0 : index
    %c2 = arith.constant 2 : index
    %c0_43 = arith.constant 0 : index
    %43 = vector.load %arg7[%c0_42, %c2, %c0_43] : memref<10x10x8xbf16, #tpu.memory_space<vmem>>, vector<8x8x8xbf16>
    %44 = vector.shape_cast %43 : vector<8x8x8xbf16> to vector<64x8xbf16>
    %c2_44 = arith.constant 2 : index
    %c0_45 = arith.constant 0 : index
    %c0_46 = arith.constant 0 : index
    %45 = vector.load %arg4[%c2_44, %c0_45, %c0_46] : memref<9x8x8xbf16, #tpu.memory_space<vmem>>, vector<1x8x8xbf16>
    %46 = vector.shape_cast %45 : vector<1x8x8xbf16> to vector<8x8xbf16>
    %cst_47 = arith.constant dense<0.000000e+00> : vector<64x8xf32>
    %47 = tpu.matmul %44, %46, %cst_47 {dimension_numbers = #tpu.dot_dimension_numbers<[1], [0], [0], [1], [0, 0, 1, 1], [], []>} : vector<64x8xbf16>, vector<8x8xbf16>, vector<64x8xf32> -> vector<64x8xf32>
    %48 = arith.addf %42, %47 : vector<64x8xf32>
    %c1_48 = arith.constant 1 : index
    %c0_49 = arith.constant 0 : index
    %c0_50 = arith.constant 0 : index
    %49 = vector.load %arg7[%c1_48, %c0_49, %c0_50] : memref<10x10x8xbf16, #tpu.memory_space<vmem>>, vector<8x8x8xbf16>
    %50 = vector.shape_cast %49 : vector<8x8x8xbf16> to vector<64x8xbf16>
    %c3 = arith.constant 3 : index
    %c0_51 = arith.constant 0 : index
    %c0_52 = arith.constant 0 : index
    %51 = vector.load %arg4[%c3, %c0_51, %c0_52] : memref<9x8x8xbf16, #tpu.memory_space<vmem>>, vector<1x8x8xbf16>
    %52 = vector.shape_cast %51 : vector<1x8x8xbf16> to vector<8x8xbf16>
    %cst_53 = arith.constant dense<0.000000e+00> : vector<64x8xf32>
    %53 = tpu.matmul %50, %52, %cst_53 {dimension_numbers = #tpu.dot_dimension_numbers<[1], [0], [0], [1], [0, 0, 1, 1], [], []>} : vector<64x8xbf16>, vector<8x8xbf16>, vector<64x8xf32> -> vector<64x8xf32>
    %54 = arith.addf %48, %53 : vector<64x8xf32>
    %c1_54 = arith.constant 1 : index
    %c1_55 = arith.constant 1 : index
    %c0_56 = arith.constant 0 : index
    %55 = vector.load %arg7[%c1_54, %c1_55, %c0_56] : memref<10x10x8xbf16, #tpu.memory_space<vmem>>, vector<8x8x8xbf16>
    %56 = vector.shape_cast %55 : vector<8x8x8xbf16> to vector<64x8xbf16>
    %c4 = arith.constant 4 : index
    %c0_57 = arith.constant 0 : index
    %c0_58 = arith.constant 0 : index
    %57 = vector.load %arg4[%c4, %c0_57, %c0_58] : memref<9x8x8xbf16, #tpu.memory_space<vmem>>, vector<1x8x8xbf16>
    %58 = vector.shape_cast %57 : vector<1x8x8xbf16> to vector<8x8xbf16>
    %cst_59 = arith.constant dense<0.000000e+00> : vector<64x8xf32>
    %59 = tpu.matmul %56, %58, %cst_59 {dimension_numbers = #tpu.dot_dimension_numbers<[1], [0], [0], [1], [0, 0, 1, 1], [], []>} : vector<64x8xbf16>, vector<8x8xbf16>, vector<64x8xf32> -> vector<64x8xf32>
    %60 = arith.addf %54, %59 : vector<64x8xf32>
    %c1_60 = arith.constant 1 : index
    %c2_61 = arith.constant 2 : index
    %c0_62 = arith.constant 0 : index
    %61 = vector.load %arg7[%c1_60, %c2_61, %c0_62] : memref<10x10x8xbf16, #tpu.memory_space<vmem>>, vector<8x8x8xbf16>
    %62 = vector.shape_cast %61 : vector<8x8x8xbf16> to vector<64x8xbf16>
    %c5 = arith.constant 5 : index
    %c0_63 = arith.constant 0 : index
    %c0_64 = arith.constant 0 : index
    %63 = vector.load %arg4[%c5, %c0_63, %c0_64] : memref<9x8x8xbf16, #tpu.memory_space<vmem>>, vector<1x8x8xbf16>
    %64 = vector.shape_cast %63 : vector<1x8x8xbf16> to vector<8x8xbf16>
    %cst_65 = arith.constant dense<0.000000e+00> : vector<64x8xf32>
    %65 = tpu.matmul %62, %64, %cst_65 {dimension_numbers = #tpu.dot_dimension_numbers<[1], [0], [0], [1], [0, 0, 1, 1], [], []>} : vector<64x8xbf16>, vector<8x8xbf16>, vector<64x8xf32> -> vector<64x8xf32>
    %66 = arith.addf %60, %65 : vector<64x8xf32>
    %c2_66 = arith.constant 2 : index
    %c0_67 = arith.constant 0 : index
    %c0_68 = arith.constant 0 : index
    %67 = vector.load %arg7[%c2_66, %c0_67, %c0_68] : memref<10x10x8xbf16, #tpu.memory_space<vmem>>, vector<8x8x8xbf16>
    %68 = vector.shape_cast %67 : vector<8x8x8xbf16> to vector<64x8xbf16>
    %c6 = arith.constant 6 : index
    %c0_69 = arith.constant 0 : index
    %c0_70 = arith.constant 0 : index
    %69 = vector.load %arg4[%c6, %c0_69, %c0_70] : memref<9x8x8xbf16, #tpu.memory_space<vmem>>, vector<1x8x8xbf16>
    %70 = vector.shape_cast %69 : vector<1x8x8xbf16> to vector<8x8xbf16>
    %cst_71 = arith.constant dense<0.000000e+00> : vector<64x8xf32>
    %71 = tpu.matmul %68, %70, %cst_71 {dimension_numbers = #tpu.dot_dimension_numbers<[1], [0], [0], [1], [0, 0, 1, 1], [], []>} : vector<64x8xbf16>, vector<8x8xbf16>, vector<64x8xf32> -> vector<64x8xf32>
    %72 = arith.addf %66, %71 : vector<64x8xf32>
    %c2_72 = arith.constant 2 : index
    %c1_73 = arith.constant 1 : index
    %c0_74 = arith.constant 0 : index
    %73 = vector.load %arg7[%c2_72, %c1_73, %c0_74] : memref<10x10x8xbf16, #tpu.memory_space<vmem>>, vector<8x8x8xbf16>
    %74 = vector.shape_cast %73 : vector<8x8x8xbf16> to vector<64x8xbf16>
    %c7 = arith.constant 7 : index
    %c0_75 = arith.constant 0 : index
    %c0_76 = arith.constant 0 : index
    %75 = vector.load %arg4[%c7, %c0_75, %c0_76] : memref<9x8x8xbf16, #tpu.memory_space<vmem>>, vector<1x8x8xbf16>
    %76 = vector.shape_cast %75 : vector<1x8x8xbf16> to vector<8x8xbf16>
    %cst_77 = arith.constant dense<0.000000e+00> : vector<64x8xf32>
    %77 = tpu.matmul %74, %76, %cst_77 {dimension_numbers = #tpu.dot_dimension_numbers<[1], [0], [0], [1], [0, 0, 1, 1], [], []>} : vector<64x8xbf16>, vector<8x8xbf16>, vector<64x8xf32> -> vector<64x8xf32>
    %78 = arith.addf %72, %77 : vector<64x8xf32>
    %c2_78 = arith.constant 2 : index
    %c2_79 = arith.constant 2 : index
    %c0_80 = arith.constant 0 : index
    %79 = vector.load %arg7[%c2_78, %c2_79, %c0_80] : memref<10x10x8xbf16, #tpu.memory_space<vmem>>, vector<8x8x8xbf16>
    %80 = vector.shape_cast %79 : vector<8x8x8xbf16> to vector<64x8xbf16>
    %c8 = arith.constant 8 : index
    %c0_81 = arith.constant 0 : index
    %c0_82 = arith.constant 0 : index
    %81 = vector.load %arg4[%c8, %c0_81, %c0_82] : memref<9x8x8xbf16, #tpu.memory_space<vmem>>, vector<1x8x8xbf16>
    %82 = vector.shape_cast %81 : vector<1x8x8xbf16> to vector<8x8xbf16>
    %cst_83 = arith.constant dense<0.000000e+00> : vector<64x8xf32>
    %83 = tpu.matmul %80, %82, %cst_83 {dimension_numbers = #tpu.dot_dimension_numbers<[1], [0], [0], [1], [0, 0, 1, 1], [], []>} : vector<64x8xbf16>, vector<8x8xbf16>, vector<64x8xf32> -> vector<64x8xf32>
    %84 = arith.addf %78, %83 : vector<64x8xf32>
    %c0_84 = arith.constant 0 : index
    %c0_85 = arith.constant 0 : index
    %85 = vector.load %arg5[%c0_84, %c0_85] : memref<1x8xf32, #tpu.memory_space<vmem>>, vector<1x8xf32>
    %86 = vector.broadcast %85 : vector<1x8xf32> to vector<64x8xf32>
    %87 = arith.addf %84, %86 : vector<64x8xf32>
    %cst_86 = arith.constant 2.000000e+01 : f32
    %88 = vector.broadcast %cst_86 : f32 to vector<64x8xf32>
    %89 = arith.minimumf %87, %88 : vector<64x8xf32>
    %90 = math.exp %89 : vector<64x8xf32>
    %cst_87 = arith.constant 2.000000e+00 : f32
    %91 = vector.broadcast %cst_87 : f32 to vector<64x8xf32>
    %92 = arith.addf %90, %91 : vector<64x8xf32>
    %93 = arith.mulf %90, %92 : vector<64x8xf32>
    %cst_88 = arith.constant 2.000000e+00 : f32
    %94 = vector.broadcast %cst_88 : f32 to vector<64x8xf32>
    %95 = arith.addf %93, %94 : vector<64x8xf32>
    %96 = tpu.reciprocal %95 {approx = true} : vector<64x8xf32> -> vector<64x8xf32>
    %97 = arith.mulf %93, %96 : vector<64x8xf32>
    %98 = arith.mulf %87, %97 : vector<64x8xf32>
    %99 = vector.shape_cast %98 : vector<64x8xf32> to vector<8x8x8xf32>
    %100 = arith.extf %1 : vector<8x8x8xbf16> to vector<8x8x8xf32>
    %101 = arith.addf %99, %100 : vector<8x8x8xf32>
    %102 = arith.truncf %101 : vector<8x8x8xf32> to vector<8x8x8xbf16>
    %c0_89 = arith.constant 0 : index
    %c0_90 = arith.constant 0 : index
    %c0_91 = arith.constant 0 : index
    %c0_92 = arith.constant 0 : index
    %103 = vector.load %arg6[%c0_89, %c0_90, %c0_91, %c0_92] : memref<1x8x8x8xbf16, #tpu.memory_space<vmem>>, vector<1x8x8x8xbf16>
    %104 = vector.shape_cast %103 : vector<1x8x8x8xbf16> to vector<8x8x8xbf16>
    %105 = vector.shape_cast %102 : vector<8x8x8xbf16> to vector<1x8x8x8xbf16>
    tpu.vector_store %arg6[%c0_89, %c0_90, %c0_91, %c0_92], %105 {strides = array<i32>} : memref<1x8x8x8xbf16, #tpu.memory_space<vmem>>, vector<1x8x8x8xbf16>,
    return
  }
  func.func @transform_0(%arg0: i32) -> (i32, i32, i32, i32) {
    %c0_i32 = arith.constant 0 : i32
    %c0_i32_0 = arith.constant 0 : i32
    %c0_i32_1 = arith.constant 0 : i32
    %c0_i32_2 = arith.constant 0 : i32
    return %arg0, %c0_i32, %c0_i32_0, %c0_i32_1 : i32, i32, i32, i32
  }
  func.func @transform_1(%arg0: i32) -> (i32, i32) {
    %c0_i32 = arith.constant 0 : i32
    %c0_i32_0 = arith.constant 0 : i32
    %c0_i32_1 = arith.constant 0 : i32
    return %c0_i32, %c0_i32_0 : i32, i32
  }
  func.func @transform_2(%arg0: i32) -> (i32, i32) {
    %c0_i32 = arith.constant 0 : i32
    %c0_i32_0 = arith.constant 0 : i32
    %c0_i32_1 = arith.constant 0 : i32
    return %c0_i32, %c0_i32_0 : i32, i32
  }
  func.func @transform_3(%arg0: i32) -> (i32, i32, i32) {
    %c0_i32 = arith.constant 0 : i32
    %c0_i32_0 = arith.constant 0 : i32
    %c0_i32_1 = arith.constant 0 : i32
    %c0_i32_2 = arith.constant 0 : i32
    return %c0_i32, %c0_i32_0, %c0_i32_1 : i32, i32, i32
  }
  func.func @transform_4(%arg0: i32) -> (i32, i32) {
    %c0_i32 = arith.constant 0 : i32
    %c0_i32_0 = arith.constant 0 : i32
    %c0_i32_1 = arith.constant 0 : i32
    return %c0_i32, %c0_i32_0 : i32, i32
  }
  func.func @transform_5(%arg0: i32) -> (i32, i32, i32, i32) {
    %c0_i32 = arith.constant 0 : i32
    %c0_i32_0 = arith.constant 0 : i32
    %c0_i32_1 = arith.constant 0 : i32
    %c0_i32_2 = arith.constant 0 : i32
    return %arg0, %c0_i32, %c0_i32_0, %c0_i32_1 : i32, i32, i32, i32
  }
}

module attributes {stable_mosaic.version = 11 : i64} {
  func.func @kernel(%arg0: i32, %arg1: memref<1x8x8x8xbf16, #tpu.memory_space<vmem>>, %arg2: memref<9x8x8xbf16, #tpu.memory_space<vmem>>, %arg3: memref<1x8xf32, #tpu.memory_space<vmem>>, %arg4: memref<1x8x8x8xbf16, #tpu.memory_space<vmem>>, %arg5: memref<10x10x8xbf16, #tpu.memory_space<vmem>>) attributes {dimension_semantics = [#tpu.dimension_semantics<parallel>], iteration_bounds = array<i64: 2>, scalar_prefetch = 0 : i64, scratch_operands = 1 : i64, tpu.core_type = #tpu.core_type<tc>, window_params = [{transform_indices = @transform_0, window_bounds = array<i64: 1, 8, 8, 8>}, {pipeline_mode = #tpu.pipeline_mode<synchronous>, transform_indices = @transform_1, window_bounds = array<i64: 9, 8, 8>}, {pipeline_mode = #tpu.pipeline_mode<synchronous>, transform_indices = @transform_2, window_bounds = array<i64: 1, 8>}, {transform_indices = @transform_3, window_bounds = array<i64: 1, 8, 8, 8>}]} {
    %cst = arith.constant 0.000000e+00 : bf16
    %0 = vector.broadcast %cst : bf16 to vector<1x10x8xbf16>
    %c0 = arith.constant 0 : index
    %c0_0 = arith.constant 0 : index
    %c0_1 = arith.constant 0 : index
    %1 = vector.load %arg5[%c0, %c0_0, %c0_1] : memref<10x10x8xbf16, #tpu.memory_space<vmem>>, vector<1x10x8xbf16>
    tpu.vector_store %arg5[%c0, %c0_0, %c0_1], %0 {strides = array<i32>} : memref<10x10x8xbf16, #tpu.memory_space<vmem>>, vector<1x10x8xbf16>,
    %cst_2 = arith.constant 0.000000e+00 : bf16
    %2 = vector.broadcast %cst_2 : bf16 to vector<1x10x8xbf16>
    %c9 = arith.constant 9 : index
    %c0_3 = arith.constant 0 : index
    %c0_4 = arith.constant 0 : index
    %3 = vector.load %arg5[%c9, %c0_3, %c0_4] : memref<10x10x8xbf16, #tpu.memory_space<vmem>>, vector<1x10x8xbf16>
    tpu.vector_store %arg5[%c9, %c0_3, %c0_4], %2 {strides = array<i32>} : memref<10x10x8xbf16, #tpu.memory_space<vmem>>, vector<1x10x8xbf16>,
    %cst_5 = arith.constant 0.000000e+00 : bf16
    %4 = vector.broadcast %cst_5 : bf16 to vector<8x1x8xbf16>
    %c1 = arith.constant 1 : index
    %c0_6 = arith.constant 0 : index
    %c0_7 = arith.constant 0 : index
    %5 = vector.load %arg5[%c1, %c0_6, %c0_7] : memref<10x10x8xbf16, #tpu.memory_space<vmem>>, vector<8x1x8xbf16>
    tpu.vector_store %arg5[%c1, %c0_6, %c0_7], %4 {strides = array<i32>} : memref<10x10x8xbf16, #tpu.memory_space<vmem>>, vector<8x1x8xbf16>,
    %cst_8 = arith.constant 0.000000e+00 : bf16
    %6 = vector.broadcast %cst_8 : bf16 to vector<8x1x8xbf16>
    %c1_9 = arith.constant 1 : index
    %c9_10 = arith.constant 9 : index
    %c0_11 = arith.constant 0 : index
    %7 = vector.load %arg5[%c1_9, %c9_10, %c0_11] : memref<10x10x8xbf16, #tpu.memory_space<vmem>>, vector<8x1x8xbf16>
    tpu.vector_store %arg5[%c1_9, %c9_10, %c0_11], %6 {strides = array<i32>} : memref<10x10x8xbf16, #tpu.memory_space<vmem>>, vector<8x1x8xbf16>,
    %c0_12 = arith.constant 0 : index
    %c0_13 = arith.constant 0 : index
    %c0_14 = arith.constant 0 : index
    %c0_15 = arith.constant 0 : index
    %8 = vector.load %arg1[%c0_12, %c0_13, %c0_14, %c0_15] : memref<1x8x8x8xbf16, #tpu.memory_space<vmem>>, vector<1x8x8x8xbf16>
    %9 = vector.shape_cast %8 : vector<1x8x8x8xbf16> to vector<8x8x8xbf16>
    %c1_16 = arith.constant 1 : index
    %c1_17 = arith.constant 1 : index
    %c0_18 = arith.constant 0 : index
    %10 = vector.load %arg5[%c1_16, %c1_17, %c0_18] : memref<10x10x8xbf16, #tpu.memory_space<vmem>>, vector<8x8x8xbf16>
    tpu.vector_store %arg5[%c1_16, %c1_17, %c0_18], %9 {strides = array<i32>} : memref<10x10x8xbf16, #tpu.memory_space<vmem>>, vector<8x8x8xbf16>,
    %cst_19 = arith.constant 0.000000e+00 : f32
    %11 = vector.broadcast %cst_19 : f32 to vector<64x8xf32>
    %c0_20 = arith.constant 0 : index
    %c0_21 = arith.constant 0 : index
    %c0_22 = arith.constant 0 : index
    %12 = vector.load %arg5[%c0_20, %c0_21, %c0_22] : memref<10x10x8xbf16, #tpu.memory_space<vmem>>, vector<8x8x8xbf16>
    %13 = vector.shape_cast %12 : vector<8x8x8xbf16> to vector<64x8xbf16>
    %c0_23 = arith.constant 0 : index
    %c0_24 = arith.constant 0 : index
    %c0_25 = arith.constant 0 : index
    %14 = vector.load %arg2[%c0_23, %c0_24, %c0_25] : memref<9x8x8xbf16, #tpu.memory_space<vmem>>, vector<1x8x8xbf16>
    %15 = vector.shape_cast %14 : vector<1x8x8xbf16> to vector<8x8xbf16>
    %cst_26 = arith.constant dense<0.000000e+00> : vector<64x8xf32>
    %16 = tpu.matmul %13, %15, %cst_26 {dimension_numbers = #tpu.dot_dimension_numbers<[1], [0], [0], [1], [0, 0, 1, 1], [], []>} : vector<64x8xbf16>, vector<8x8xbf16>, vector<64x8xf32> -> vector<64x8xf32>
    %17 = arith.addf %11, %16 : vector<64x8xf32>
    %c0_27 = arith.constant 0 : index
    %c1_28 = arith.constant 1 : index
    %c0_29 = arith.constant 0 : index
    %18 = vector.load %arg5[%c0_27, %c1_28, %c0_29] : memref<10x10x8xbf16, #tpu.memory_space<vmem>>, vector<8x8x8xbf16>
    %19 = vector.shape_cast %18 : vector<8x8x8xbf16> to vector<64x8xbf16>
    %c1_30 = arith.constant 1 : index
    %c0_31 = arith.constant 0 : index
    %c0_32 = arith.constant 0 : index
    %20 = vector.load %arg2[%c1_30, %c0_31, %c0_32] : memref<9x8x8xbf16, #tpu.memory_space<vmem>>, vector<1x8x8xbf16>
    %21 = vector.shape_cast %20 : vector<1x8x8xbf16> to vector<8x8xbf16>
    %cst_33 = arith.constant dense<0.000000e+00> : vector<64x8xf32>
    %22 = tpu.matmul %19, %21, %cst_33 {dimension_numbers = #tpu.dot_dimension_numbers<[1], [0], [0], [1], [0, 0, 1, 1], [], []>} : vector<64x8xbf16>, vector<8x8xbf16>, vector<64x8xf32> -> vector<64x8xf32>
    %23 = arith.addf %17, %22 : vector<64x8xf32>
    %c0_34 = arith.constant 0 : index
    %c2 = arith.constant 2 : index
    %c0_35 = arith.constant 0 : index
    %24 = vector.load %arg5[%c0_34, %c2, %c0_35] : memref<10x10x8xbf16, #tpu.memory_space<vmem>>, vector<8x8x8xbf16>
    %25 = vector.shape_cast %24 : vector<8x8x8xbf16> to vector<64x8xbf16>
    %c2_36 = arith.constant 2 : index
    %c0_37 = arith.constant 0 : index
    %c0_38 = arith.constant 0 : index
    %26 = vector.load %arg2[%c2_36, %c0_37, %c0_38] : memref<9x8x8xbf16, #tpu.memory_space<vmem>>, vector<1x8x8xbf16>
    %27 = vector.shape_cast %26 : vector<1x8x8xbf16> to vector<8x8xbf16>
    %cst_39 = arith.constant dense<0.000000e+00> : vector<64x8xf32>
    %28 = tpu.matmul %25, %27, %cst_39 {dimension_numbers = #tpu.dot_dimension_numbers<[1], [0], [0], [1], [0, 0, 1, 1], [], []>} : vector<64x8xbf16>, vector<8x8xbf16>, vector<64x8xf32> -> vector<64x8xf32>
    %29 = arith.addf %23, %28 : vector<64x8xf32>
    %c1_40 = arith.constant 1 : index
    %c0_41 = arith.constant 0 : index
    %c0_42 = arith.constant 0 : index
    %30 = vector.load %arg5[%c1_40, %c0_41, %c0_42] : memref<10x10x8xbf16, #tpu.memory_space<vmem>>, vector<8x8x8xbf16>
    %31 = vector.shape_cast %30 : vector<8x8x8xbf16> to vector<64x8xbf16>
    %c3 = arith.constant 3 : index
    %c0_43 = arith.constant 0 : index
    %c0_44 = arith.constant 0 : index
    %32 = vector.load %arg2[%c3, %c0_43, %c0_44] : memref<9x8x8xbf16, #tpu.memory_space<vmem>>, vector<1x8x8xbf16>
    %33 = vector.shape_cast %32 : vector<1x8x8xbf16> to vector<8x8xbf16>
    %cst_45 = arith.constant dense<0.000000e+00> : vector<64x8xf32>
    %34 = tpu.matmul %31, %33, %cst_45 {dimension_numbers = #tpu.dot_dimension_numbers<[1], [0], [0], [1], [0, 0, 1, 1], [], []>} : vector<64x8xbf16>, vector<8x8xbf16>, vector<64x8xf32> -> vector<64x8xf32>
    %35 = arith.addf %29, %34 : vector<64x8xf32>
    %c1_46 = arith.constant 1 : index
    %c1_47 = arith.constant 1 : index
    %c0_48 = arith.constant 0 : index
    %36 = vector.load %arg5[%c1_46, %c1_47, %c0_48] : memref<10x10x8xbf16, #tpu.memory_space<vmem>>, vector<8x8x8xbf16>
    %37 = vector.shape_cast %36 : vector<8x8x8xbf16> to vector<64x8xbf16>
    %c4 = arith.constant 4 : index
    %c0_49 = arith.constant 0 : index
    %c0_50 = arith.constant 0 : index
    %38 = vector.load %arg2[%c4, %c0_49, %c0_50] : memref<9x8x8xbf16, #tpu.memory_space<vmem>>, vector<1x8x8xbf16>
    %39 = vector.shape_cast %38 : vector<1x8x8xbf16> to vector<8x8xbf16>
    %cst_51 = arith.constant dense<0.000000e+00> : vector<64x8xf32>
    %40 = tpu.matmul %37, %39, %cst_51 {dimension_numbers = #tpu.dot_dimension_numbers<[1], [0], [0], [1], [0, 0, 1, 1], [], []>} : vector<64x8xbf16>, vector<8x8xbf16>, vector<64x8xf32> -> vector<64x8xf32>
    %41 = arith.addf %35, %40 : vector<64x8xf32>
    %c1_52 = arith.constant 1 : index
    %c2_53 = arith.constant 2 : index
    %c0_54 = arith.constant 0 : index
    %42 = vector.load %arg5[%c1_52, %c2_53, %c0_54] : memref<10x10x8xbf16, #tpu.memory_space<vmem>>, vector<8x8x8xbf16>
    %43 = vector.shape_cast %42 : vector<8x8x8xbf16> to vector<64x8xbf16>
    %c5 = arith.constant 5 : index
    %c0_55 = arith.constant 0 : index
    %c0_56 = arith.constant 0 : index
    %44 = vector.load %arg2[%c5, %c0_55, %c0_56] : memref<9x8x8xbf16, #tpu.memory_space<vmem>>, vector<1x8x8xbf16>
    %45 = vector.shape_cast %44 : vector<1x8x8xbf16> to vector<8x8xbf16>
    %cst_57 = arith.constant dense<0.000000e+00> : vector<64x8xf32>
    %46 = tpu.matmul %43, %45, %cst_57 {dimension_numbers = #tpu.dot_dimension_numbers<[1], [0], [0], [1], [0, 0, 1, 1], [], []>} : vector<64x8xbf16>, vector<8x8xbf16>, vector<64x8xf32> -> vector<64x8xf32>
    %47 = arith.addf %41, %46 : vector<64x8xf32>
    %c2_58 = arith.constant 2 : index
    %c0_59 = arith.constant 0 : index
    %c0_60 = arith.constant 0 : index
    %48 = vector.load %arg5[%c2_58, %c0_59, %c0_60] : memref<10x10x8xbf16, #tpu.memory_space<vmem>>, vector<8x8x8xbf16>
    %49 = vector.shape_cast %48 : vector<8x8x8xbf16> to vector<64x8xbf16>
    %c6 = arith.constant 6 : index
    %c0_61 = arith.constant 0 : index
    %c0_62 = arith.constant 0 : index
    %50 = vector.load %arg2[%c6, %c0_61, %c0_62] : memref<9x8x8xbf16, #tpu.memory_space<vmem>>, vector<1x8x8xbf16>
    %51 = vector.shape_cast %50 : vector<1x8x8xbf16> to vector<8x8xbf16>
    %cst_63 = arith.constant dense<0.000000e+00> : vector<64x8xf32>
    %52 = tpu.matmul %49, %51, %cst_63 {dimension_numbers = #tpu.dot_dimension_numbers<[1], [0], [0], [1], [0, 0, 1, 1], [], []>} : vector<64x8xbf16>, vector<8x8xbf16>, vector<64x8xf32> -> vector<64x8xf32>
    %53 = arith.addf %47, %52 : vector<64x8xf32>
    %c2_64 = arith.constant 2 : index
    %c1_65 = arith.constant 1 : index
    %c0_66 = arith.constant 0 : index
    %54 = vector.load %arg5[%c2_64, %c1_65, %c0_66] : memref<10x10x8xbf16, #tpu.memory_space<vmem>>, vector<8x8x8xbf16>
    %55 = vector.shape_cast %54 : vector<8x8x8xbf16> to vector<64x8xbf16>
    %c7 = arith.constant 7 : index
    %c0_67 = arith.constant 0 : index
    %c0_68 = arith.constant 0 : index
    %56 = vector.load %arg2[%c7, %c0_67, %c0_68] : memref<9x8x8xbf16, #tpu.memory_space<vmem>>, vector<1x8x8xbf16>
    %57 = vector.shape_cast %56 : vector<1x8x8xbf16> to vector<8x8xbf16>
    %cst_69 = arith.constant dense<0.000000e+00> : vector<64x8xf32>
    %58 = tpu.matmul %55, %57, %cst_69 {dimension_numbers = #tpu.dot_dimension_numbers<[1], [0], [0], [1], [0, 0, 1, 1], [], []>} : vector<64x8xbf16>, vector<8x8xbf16>, vector<64x8xf32> -> vector<64x8xf32>
    %59 = arith.addf %53, %58 : vector<64x8xf32>
    %c2_70 = arith.constant 2 : index
    %c2_71 = arith.constant 2 : index
    %c0_72 = arith.constant 0 : index
    %60 = vector.load %arg5[%c2_70, %c2_71, %c0_72] : memref<10x10x8xbf16, #tpu.memory_space<vmem>>, vector<8x8x8xbf16>
    %61 = vector.shape_cast %60 : vector<8x8x8xbf16> to vector<64x8xbf16>
    %c8 = arith.constant 8 : index
    %c0_73 = arith.constant 0 : index
    %c0_74 = arith.constant 0 : index
    %62 = vector.load %arg2[%c8, %c0_73, %c0_74] : memref<9x8x8xbf16, #tpu.memory_space<vmem>>, vector<1x8x8xbf16>
    %63 = vector.shape_cast %62 : vector<1x8x8xbf16> to vector<8x8xbf16>
    %cst_75 = arith.constant dense<0.000000e+00> : vector<64x8xf32>
    %64 = tpu.matmul %61, %63, %cst_75 {dimension_numbers = #tpu.dot_dimension_numbers<[1], [0], [0], [1], [0, 0, 1, 1], [], []>} : vector<64x8xbf16>, vector<8x8xbf16>, vector<64x8xf32> -> vector<64x8xf32>
    %65 = arith.addf %59, %64 : vector<64x8xf32>
    %c0_76 = arith.constant 0 : index
    %c0_77 = arith.constant 0 : index
    %66 = vector.load %arg3[%c0_76, %c0_77] : memref<1x8xf32, #tpu.memory_space<vmem>>, vector<1x8xf32>
    %67 = vector.broadcast %66 : vector<1x8xf32> to vector<64x8xf32>
    %68 = arith.addf %65, %67 : vector<64x8xf32>
    %cst_78 = arith.constant 2.000000e+01 : f32
    %69 = vector.broadcast %cst_78 : f32 to vector<64x8xf32>
    %70 = arith.minimumf %68, %69 : vector<64x8xf32>
    %71 = math.exp %70 : vector<64x8xf32>
    %cst_79 = arith.constant 2.000000e+00 : f32
    %72 = vector.broadcast %cst_79 : f32 to vector<64x8xf32>
    %73 = arith.addf %71, %72 : vector<64x8xf32>
    %74 = arith.mulf %71, %73 : vector<64x8xf32>
    %cst_80 = arith.constant 2.000000e+00 : f32
    %75 = vector.broadcast %cst_80 : f32 to vector<64x8xf32>
    %76 = arith.addf %74, %75 : vector<64x8xf32>
    %77 = tpu.reciprocal %76 {approx = true} : vector<64x8xf32> -> vector<64x8xf32>
    %78 = arith.mulf %74, %77 : vector<64x8xf32>
    %79 = arith.mulf %68, %78 : vector<64x8xf32>
    %80 = vector.shape_cast %79 : vector<64x8xf32> to vector<8x8x8xf32>
    %81 = arith.truncf %80 : vector<8x8x8xf32> to vector<8x8x8xbf16>
    %c0_81 = arith.constant 0 : index
    %c0_82 = arith.constant 0 : index
    %c0_83 = arith.constant 0 : index
    %c0_84 = arith.constant 0 : index
    %82 = vector.load %arg4[%c0_81, %c0_82, %c0_83, %c0_84] : memref<1x8x8x8xbf16, #tpu.memory_space<vmem>>, vector<1x8x8x8xbf16>
    %83 = vector.shape_cast %82 : vector<1x8x8x8xbf16> to vector<8x8x8xbf16>
    %84 = vector.shape_cast %81 : vector<8x8x8xbf16> to vector<1x8x8x8xbf16>
    tpu.vector_store %arg4[%c0_81, %c0_82, %c0_83, %c0_84], %84 {strides = array<i32>} : memref<1x8x8x8xbf16, #tpu.memory_space<vmem>>, vector<1x8x8x8xbf16>,
    return
  }
  func.func @transform_0(%arg0: i32) -> (i32, i32, i32, i32) {
    %c0_i32 = arith.constant 0 : i32
    %c0_i32_0 = arith.constant 0 : i32
    %c0_i32_1 = arith.constant 0 : i32
    %c0_i32_2 = arith.constant 0 : i32
    return %arg0, %c0_i32, %c0_i32_0, %c0_i32_1 : i32, i32, i32, i32
  }
  func.func @transform_1(%arg0: i32) -> (i32, i32, i32) {
    %c0_i32 = arith.constant 0 : i32
    %c0_i32_0 = arith.constant 0 : i32
    %c0_i32_1 = arith.constant 0 : i32
    %c0_i32_2 = arith.constant 0 : i32
    return %c0_i32, %c0_i32_0, %c0_i32_1 : i32, i32, i32
  }
  func.func @transform_2(%arg0: i32) -> (i32, i32) {
    %c0_i32 = arith.constant 0 : i32
    %c0_i32_0 = arith.constant 0 : i32
    %c0_i32_1 = arith.constant 0 : i32
    return %c0_i32, %c0_i32_0 : i32, i32
  }
  func.func @transform_3(%arg0: i32) -> (i32, i32, i32, i32) {
    %c0_i32 = arith.constant 0 : i32
    %c0_i32_0 = arith.constant 0 : i32
    %c0_i32_1 = arith.constant 0 : i32
    %c0_i32_2 = arith.constant 0 : i32
    return %arg0, %c0_i32, %c0_i32_0, %c0_i32_1 : i32, i32, i32, i32
  }
}

module attributes {stable_mosaic.version = 11 : i64} {
  func.func @kernel(%arg0: i32, %arg1: memref<1x8x8x8xbf16, #tpu.memory_space<vmem>>, %arg2: memref<1x8x8x8xbf16, #tpu.memory_space<vmem>>, %arg3: memref<8x8xbf16, #tpu.memory_space<vmem>>, %arg4: memref<8x8xbf16, #tpu.memory_space<vmem>>, %arg5: memref<1x8xf32, #tpu.memory_space<vmem>>, %arg6: memref<1x8x8x8xf32, #tpu.memory_space<vmem>>) attributes {dimension_semantics = [#tpu.dimension_semantics<parallel>], iteration_bounds = array<i64: 2>, scalar_prefetch = 0 : i64, scratch_operands = 0 : i64, tpu.core_type = #tpu.core_type<tc>, window_params = [{transform_indices = @transform_0, window_bounds = array<i64: 1, 8, 8, 8>}, {transform_indices = @transform_1, window_bounds = array<i64: 1, 8, 8, 8>}, {pipeline_mode = #tpu.pipeline_mode<synchronous>, transform_indices = @transform_2, window_bounds = array<i64: 8, 8>}, {pipeline_mode = #tpu.pipeline_mode<synchronous>, transform_indices = @transform_3, window_bounds = array<i64: 8, 8>}, {pipeline_mode = #tpu.pipeline_mode<synchronous>, transform_indices = @transform_4, window_bounds = array<i64: 1, 8>}, {transform_indices = @transform_5, window_bounds = array<i64: 1, 8, 8, 8>}]} {
    %c0 = arith.constant 0 : index
    %c0_0 = arith.constant 0 : index
    %c0_1 = arith.constant 0 : index
    %c0_2 = arith.constant 0 : index
    %0 = vector.load %arg1[%c0, %c0_0, %c0_1, %c0_2] : memref<1x8x8x8xbf16, #tpu.memory_space<vmem>>, vector<1x8x8x8xbf16>
    %1 = vector.shape_cast %0 : vector<1x8x8x8xbf16> to vector<8x8x8xbf16>
    %2 = vector.shape_cast %1 : vector<8x8x8xbf16> to vector<64x8xbf16>
    %c0_3 = arith.constant 0 : index
    %c0_4 = arith.constant 0 : index
    %3 = vector.load %arg3[%c0_3, %c0_4] : memref<8x8xbf16, #tpu.memory_space<vmem>>, vector<8x8xbf16>
    %cst = arith.constant dense<0.000000e+00> : vector<64x8xf32>
    %4 = tpu.matmul %2, %3, %cst {dimension_numbers = #tpu.dot_dimension_numbers<[1], [0], [0], [1], [0, 0, 1, 1], [], []>} : vector<64x8xbf16>, vector<8x8xbf16>, vector<64x8xf32> -> vector<64x8xf32>
    %c0_5 = arith.constant 0 : index
    %c0_6 = arith.constant 0 : index
    %c0_7 = arith.constant 0 : index
    %c0_8 = arith.constant 0 : index
    %5 = vector.load %arg2[%c0_5, %c0_6, %c0_7, %c0_8] : memref<1x8x8x8xbf16, #tpu.memory_space<vmem>>, vector<1x8x8x8xbf16>
    %6 = vector.shape_cast %5 : vector<1x8x8x8xbf16> to vector<8x8x8xbf16>
    %7 = vector.shape_cast %6 : vector<8x8x8xbf16> to vector<64x8xbf16>
    %c0_9 = arith.constant 0 : index
    %c0_10 = arith.constant 0 : index
    %8 = vector.load %arg4[%c0_9, %c0_10] : memref<8x8xbf16, #tpu.memory_space<vmem>>, vector<8x8xbf16>
    %cst_11 = arith.constant dense<0.000000e+00> : vector<64x8xf32>
    %9 = tpu.matmul %7, %8, %cst_11 {dimension_numbers = #tpu.dot_dimension_numbers<[1], [0], [0], [1], [0, 0, 1, 1], [], []>} : vector<64x8xbf16>, vector<8x8xbf16>, vector<64x8xf32> -> vector<64x8xf32>
    %10 = arith.addf %4, %9 : vector<64x8xf32>
    %c0_12 = arith.constant 0 : index
    %c0_13 = arith.constant 0 : index
    %11 = vector.load %arg5[%c0_12, %c0_13] : memref<1x8xf32, #tpu.memory_space<vmem>>, vector<1x8xf32>
    %12 = vector.broadcast %11 : vector<1x8xf32> to vector<64x8xf32>
    %13 = arith.addf %10, %12 : vector<64x8xf32>
    %cst_14 = arith.constant 2.000000e+01 : f32
    %14 = vector.broadcast %cst_14 : f32 to vector<64x8xf32>
    %15 = arith.minimumf %13, %14 : vector<64x8xf32>
    %16 = math.exp %15 : vector<64x8xf32>
    %cst_15 = arith.constant 2.000000e+00 : f32
    %17 = vector.broadcast %cst_15 : f32 to vector<64x8xf32>
    %18 = arith.addf %16, %17 : vector<64x8xf32>
    %19 = arith.mulf %16, %18 : vector<64x8xf32>
    %cst_16 = arith.constant 2.000000e+00 : f32
    %20 = vector.broadcast %cst_16 : f32 to vector<64x8xf32>
    %21 = arith.addf %19, %20 : vector<64x8xf32>
    %22 = tpu.reciprocal %21 {approx = true} : vector<64x8xf32> -> vector<64x8xf32>
    %23 = arith.mulf %19, %22 : vector<64x8xf32>
    %24 = arith.mulf %13, %23 : vector<64x8xf32>
    %25 = vector.shape_cast %24 : vector<64x8xf32> to vector<8x8x8xf32>
    %c0_17 = arith.constant 0 : index
    %c0_18 = arith.constant 0 : index
    %c0_19 = arith.constant 0 : index
    %c0_20 = arith.constant 0 : index
    %26 = vector.load %arg6[%c0_17, %c0_18, %c0_19, %c0_20] : memref<1x8x8x8xf32, #tpu.memory_space<vmem>>, vector<1x8x8x8xf32>
    %27 = vector.shape_cast %26 : vector<1x8x8x8xf32> to vector<8x8x8xf32>
    %28 = vector.shape_cast %25 : vector<8x8x8xf32> to vector<1x8x8x8xf32>
    tpu.vector_store %arg6[%c0_17, %c0_18, %c0_19, %c0_20], %28 {strides = array<i32>} : memref<1x8x8x8xf32, #tpu.memory_space<vmem>>, vector<1x8x8x8xf32>,
    return
  }
  func.func @transform_0(%arg0: i32) -> (i32, i32, i32, i32) {
    %c0_i32 = arith.constant 0 : i32
    %c0_i32_0 = arith.constant 0 : i32
    %c0_i32_1 = arith.constant 0 : i32
    %c0_i32_2 = arith.constant 0 : i32
    return %arg0, %c0_i32, %c0_i32_0, %c0_i32_1 : i32, i32, i32, i32
  }
  func.func @transform_1(%arg0: i32) -> (i32, i32, i32, i32) {
    %c0_i32 = arith.constant 0 : i32
    %c0_i32_0 = arith.constant 0 : i32
    %c0_i32_1 = arith.constant 0 : i32
    %c0_i32_2 = arith.constant 0 : i32
    return %arg0, %c0_i32, %c0_i32_0, %c0_i32_1 : i32, i32, i32, i32
  }
  func.func @transform_2(%arg0: i32) -> (i32, i32) {
    %c0_i32 = arith.constant 0 : i32
    %c0_i32_0 = arith.constant 0 : i32
    %c0_i32_1 = arith.constant 0 : i32
    return %c0_i32, %c0_i32_0 : i32, i32
  }
  func.func @transform_3(%arg0: i32) -> (i32, i32) {
    %c0_i32 = arith.constant 0 : i32
    %c0_i32_0 = arith.constant 0 : i32
    %c0_i32_1 = arith.constant 0 : i32
    return %c0_i32, %c0_i32_0 : i32, i32
  }
  func.func @transform_4(%arg0: i32) -> (i32, i32) {
    %c0_i32 = arith.constant 0 : i32
    %c0_i32_0 = arith.constant 0 : i32
    %c0_i32_1 = arith.constant 0 : i32
    return %c0_i32, %c0_i32_0 : i32, i32
  }
  func.func @transform_5(%arg0: i32) -> (i32, i32, i32, i32) {
    %c0_i32 = arith.constant 0 : i32
    %c0_i32_0 = arith.constant 0 : i32
    %c0_i32_1 = arith.constant 0 : i32
    %c0_i32_2 = arith.constant 0 : i32
    return %arg0, %c0_i32, %c0_i32_0, %c0_i32_1 : i32, i32, i32, i32
  }
}

</mosaic_0001>

<bundles_post_ra>
// kernel: downsample_forward.5
= control target key start
LH: loop header
LB: loop body
LE: loop exit
PB: predicated region body
PF: predicated region fallthrough
CT: control target
= control target key end

     0   :  { %s2126_s12 = smov 0   ;;  %s2436_s0 = inlined_call_operand.vmem [shape: bf16[2,4,9,9,4], index: 0, kind: input, shape index: {}]   ;;  %s2437_s1 = inlined_call_operand.vmem [shape: bf16[9,4,8], index: 1, kind: input, shape index: {}]   ;;  %s2438_s2 = inlined_call_operand.vmem [shape: f32[1,8], index: 2, kind: input, shape index: {}]   ;;  %s2439_s3 = inlined_call_operand.vmem [shape: bf16[2,8,8,8], index: 3, kind: output, shape index: {}]  }
   0x1 LB: > { %s1722_s13 = sadd.s32 4294967295, %s2104_s12   ;;  %p1726_p0 = scmp.ge.s32.totalorder %s2104_s12, 1  ;;  %s2104_s12 = sphi %s2126_s12, %s13_s12  }
   0x2   : > { %p137_p1 = scmp.lt.s32.totalorder %s2104_s12, 3 }
   0x4   : > { %p138_p2 = pnand %p1726_p0, %p137_p1 }
   0x5   : > { %p161_p3 = scmp.lt.s32.totalorder (!%p138_p2), %s1722_s13, 1 }
   0x6   : > { %141 = sbr.rel (%p138_p2) target bundleno = 340 (0x154), region = 32 }
   0xb   : > { %v1738_v0 = vld [vmem:[%s2437_s1 + $0x2] sm:$0x3]  ;;  %vm225_vm0 = vcmask 1041408   ;;  %v180_v2 = vld [vmem:[%s2437_s1] sm:$0x3]  ;;  %s2443_s13 = smov (!%p161_p3, %s1722_s13), 1 }
   0xc   : > { %2024 = vmatprep.subr.msk.bf16.mxu1 %vm225_vm0, %v1738_v0  ;;  %2023 = vmatprep.subr.msk.bf16.mxu0 %vm225_vm0, %v1738_v0  ;;  %v227_v1 = vsel %vm225_vm0, %v1738_v0, 0  ;;  %v1755_v3 = vld [vmem:[%s2437_s1 + $0x4] sm:$0x3]  ;;  %s2033_s20 = smul.u32 288, %s2443_s13  ;;  %vm212_vm1 = vcmask 31744   ;;  %v327_v4 = vsel %vm225_vm0, %v180_v2, 0 }
   0xd   : > { %2022 = vmatpush3.bf16.msra.mxu1 %v227_v1  ;;  %1932 = vmatpush3.bf16.msra.mxu0 %v227_v1  ;;  %v552_v5 = vsel %vm225_vm0, %v1755_v3, 0  ;;  %v1772_v7 = vld [vmem:[%s2437_s1 + $0x6] sm:$0x3]  ;;  %v1789_v8 = vld [vmem:[%s2437_s1 + $0x8] sm:$0x3]  ;;  %s1885_s11 = sshll.u32 %s2443_s13, 5 }
   0xe   : > { %2025 = vmatprep.subr.msk.bf16.mxu1 %vm225_vm0, %v180_v2  ;;  %2026 = vmatprep.subr.msk.bf16.mxu0 %vm225_vm0, %v1755_v3  ;;  %s2154_s23 = scalar_lea.vmem %s2436_s0, %s2033_s20  ;;  %vm410_vm2 = vsmask.f32 3328  ;;  %vm411_vm3 = vsmask.f32 7440  ;;  %v671_v13 = vsel %vm225_vm0, %v1772_v7, 0  ;;  %v2175_v14 = vsel %vm225_vm0, %v1789_v8, 0  ;;  %s2408_s16 = scalar_lea.vmem %s2439_s3, %s1885_s11 }
   0xf   : > { %v2042_v6 = vld [vmem:[%s2154_s23 + $0x48] ss:$8 sps:$4 sm:$0xff]   ;;  %v2044_v10 = vld [vmem:[%s2154_s23 + $0x58] ss:$8 sps:$4 sm:$0xff]   ;;  %v395_v16 = vld [vmem:[%s2154_s23 + $0x4] sm:$0x1] }
  0x10   : > { %v2043_v9 = vld [vmem:[%s2154_s23 + $0x68] ss:$8 sps:$4 sm:$0xff]   ;;  %1933 = vmatprep.mubr.msk.bf16.mxu0 %vm212_vm1, %v2042_v6  ;;  %v2045_v11 = vld [vmem:[%s2154_s23 + $0x78] ss:$8 sps:$4 sm:$0xff]   ;;  %v397_v19 = vld [vmem:[%s2154_s23 + $0xc] sm:$0x1] }
  0x11   : > { %1937 = vmatprep.mubr.msk.bf16.mxu1 %vm212_vm1, %v2043_v9  ;;  %1934 = vmatmul.mubr.msk.bf16.vlgmr.msra.gmra.mxu0 %vm212_vm1, %v2044_v10  ;;  %v2046_v12 = vld [vmem:[%s2154_s23] ss:$8 sps:$4 sm:$0xff]   ;;  %v2047_v18 = vld [vmem:[%s2154_s23 + $0x10] ss:$8 sps:$4 sm:$0xff]   ;;  %v423_v22 = vshll.u32 %v395_v16, 16  ;;  %v437_v25 = vshll.u32 %v397_v19, 16  ;;  %vm2196_vm4 = vmor %vm410_vm2, %vm411_vm3 }
  0x12   : > { %1938 = vmatmul.mubr.msk.bf16.vlgmr.msra.gmra.mxu1 %vm212_vm1, %v2045_v11  ;;  %1952 = vmatpush3.bf16.msra.mxu0 %v552_v5  ;;  %v394_v15 = vld [vmem:[%s2154_s23] sm:$0xf]  ;;  %v396_v17 = vld [vmem:[%s2154_s23 + $0x8] sm:$0xf]  ;;  %v398_v26 = vld [vmem:[%s2154_s23 + $0x10] sm:$0xf] }
  0x13   : > { %1942 = vmatpush3.bf16.msra.mxu1 %v327_v4  ;;  %1943 = vmatprep.mubr.msk.bf16.mxu1 %vm212_vm1, %v2046_v12  ;;  %v414_v20 = vshrl.u32 %v394_v15, 16  ;;  %v417_v21 = vshll.u32 %v394_v15, 16  ;;  %v428_v23 = vshrl.u32 %v396_v17, 16  ;;  %v431_v24 = vshll.u32 %v396_v17, 16  ;;  %v399_v27 = vld [vmem:[%s2154_s23 + $0x14] sm:$0x1] }
  0x14   : > { %2027 = vmatprep.subr.msk.bf16.mxu1 %vm225_vm0, %v1772_v7  ;;  %2028 = vmatprep.subr.msk.bf16.mxu0 %vm225_vm0, %v1789_v8  ;;  %v425_v30 = vrot.slane %v423_v22, 5  ;;  %v400_v32 = vld [vmem:[%s2154_s23 + $0x18] sm:$0xf]  ;;  %v439_v34 = vrot.slane %v437_v25, 5  ;;  %v401_v35 = vld [vmem:[%s2154_s23 + $0x1c] sm:$0x1] }
  0x15   : > { %v416_v28 = vrot.slane %v414_v20, 4  ;;  %v419_v29 = vrot.slane %v417_v21, 5  ;;  %v430_v31 = vrot.slane %v428_v23, 4  ;;  %v433_v33 = vrot.slane %v431_v24, 5  ;;  %v2192_v38 = vld [vmem:[%s2437_s1 + $0xa] sm:$0x3] }
  0x16   : > { %v442_v36 = vshrl.u32 %v398_v26, 16  ;;  %v445_v37 = vshll.u32 %v398_v26, 16  ;;  %v451_v40 = vshll.u32 %v399_v27, 16  ;;  %v456_v41 = vshrl.u32 %v400_v32, 16  ;;  %v2048_v52 = vld [vmem:[%s2154_s23 + $0x20] ss:$8 sps:$4 sm:$0xff]  }
  0x17   : > { %v420_v39 = vor.u32 %v419_v29, %v416_v28  ;;  %v459_v42 = vshll.u32 %v400_v32, 16  ;;  %v434_v44 = vor.u32 %v433_v33, %v430_v31  ;;  %v465_v47 = vshll.u32 %v401_v35, 16  ;;  %v2049_v58 = vld [vmem:[%s2154_s23 + $0x30] ss:$8 sps:$4 sm:$0xff]   ;;  %v402_v59 = vld [vmem:[%s2154_s23 + $0x20] sm:$0xf] }
  0x18   : > { %v444_v45 = vrot.slane %v442_v36, 4  ;;  %v447_v46 = vrot.slane %v445_v37, 5  ;;  %v453_v49 = vrot.slane %v451_v40, 5  ;;  %v458_v50 = vrot.slane %v456_v41, 4  ;;  %v403_v60 = vld [vmem:[%s2154_s23 + $0x24] sm:$0x1] }
  0x19   : > { %v421_v48 = vrot.slane %v420_v39, 4  ;;  %v461_v51 = vrot.slane %v459_v42, 5  ;;  %v435_v53 = vrot.slane %v434_v44, 4  ;;  %v467_v55 = vrot.slane %v465_v47, 5  ;;  %v404_v63 = vld [vmem:[%s2154_s23 + $0x28] sm:$0xf] }
  0x1a   : > { %1944 = vmatmul.mubr.msk.bf16.vlgmr.msra.gmra.mxu1 %vm212_vm1, %v2047_v18  ;;  %v448_v54 = vor.u32 %v447_v46, %v444_v45  ;;  %v405_v0 = vld [vmem:[%s2154_s23 + $0x2c] sm:$0x1]  ;;  %v470_v1 = vshrl.u32 %v402_v59, 16  ;;  %v473_v4 = vshll.u32 %v402_v59, 16  ;;  %v479_v5 = vshll.u32 %v403_v60, 16 }
  0x1b   : > { %1962 = vmatpush3.bf16.msra.mxu1 %v671_v13  ;;  %v426_v56 = vsel %vm2196_vm4, %v421_v48, %v425_v30  ;;  %v462_v57 = vor.u32 %v461_v51, %v458_v50  ;;  %1947 = vmatprep.mubr.msk.bf16.mxu1 %vm212_vm1, %v2048_v52  ;;  %v440_v61 = vsel %vm2196_vm4, %v435_v53, %v439_v34  ;;  %v406_v6 = vld [vmem:[%s2154_s23 + $0x30] sm:$0xf]  ;;  %v484_v9 = vshrl.u32 %v404_v63, 16  ;;  %v407_v11 = vld [vmem:[%s2154_s23 + $0x34] sm:$0x1] }
  0x1c   : > { %2029 = vmatprep.subr.msk.bf16.mxu1 %vm225_vm0, %v2192_v38  ;;  %v449_v62 = vrot.slane %v448_v54, 4  ;;  %v1756_v2 = vcombine.low %v426_v56, %v440_v61  ;;  %v472_v8 = vrot.slane %v470_v1, 4  ;;  %v487_v10 = vshll.u32 %v404_v63, 16  ;;  %v408_v17 = vld [vmem:[%s2154_s23 + $0x38] sm:$0xf] }
  0x1d   : > { %v463_v3 = vrot.slane %v462_v57, 4  ;;  %v475_v13 = vrot.slane %v473_v4, 5  ;;  %v481_v15 = vrot.slane %v479_v5, 5  ;;  %v493_v16 = vshll.u32 %v405_v0, 16  ;;  %v1831_v18 = vld [vmem:[%s2437_s1 + $0xc] sm:$0x3] }
  0x1e   : > { %v454_v7 = vsel %vm2196_vm4, %v449_v62, %v453_v49  ;;  %1953 = vmatprep.mubr.msk.bf16.mxu0 %vm212_vm1, %v1756_v2  ;;  %v486_v20 = vrot.slane %v484_v9, 4  ;;  %v489_v21 = vrot.slane %v487_v10, 5  ;;  %v409_v22 = vld [vmem:[%s2154_s23 + $0x3c] sm:$0x1]  ;;  %v498_v23 = vshrl.u32 %v406_v6, 16 }
  0x1f   : > { %v468_v12 = vsel %vm2196_vm4, %v463_v3, %v467_v55  ;;  %v476_v24 = vor.u32 %v475_v13, %v472_v8  ;;  %v495_v25 = vrot.slane %v493_v16, 5  ;;  %v501_v26 = vshll.u32 %v406_v6, 16  ;;  %v2050_v35 = vld [vmem:[%s2154_s23 + $0x90] ss:$8 sps:$4 sm:$0xff]   ;;  %v2051_v44 = vld [vmem:[%s2154_s23 + $0xa0] ss:$8 sps:$4 sm:$0xff]  }
  0x20   : > { %v1757_v19 = vcombine.low %v454_v7, %v468_v12  ;;  %v507_v27 = vshll.u32 %v407_v11, 16  ;;  %v490_v28 = vor.u32 %v489_v21, %v486_v20  ;;  %v500_v29 = vrot.slane %v498_v23, 4  ;;  %v1848_v51 = vld [vmem:[%s2437_s1 + $0xe] sm:$0x3]  ;;  %v2054_v53 = vld [vmem:[%s2154_s23 + $0xb0] ss:$8 sps:$4 sm:$0xff]  }
  0x21   : > { %v512_v30 = vshrl.u32 %v408_v17, 16  ;;  %v515_v31 = vshll.u32 %v408_v17, 16  ;;  %v477_v32 = vrot.slane %v476_v24, 4  ;;  %v503_v33 = vrot.slane %v501_v26, 5  ;;  %v2055_v57 = vld [vmem:[%s2154_s23 + $0xc0] ss:$8 sps:$4 sm:$0xff]  }
  0x22   : > { %1948 = vmatmul.mubr.msk.bf16.gmra.mxu1 %vm212_vm1, %v2049_v58  ;;  %1954 = vmatmul.mubr.msk.bf16.vlgmr.msra.gmra.mxu0 %vm212_vm1, %v1757_v19  ;;  %v521_v34 = vshll.u32 %v409_v22, 16  ;;  %v491_v36 = vrot.slane %v490_v28, 4  ;;  %v509_v42 = vrot.slane %v507_v27, 5  ;;  %v1020_v49 = vsel %vm225_vm0, %v2192_v38, 0  ;;  %v2052_v38 = vld [vmem:[%s2154_s23 + $0xd8] ss:$8 sps:$4 sm:$0xff]  }
  0x23   : > { %1972 = vmatpush3.bf16.msra.mxu0 %v2175_v14  ;;  %v514_v37 = vrot.slane %v512_v30, 4  ;;  %v517_v39 = vrot.slane %v515_v31, 5  ;;  %v482_v40 = vsel %vm2196_vm4, %v477_v32, %v481_v15  ;;  %v504_v41 = vor.u32 %v503_v33, %v500_v29  ;;  %1963 = vmatprep.mubr.msk.bf16.mxu1 %vm212_vm1, %v2050_v35  ;;  %v1798_v58 = vld [vmem:[%s2154_s23 + $0x90] sm:$0xf]  ;;  %v1799_v59 = vld [vmem:[%s2154_s23 + $0x94] sm:$0x1] }
  0x24   : > { %2030 = vmatprep.subr.msk.bf16.mxu0 %vm225_vm0, %v1831_v18  ;;  %v496_v14 = vsel %vm2196_vm4, %v491_v36, %v495_v25  ;;  %v523_v46 = vrot.slane %v521_v34, 5  ;;  %v1139_v56 = vsel %vm225_vm0, %v1831_v18, 0  ;;  %v1800_v60 = vld [vmem:[%s2154_s23 + $0x98] sm:$0xf]  ;;  %v1801_v61 = vld [vmem:[%s2154_s23 + $0x9c] sm:$0x1] }
  0x25   : > { %v518_v45 = vor.u32 %v517_v39, %v514_v37  ;;  %v1758_v47 = vcombine.low %v482_v40, %v496_v14  ;;  %v505_v48 = vrot.slane %v504_v41, 4  ;;  %v882_v62 = vshrl.u32 %v1798_v58, 16  ;;  %v1802_v2 = vld [vmem:[%s2154_s23 + $0xa0] sm:$0xf]  ;;  %v2053_v3 = vld [vmem:[%s2154_s23 + $0xe8] ss:$8 sps:$4 sm:$0xff]  }
  0x26   : > { %v885_v63 = vshll.u32 %v1798_v58, 16  ;;  %v891_v0 = vshll.u32 %v1799_v59, 16  ;;  %v896_v1 = vshrl.u32 %v1800_v60, 16  ;;  %v899_v4 = vshll.u32 %v1800_v60, 16  ;;  %v1803_v6 = vld [vmem:[%s2154_s23 + $0xa4] sm:$0x1] }
  0x27   : > { %v519_v50 = vrot.slane %v518_v45, 4  ;;  %1957 = vmatprep.mubr.msk.bf16.mxu0 %vm212_vm1, %v1758_v47  ;;  %v510_v52 = vsel %vm2196_vm4, %v505_v48, %v509_v42  ;;  %v905_v5 = vshll.u32 %v1801_v61, 16  ;;  %v1804_v7 = vld [vmem:[%s2154_s23 + $0xa8] sm:$0xf]  ;;  %v2056_v8 = vld [vmem:[%s2154_s23 + $0xf8] ss:$8 sps:$4 sm:$0xff]  }
  0x28   : > { %v884_v9 = vrot.slane %v882_v62, 4  ;;  %v887_v10 = vrot.slane %v885_v63, 5  ;;  %v893_v11 = vrot.slane %v891_v0, 5  ;;  %v898_v12 = vrot.slane %v896_v1, 4  ;;  %v1805_v13 = vld [vmem:[%s2154_s23 + $0xac] sm:$0x1] }
  0x29   : > { %v524_v54 = vsel %vm2196_vm4, %v519_v50, %v523_v46  ;;  %v901_v15 = vrot.slane %v899_v4, 5  ;;  %v907_v16 = vrot.slane %v905_v5, 5  ;;  %v910_v17 = vshrl.u32 %v1802_v2, 16  ;;  %v2270_v27 = vld [vmem:[%s2437_s1 + $0x10] sm:$0x3] }
  0x2a   : > { %1964 = vmatmul.mubr.msk.bf16.vlgmr.msra.gmra.mxu1 %vm212_vm1, %v2051_v44  ;;  %v1759_v55 = vcombine.low %v510_v52, %v524_v54  ;;  %v913_v18 = vshll.u32 %v1802_v2, 16  ;;  %v888_v19 = vor.u32 %v887_v10, %v884_v9  ;;  %v919_v20 = vshll.u32 %v1803_v6, 16  ;;  %v1806_v39 = vld [vmem:[%s2154_s23 + $0xb0] sm:$0xf]  ;;  %v1807_v40 = vld [vmem:[%s2154_s23 + $0xb4] sm:$0x1] }
  0x2b   : > { %1982 = vmatpush3.bf16.msra.mxu1 %v1020_v49  ;;  %1967 = vmatprep.mubr.msk.bf16.mxu1 %vm212_vm1, %v2054_v53  ;;  %v924_v21 = vshrl.u32 %v1804_v7, 16  ;;  %v927_v22 = vshll.u32 %v1804_v7, 16  ;;  %v902_v23 = vor.u32 %v901_v15, %v898_v12  ;;  %v912_v24 = vrot.slane %v910_v17, 4  ;;  %v1808_v41 = vld [vmem:[%s2154_s23 + $0xb8] sm:$0xf] }
  0x2c   : > { %2031 = vmatprep.subr.msk.bf16.mxu1 %vm225_vm0, %v1848_v51  ;;  %1958 = vmatmul.mubr.msk.bf16.gmra.mxu0 %vm212_vm1, %v1759_v55  ;;  %v915_v25 = vrot.slane %v913_v18, 5  ;;  %v933_v26 = vshll.u32 %v1805_v13, 16  ;;  %v889_v28 = vrot.slane %v888_v19, 4  ;;  %v1258_v31 = vsel %vm225_vm0, %v1848_v51, 0  ;;  %v2057_v42 = vld [vmem:[%s2154_s23 + $0x108] ss:$8 sps:$4 sm:$0xff]  }
  0x2d   : > { %1973 = vmatprep.mubr.msk.bf16.mxu0 %vm212_vm1, %v2052_v38  ;;  %v926_v29 = vrot.slane %v924_v21, 4  ;;  %v929_v30 = vrot.slane %v927_v22, 5  ;;  %v903_v32 = vrot.slane %v902_v23, 4  ;;  %v921_v34 = vrot.slane %v919_v20, 5  ;;  %v1809_v45 = vld [vmem:[%s2154_s23 + $0xbc] sm:$0x1] }
  0x2e   : > { %v916_v33 = vor.u32 %v915_v25, %v912_v24  ;;  %v935_v35 = vrot.slane %v933_v26, 5  ;;  %v894_v36 = vsel %vm2196_vm4, %v889_v28, %v893_v11  ;;  %v938_v46 = vshrl.u32 %v1806_v39, 16  ;;  %v2058_v50 = vld [vmem:[%s2154_s23 + $0x8] ss:$8 sps:$4 sm:$0xff]   ;;  %v1810_v53 = vld [vmem:[%s2154_s23 + $0xc0] sm:$0xf] }
  0x2f   : > { %v930_v37 = vor.u32 %v929_v30, %v926_v29  ;;  %v908_v44 = vsel %vm2196_vm4, %v903_v32, %v907_v16  ;;  %v941_v47 = vshll.u32 %v1806_v39, 16  ;;  %v947_v51 = vshll.u32 %v1807_v40, 16  ;;  %v1812_v62 = vld [vmem:[%s2154_s23 + $0xc8] sm:$0xf]  ;;  %v1813_v2 = vld [vmem:[%s2154_s23 + $0xcc] sm:$0x1] }
  0x30   : > { %v917_v14 = vrot.slane %v916_v33, 4  ;;  %v1815_v48 = vcombine.low %v894_v36, %v908_v44  ;;  %v952_v52 = vshrl.u32 %v1808_v41, 16  ;;  %v940_v38 = vrot.slane %v938_v46, 4  ;;  %v2059_v16 = vld [vmem:[%s2154_s23 + $0x18] ss:$8 sps:$4 sm:$0xff]  }
  0x31   : > { %v931_v49 = vrot.slane %v930_v37, 4  ;;  %v943_v55 = vrot.slane %v941_v47, 5  ;;  %v949_v59 = vrot.slane %v947_v51, 5  ;;  %v961_v61 = vshll.u32 %v1809_v45, 16  ;;  %v2060_v29 = vld [vmem:[%s2154_s23 + $0x28] ss:$8 sps:$4 sm:$0xff]  }
  0x32   : > { %1968 = vmatmul.mubr.msk.bf16.gmra.mxu1 %vm212_vm1, %v2055_v57  ;;  %v922_v54 = vsel %vm2196_vm4, %v917_v14, %v921_v34  ;;  %v1811_v57 = vld [vmem:[%s2154_s23 + $0xc4] sm:$0x1]  ;;  %v954_v60 = vrot.slane %v952_v52, 4  ;;  %v969_v5 = vshll.u32 %v1810_v53, 16  ;;  %v980_v7 = vshrl.u32 %v1812_v62, 16 }
  0x33   : > { %1983 = vmatprep.mubr.msk.bf16.mxu1 %vm212_vm1, %v1815_v48  ;;  %v936_v58 = vsel %vm2196_vm4, %v931_v49, %v935_v35  ;;  %v944_v0 = vor.u32 %v943_v55, %v940_v38  ;;  %v963_v4 = vrot.slane %v961_v61, 5  ;;  %v975_v6 = vshll.u32 %v1811_v57, 16  ;;  %v1857_v30 = vld [vmem:[%s2154_s23 + $0x8] sm:$0xf]  ;;  %v2062_v32 = vld [vmem:[%s2154_s23 + $0x50] ss:$8 sps:$4 sm:$0xff]  }
  0x34   : > { %1974 = vmatmul.mubr.msk.bf16.vlgmr.msra.gmra.mxu0 %vm212_vm1, %v2053_v3  ;;  %v1816_v63 = vcombine.low %v922_v54, %v936_v58  ;;  %v966_v3 = vshrl.u32 %v1810_v53, 16  ;;  %v983_v11 = vshll.u32 %v1812_v62, 16  ;;  %v971_v12 = vrot.slane %v969_v5, 5  ;;  %v1858_v33 = vld [vmem:[%s2154_s23 + $0xc] sm:$0x1] }
  0x35   : > { %1992 = vmatpush3.bf16.msra.mxu0 %v1139_v56  ;;  %1977 = vmatprep.mubr.msk.bf16.mxu0 %vm212_vm1, %v2056_v8  ;;  %v955_v56 = vshll.u32 %v1808_v41, 16  ;;  %v945_v8 = vrot.slane %v944_v0, 4  ;;  %v982_v13 = vrot.slane %v980_v7, 4  ;;  %v989_v15 = vshll.u32 %v1813_v2, 16  ;;  %v1859_v34 = vld [vmem:[%s2154_s23 + $0x10] sm:$0xf] }
  0x36   : > { %2032 = vmatprep.subr.msk.bf16.mxu0 %vm225_vm0, %v2270_v27  ;;  %v968_v10 = vrot.slane %v966_v3, 4  ;;  %v985_v19 = vrot.slane %v983_v11, 5  ;;  %v977_v21 = vrot.slane %v975_v6, 5  ;;  %v1488_v25 = vsel %vm225_vm0, %v2270_v27, 0  ;;  %v1860_v37 = vld [vmem:[%s2154_s23 + $0x14] sm:$0x1] }
  0x37   : > { %v957_v1 = vrot.slane %v955_v56, 5  ;;  %v950_v17 = vsel %vm2196_vm4, %v945_v8, %v949_v59  ;;  %v991_v24 = vrot.slane %v989_v15, 5  ;;  %v1350_v35 = vshrl.u32 %v1857_v30, 16  ;;  %v1861_v45 = vld [vmem:[%s2154_s23 + $0x18] sm:$0xf] }
  0x38   : > { %v972_v20 = vor.u32 %v971_v12, %v968_v10  ;;  %v986_v23 = vor.u32 %v985_v19, %v982_v13  ;;  %v1353_v39 = vshll.u32 %v1857_v30, 16  ;;  %v1359_v27 = vshll.u32 %v1858_v33, 16  ;;  %v2061_v51 = vld [vmem:[%s2154_s23 + $0x38] ss:$8 sps:$4 sm:$0xff]   ;;  %v1864_v38 = vld [vmem:[%s2154_s23 + $0x24] sm:$0x1] }
  0x39   : > { %v958_v9 = vor.u32 %v957_v1, %v954_v60  ;;  %v1364_v40 = vshrl.u32 %v1859_v34, 16  ;;  %v1367_v44 = vshll.u32 %v1859_v34, 16  ;;  %v1373_v14 = vshll.u32 %v1860_v37, 16  ;;  %v1863_v54 = vld [vmem:[%s2154_s23 + $0x20] sm:$0xf] }
  0x3a   : > { %1984 = vmatmul.mubr.msk.bf16.vlgmr.msra.gmra.mxu1 %vm212_vm1, %v1816_v63  ;;  %v973_v28 = vrot.slane %v972_v20, 4  ;;  %v1355_v47 = vrot.slane %v1353_v39, 5  ;;  %v1361_v48 = vrot.slane %v1359_v27, 5  ;;  %v1378_v56 = vshrl.u32 %v1861_v45, 16  ;;  %v2063_v63 = vld [vmem:[%s2154_s23 + $0x60] ss:$8 sps:$4 sm:$0xff]  }
  0x3b   : > { %2002 = vmatpush3.bf16.msra.mxu1 %v1258_v31  ;;  %v959_v18 = vrot.slane %v958_v9, 4  ;;  %v987_v31 = vrot.slane %v986_v23, 4  ;;  %v1366_v49 = vrot.slane %v1364_v40, 4  ;;  %v1369_v52 = vrot.slane %v1367_v44, 5  ;;  %v2064_v6 = vld [vmem:[%s2154_s23 + $0x70] ss:$8 sps:$4 sm:$0xff]  }
  0x3c   : > { %1978 = vmatmul.mubr.msk.bf16.gmra.mxu0 %vm212_vm1, %v2057_v42  ;;  %v978_v36 = vsel %vm2196_vm4, %v973_v28, %v977_v21  ;;  %v1352_v42 = vrot.slane %v1350_v35, 4  ;;  %v1375_v53 = vrot.slane %v1373_v14, 5  ;;  %v1381_v57 = vshll.u32 %v1861_v45, 16  ;;  %v1865_v11 = vld [vmem:[%s2154_s23 + $0x28] sm:$0xf] }
  0x3d   : > { %1993 = vmatprep.mubr.msk.bf16.mxu0 %vm212_vm1, %v2058_v50  ;;  %v964_v22 = vsel %vm2196_vm4, %v959_v18, %v963_v4  ;;  %v992_v41 = vsel %vm2196_vm4, %v987_v31, %v991_v24  ;;  %v1862_v50 = vld [vmem:[%s2154_s23 + $0x1c] sm:$0x1]  ;;  %v1370_v59 = vor.u32 %v1369_v52, %v1366_v49  ;;  %v1392_v60 = vshrl.u32 %v1863_v54, 16  ;;  %v1866_v15 = vld [vmem:[%s2154_s23 + $0x2c] sm:$0x1] }
  0x3e   : > { %v1817_v26 = vcombine.low %v950_v17, %v964_v22  ;;  %v1818_v46 = vcombine.low %v978_v36, %v992_v41  ;;  %v1356_v55 = vor.u32 %v1355_v47, %v1352_v42  ;;  %v1387_v58 = vshll.u32 %v1862_v50, 16  ;;  %v1868_v17 = vld [vmem:[%s2154_s23 + $0x34] sm:$0x1]  ;;  %v1869_v22 = vld [vmem:[%s2154_s23 + $0x38] sm:$0xf] }
  0x3f   : > { %v1395_v61 = vshll.u32 %v1863_v54, 16  ;;  %v1401_v62 = vshll.u32 %v1864_v38, 16  ;;  %v1380_v1 = vrot.slane %v1378_v56, 4  ;;  %v1383_v2 = vrot.slane %v1381_v57, 5  ;;  %v1870_v28 = vld [vmem:[%s2154_s23 + $0x3c] sm:$0x1] }
  0x40   : > { %1987 = vmatprep.mubr.msk.bf16.mxu1 %vm212_vm1, %v1817_v26  ;;  %v1357_v0 = vrot.slane %v1356_v55, 4  ;;  %v1371_v3 = vrot.slane %v1370_v59, 4  ;;  %v1394_v4 = vrot.slane %v1392_v60, 4  ;;  %v1389_v9 = vrot.slane %v1387_v58, 5  ;;  %v1871_v33 = vld [vmem:[%s2154_s23 + $0x40] sm:$0xf] }
  0x41   : > { %v1397_v5 = vrot.slane %v1395_v61, 5  ;;  %v1384_v8 = vor.u32 %v1383_v2, %v1380_v1  ;;  %v1403_v10 = vrot.slane %v1401_v62, 5  ;;  %v1406_v20 = vshrl.u32 %v1865_v11, 16  ;;  %v1872_v39 = vld [vmem:[%s2154_s23 + $0x44] sm:$0x1] }
  0x42   : > { %1988 = vmatmul.mubr.msk.bf16.gmra.mxu1 %vm212_vm1, %v1818_v46  ;;  %v1362_v7 = vsel %vm2196_vm4, %v1357_v0, %v1361_v48  ;;  %v1376_v12 = vsel %vm2196_vm4, %v1371_v3, %v1375_v53  ;;  %v1409_v21 = vshll.u32 %v1865_v11, 16  ;;  %v1415_v24 = vshll.u32 %v1866_v15, 16  ;;  %v2065_v47 = vld [vmem:[%s2154_s23 + $0x80] ss:$8 sps:$4 sm:$0xff]  }
  0x43   : > { %2003 = vmatprep.mubr.msk.bf16.mxu1 %vm212_vm1, %v2062_v32  ;;  %v1398_v13 = vor.u32 %v1397_v5, %v1394_v4  ;;  %v1874_v18 = vcombine.low %v1362_v7, %v1376_v12  ;;  %v1385_v19 = vrot.slane %v1384_v8, 4  ;;  %v1408_v30 = vrot.slane %v1406_v20, 4 }
  0x44   : > { %1994 = vmatmul.mubr.msk.bf16.vlgmr.msra.gmra.mxu0 %vm212_vm1, %v2059_v16  ;;  %v1867_v16 = vld [vmem:[%s2154_s23 + $0x30] sm:$0xf]  ;;  %v1411_v31 = vrot.slane %v1409_v21, 5  ;;  %v1429_v32 = vshll.u32 %v1868_v17, 16  ;;  %v1417_v35 = vrot.slane %v1415_v24, 5  ;;  %v1434_v42 = vshrl.u32 %v1869_v22, 16 }
  0x45   : > { %2012 = vmatpush3.bf16.msra.mxu0 %v1488_v25  ;;  %1997 = vmatprep.mubr.msk.bf16.mxu0 %vm212_vm1, %v2060_v29  ;;  %v1399_v23 = vrot.slane %v1398_v13, 4  ;;  %v1420_v25 = vshrl.u32 %v1867_v16, 16  ;;  %v1423_v26 = vshll.u32 %v1867_v16, 16  ;;  %v1390_v29 = vsel %vm2196_vm4, %v1385_v19, %v1389_v9 }
  0x46   : > { %v1412_v40 = vor.u32 %v1411_v31, %v1408_v30  ;;  %v1431_v41 = vrot.slane %v1429_v32, 5  ;;  %v1437_v14 = vshll.u32 %v1869_v22, 16  ;;  %v1443_v45 = vshll.u32 %v1870_v28, 16 }
  0x47   : > { %v1404_v34 = vsel %vm2196_vm4, %v1399_v23, %v1403_v10  ;;  %v1422_v36 = vrot.slane %v1420_v25, 4  ;;  %v1425_v37 = vrot.slane %v1423_v26, 5  ;;  %v1448_v46 = vshrl.u32 %v1871_v33, 16 }
  0x48   : > { %v1875_v27 = vcombine.low %v1390_v29, %v1404_v34  ;;  %v1413_v48 = vrot.slane %v1412_v40, 4  ;;  %v1436_v49 = vrot.slane %v1434_v42, 4  ;;  %v1451_v50 = vshll.u32 %v1871_v33, 16 }
  0x49   : > { %v1426_v44 = vor.u32 %v1425_v37, %v1422_v36  ;;  %v1439_v53 = vrot.slane %v1437_v14, 5  ;;  %v1450_v54 = vrot.slane %v1448_v46, 4  ;;  %v1445_v58 = vrot.slane %v1443_v45, 5 }
  0x4a   : > { %2004 = vmatmul.mubr.msk.bf16.vlgmr.msra.gmra.mxu1 %vm212_vm1, %v2063_v63  ;;  %v1418_v38 = vsel %vm2196_vm4, %v1413_v48, %v1417_v35  ;;  %v1453_v55 = vrot.slane %v1451_v50, 5  ;;  %vm1658_vm5 = vcmask 60416  }
  0x4b   : > { %2007 = vmatprep.mubr.msk.bf16.mxu1 %vm212_vm1, %v2064_v6  ;;  %v1427_v52 = vrot.slane %v1426_v44, 4  ;;  %v1440_v57 = vor.u32 %v1439_v53, %v1436_v49 }
  0x4c   : > { %1998 = vmatmul.mubr.msk.bf16.gmra.mxu0 %vm212_vm1, %v2061_v51  ;;  %v1457_v51 = vshll.u32 %v1872_v39, 16  ;;  %v1454_v60 = vor.u32 %v1453_v55, %v1450_v54 }
  0x4d   : > { %2013 = vmatprep.mubr.msk.bf16.mxu0 %vm212_vm1, %v1874_v18  ;;  %v1432_v56 = vsel %vm2196_vm4, %v1427_v52, %v1431_v41  ;;  %v1441_v62 = vrot.slane %v1440_v57, 4 }
  0x4e   : > { %v1876_v59 = vcombine.low %v1418_v38, %v1432_v56  ;;  %v1459_v61 = vrot.slane %v1457_v51, 5  ;;  %v1455_v63 = vrot.slane %v1454_v60, 4 }
  0x4f   : > { %v1446_v0 = vsel %vm2196_vm4, %v1441_v62, %v1445_v58 }
  0x50   : > { %v1460_v1 = vsel %vm2196_vm4, %v1455_v63, %v1459_v61 }
  0x51   : > { %v1877_v2 = vcombine.low %v1446_v0, %v1460_v1 }
  0x52   : > { %2008 = vmatmul.mubr.msk.bf16.gmra.mxu1 %vm212_vm1, %v2065_v47 }
  0x54   : > { %2014 = vmatmul.mubr.msk.bf16.vlgmr.msra.gmra.mxu0 %vm212_vm1, %v1875_v27 }
  0x55   : > { %2017 = vmatprep.mubr.msk.bf16.mxu0 %vm212_vm1, %v1876_v59 }
  0x5c   : > { %2018 = vmatmul.mubr.msk.bf16.gmra.mxu0 %vm212_vm1, %v1877_v2 }
  0xd1   : > { %v1935_v5 = vpop.f32.mrf.mxu0 }
  0xd2   : > { %v1939_v3 = vpop.f32.mrf.mxu1 }
  0xd3   : > { %v263_v8 = vpop.f32.mrf.mxu0 }
  0xd4   : > { %v279_v4 = vpop.f32.mrf.mxu1 }
  0xd5   : > { %v1936_v11 = vpop.f32.mrf.mxu0 }
  0xd6   : > { %v2361_v6 = vpop.f32.mrf.mxu1 }
  0xd7   : > { %v266_v15 = vpop.f32.mrf.mxu0 }
  0xd8   : > { %v2363_v7 = vpop.f32.mrf.mxu1 }
  0xda   : > { %v1945_v9 = vpop.f32.mrf.mxu1 }
  0xdb   : > { %v372_v14 = vadd.f32 %v1945_v9, %v1935_v5 }
  0xdc   : > { %v363_v10 = vpop.f32.mrf.mxu1 }
  0xdd   : > { %v364_v47 = vadd.f32 %v363_v10, %v263_v8 }
  0xde   : > { %v1946_v12 = vpop.f32.mrf.mxu1 }
  0xdf   : > { %v375_v50 = vadd.f32 %v1946_v12, %v1936_v11 }
  0xe0   : > { %v366_v13 = vpop.f32.mrf.mxu1 }
  0xe1   : > { %v367_v54 = vadd.f32 %v366_v13, %v266_v15 }
  0xe2   : > { %v1949_v16 = vpop.f32.mrf.mxu1  ;;  %v1955_v43 = vpop.f32.mrf.mxu0 }
  0xe3   : > { %v621_v49 = vadd.f32 %v1955_v43, %v372_v14  ;;  %v388_v59 = vadd.f32 %v1949_v16, %v1939_v3 }
  0xe4   : > { %v379_v17 = vpop.f32.mrf.mxu1  ;;  %v588_v18 = vpop.f32.mrf.mxu0 }
  0xe5   : > { %v619_v53 = vadd.f32 %v588_v18, %v364_v47  ;;  %v380_v1 = vadd.f32 %v379_v17, %v279_v4 }
  0xe6   : > { %v1950_v19 = vpop.f32.mrf.mxu1  ;;  %v1956_v20 = vpop.f32.mrf.mxu0 }
  0xe7   : > { %v622_v56 = vadd.f32 %v1956_v20, %v375_v50  ;;  %v391_v12 = vadd.f32 %v1950_v19, %v2361_v6 }
  0xe8   : > { %v382_v21 = vpop.f32.mrf.mxu1  ;;  %v591_v22 = vpop.f32.mrf.mxu0 }
  0xe9   : > { %v620_v61 = vadd.f32 %v591_v22, %v367_v54  ;;  %v383_v3 = vadd.f32 %v382_v21, %v2363_v7 }
  0xea   : > { %v1965_v23 = vpop.f32.mrf.mxu1 }
  0xeb   : > { %v740_v38 = vadd.f32 %v1965_v23, %v621_v49 }
  0xec   : > { %v707_v24 = vpop.f32.mrf.mxu1  ;;  %v1959_v25 = vpop.f32.mrf.mxu0 }
  0xed   : > { %v738_v57 = vadd.f32 %v707_v24, %v619_v53  ;;  %v625_v11 = vadd.f32 %v1959_v25, %v388_v59 }
  0xee   : > { %v1966_v26 = vpop.f32.mrf.mxu1  ;;  %v604_v28 = vpop.f32.mrf.mxu0 }
  0xef   : > { %v741_v63 = vadd.f32 %v1966_v26, %v622_v56  ;;  %v623_v20 = vadd.f32 %v604_v28, %v380_v1 }
  0xf0   : > { %v710_v29 = vpop.f32.mrf.mxu1  ;;  %v1960_v30 = vpop.f32.mrf.mxu0 }
  0xf1   : > { %v739_v8 = vadd.f32 %v710_v29, %v620_v61  ;;  %v626_v26 = vadd.f32 %v1960_v30, %v391_v12  ;;  %v1882_v30 = vld [vmem:[%s2438_s2] ss:$0 sm:$0xff] }
  0xf2   : > { %v1969_v31 = vpop.f32.mrf.mxu1  ;;  %v607_v32 = vpop.f32.mrf.mxu0 }
  0xf3   : > { %v744_v16 = vadd.f32 %v1969_v31, %v625_v11  ;;  %v624_v19 = vadd.f32 %v607_v32, %v383_v3 }
  0xf4   : > { %v723_v33 = vpop.f32.mrf.mxu1  ;;  %v1975_v34 = vpop.f32.mrf.mxu0 }
  0xf5   : > { %v859_v62 = vadd.f32 %v1975_v34, %v740_v38  ;;  %v742_v29 = vadd.f32 %v723_v33, %v623_v20 }
  0xf6   : > { %v1970_v35 = vpop.f32.mrf.mxu1  ;;  %v826_v36 = vpop.f32.mrf.mxu0 }
  0xf7   : > { %v857_v5 = vadd.f32 %v826_v36, %v738_v57 }
  0xf8   : > { %v1976_v37 = vpop.f32.mrf.mxu0  ;;  %v2365_v39 = vpop.f32.mrf.mxu1 }
  0xf9   : > { %v860_v15 = vadd.f32 %v1976_v37, %v741_v63  ;;  %v743_v31 = vadd.f32 %v2365_v39, %v624_v19 }
  0xfa   : > { %v829_v27 = vpop.f32.mrf.mxu0  ;;  %v1985_v41 = vpop.f32.mrf.mxu1 }
  0xfb   : > { %v1089_v9 = vadd.f32 %v1985_v41, %v859_v62  ;;  %v858_v23 = vadd.f32 %v829_v27, %v739_v8 }
  0xfc   : > { %v1979_v40 = vpop.f32.mrf.mxu0  ;;  %v1056_v44 = vpop.f32.mrf.mxu1 }
  0xfd   : > { %v1087_v43 = vadd.f32 %v1056_v44, %v857_v5  ;;  %v863_v37 = vadd.f32 %v1979_v40, %v744_v16  ;;  %v745_v44 = vadd.f32 %v1970_v35, %v626_v26 }
  0xfe   : > { %v842_v42 = vpop.f32.mrf.mxu0  ;;  %v1986_v46 = vpop.f32.mrf.mxu1 }
  0xff   : > { %v1090_v4 = vadd.f32 %v1986_v46, %v860_v15  ;;  %v861_v21 = vadd.f32 %v842_v42, %v742_v29 }
 0x100   : > { %v2367_v45 = vpop.f32.mrf.mxu0  ;;  %v1059_v51 = vpop.f32.mrf.mxu1 }
 0x101   : > { %v1088_v25 = vadd.f32 %v1059_v51, %v858_v23  ;;  %v864_v32 = vadd.f32 %v2367_v45, %v745_v44 }
 0x102   : > { %v2369_v48 = vpop.f32.mrf.mxu0  ;;  %v1989_v58 = vpop.f32.mrf.mxu1 }
 0x103   : > { %v1093_v27 = vadd.f32 %v1989_v58, %v863_v37  ;;  %v862_v39 = vadd.f32 %v2369_v48, %v743_v31 }
 0x104   : > { %v1995_v52 = vpop.f32.mrf.mxu0  ;;  %v1072_v0 = vpop.f32.mrf.mxu1 }
 0x105   : > { %v1208_v24 = vadd.f32 %v1995_v52, %v1089_v9  ;;  %v1091_v35 = vadd.f32 %v1072_v0, %v861_v21 }
 0x106   : > { %v1175_v55 = vpop.f32.mrf.mxu0  ;;  %v1990_v10 = vpop.f32.mrf.mxu1 }
 0x107   : > { %v1206_v36 = vadd.f32 %v1175_v55, %v1087_v43  ;;  %v1094_v55 = vadd.f32 %v1990_v10, %v864_v32 }
 0x108   : > { %v1996_v60 = vpop.f32.mrf.mxu0  ;;  %v1075_v18 = vpop.f32.mrf.mxu1 }
 0x109   : > { %v1209_v28 = vadd.f32 %v1996_v60, %v1090_v4  ;;  %v1092_v45 = vadd.f32 %v1075_v18, %v862_v39 }
 0x10a   : > { %v1178_v2 = vpop.f32.mrf.mxu0  ;;  %v2005_v17 = vpop.f32.mrf.mxu1 }
 0x10b   : > { %v1327_v41 = vadd.f32 %v2005_v17, %v1208_v24  ;;  %v1207_v33 = vadd.f32 %v1178_v2, %v1088_v25 }
 0x10c   : > { %v1999_v13 = vpop.f32.mrf.mxu0  ;;  %v1294_v6 = vpop.f32.mrf.mxu1 }
 0x10d   : > { %v1325_v47 = vadd.f32 %v1294_v6, %v1206_v36  ;;  %v1212_v38 = vadd.f32 %v1999_v13, %v1093_v27 }
 0x10e   : > { %v1191_v22 = vpop.f32.mrf.mxu0  ;;  %v2006_v7 = vpop.f32.mrf.mxu1 }
 0x10f   : > { %v1328_v50 = vadd.f32 %v2006_v7, %v1209_v28  ;;  %v1210_v61 = vadd.f32 %v1191_v22, %v1091_v35 }
 0x110   : > { %v2000_v34 = vpop.f32.mrf.mxu0  ;;  %v1297_v51 = vpop.f32.mrf.mxu1 }
 0x111   : > { %v1326_v42 = vadd.f32 %v1297_v51, %v1207_v33  ;;  %v1213_v8 = vadd.f32 %v2000_v34, %v1094_v55 }
 0x112   : > { %v1194_v14 = vpop.f32.mrf.mxu0  ;;  %v2009_v54 = vpop.f32.mrf.mxu1 }
 0x113   : > { %v1331_v63 = vadd.f32 %v2009_v54, %v1212_v38  ;;  %v1211_v15 = vadd.f32 %v1194_v14, %v1092_v45 }
 0x114   : > { %v2015_v46 = vpop.f32.mrf.mxu0  ;;  %v1310_v60 = vpop.f32.mrf.mxu1 }
 0x115   : > { %v1557_v49 = vadd.f32 %v2015_v46, %v1327_v41  ;;  %v1329_v9 = vadd.f32 %v1310_v60, %v1210_v61 }
 0x116   : > { %v1524_v40 = vpop.f32.mrf.mxu0  ;;  %v2010_v48 = vpop.f32.mrf.mxu1 }
 0x117   : > { %v2378_v52 = vadd.f32 %v1882_v30, %v1557_v49  ;;  %v1555_v53 = vadd.f32 %v1524_v40, %v1325_v47  ;;  %v1332_v18 = vadd.f32 %v2010_v48, %v1213_v8 }
 0x118   : > { %v2016_v56 = vpop.f32.mrf.mxu0  ;;  %v1313_v13 = vpop.f32.mrf.mxu1 }
 0x119   : > { %v1580_v57 = vmin.f32 %v2378_v52, 20.0  ;;  %v2382_v58 = vadd.f32 %v1882_v30, %v1555_v53  ;;  %v1558_v59 = vadd.f32 %v2016_v56, %v1328_v50  ;;  %v1330_v23 = vadd.f32 %v1313_v13, %v1211_v15 }
 0x11a   : > { %v1527_v62 = vpop.f32.mrf.mxu0 }
 0x11b   : > { %v1590_v0 = vmul.f32 1.442695, %v1580_v57  ;;  %v1578_v1 = vmin.f32 %v2382_v58, 20.0  ;;  %v2385_v2 = vadd.f32 %v1882_v30, %v1558_v59  ;;  %v1556_v5 = vadd.f32 %v1527_v62, %v1326_v42 }
 0x11c   : > { %v2019_v43 = vpop.f32.mrf.mxu0 }
 0x11d   : > { %2066 = vpow2.f32 %v1590_v0  ;;  %v1586_v10 = vmul.f32 1.442695, %v1578_v1  ;;  %v1581_v11 = vmin.f32 %v2385_v2, 20.0  ;;  %v2388_v12 = vadd.f32 %v1882_v30, %v1556_v5 }
 0x11e   : > { %v1561_v16 = vadd.f32 %v2019_v43, %v1331_v63  ;;  %v1540_v22 = vpop.f32.mrf.mxu0 }
 0x11f   : > { %2068 = vpow2.f32 %v1586_v10  ;;  %v1592_v20 = vmul.f32 1.442695, %v1581_v11  ;;  %v1579_v3 = vmin.f32 %v2388_v12, 20.0  ;;  %v1559_v17 = vadd.f32 %v1540_v22, %v1329_v9 }
 0x120   : > { %v2391_v4 = vadd.f32 %v1882_v30, %v1561_v16  ;;  %v2020_v26 = vpop.f32.mrf.mxu0 }
 0x121   : > { %2070 = vpow2.f32 %v1592_v20  ;;  %v1588_v24 = vmul.f32 1.442695, %v1579_v3  ;;  %v2394_v34 = vadd.f32 %v1882_v30, %v1559_v17  ;;  %v1562_v36 = vadd.f32 %v2020_v26, %v1332_v18 }
 0x122   : > { %v1584_v29 = vmin.f32 %v2391_v4, 20.0  ;;  %v1543_v25 = vpop.f32.mrf.mxu0 }
 0x123   : > { %2072 = vpow2.f32 %v1588_v24  ;;  %v1582_v6 = vmin.f32 %v2394_v34, 20.0  ;;  %v2397_v19 = vadd.f32 %v1882_v30, %v1562_v36  ;;  %v1560_v37 = vadd.f32 %v1543_v25, %v1330_v23 }
 0x124   : > { %v1598_v41 = vmul.f32 1.442695, %v1584_v29 }
 0x125   : > { %v1594_v44 = vmul.f32 1.442695, %v1582_v6  ;;  %v1585_v14 = vmin.f32 %v2397_v19, 20.0  ;;  %v2400_v28 = vadd.f32 %v1882_v30, %v1560_v37 }
 0x126   : > { %2074 = vpow2.f32 %v1598_v41 }
 0x127   : > { %2076 = vpow2.f32 %v1594_v44  ;;  %v1600_v47 = vmul.f32 1.442695, %v1585_v14  ;;  %v1583_v7 = vmin.f32 %v2400_v28, 20.0 }
 0x129   : > { %2078 = vpow2.f32 %v1600_v47  ;;  %v1596_v27 = vmul.f32 1.442695, %v1583_v7 }
 0x12a   : > { %v2067_v21 = vpop.eup %2066 }
 0x12b   : > { %v1604_v31 = vadd.f32 2.0, %v2067_v21  ;;  %2080 = vpow2.f32 %v1596_v27 }
 0x12c   : > { %v2069_v46 = vpop.eup %2068 }
 0x12d   : > { %v1612_v33 = vmul.f32 %v2067_v21, %v1604_v31  ;;  %v1602_v49 = vadd.f32 2.0, %v2069_v46 }
 0x12e   : > { %v2071_v50 = vpop.eup %2070 }
 0x12f   : > { %v1620_v51 = vadd.f32 2.0, %v1612_v33  ;;  %v1610_v32 = vmul.f32 %v2069_v46, %v1602_v49  ;;  %v1605_v35 = vadd.f32 2.0, %v2071_v50 }
 0x130   : > { %v2073_v40 = vpop.eup %2072 }
 0x131   : > { %2082 = vrcp.f32 %v1620_v51  ;;  %v1618_v30 = vadd.f32 2.0, %v1610_v32  ;;  %v1613_v53 = vmul.f32 %v2071_v50, %v1605_v35  ;;  %v1603_v42 = vadd.f32 2.0, %v2073_v40 }
 0x133   : > { %2084 = vrcp.f32 %v1618_v30  ;;  %v1621_v54 = vadd.f32 2.0, %v1613_v53  ;;  %v1611_v39 = vmul.f32 %v2073_v40, %v1603_v42  ;;  %v2075_v38 = vpop.eup %2074 }
 0x134   : > { %v1608_v56 = vadd.f32 2.0, %v2075_v38  ;;  %v2077_v57 = vpop.eup %2076 }
 0x135   : > { %2086 = vrcp.f32 %v1621_v54  ;;  %v1619_v55 = vadd.f32 2.0, %v1611_v39  ;;  %v1606_v60 = vadd.f32 2.0, %v2077_v57 }
 0x136   : > { %v1616_v59 = vmul.f32 %v2075_v38, %v1608_v56  ;;  %v2079_v61 = vpop.eup %2078 }
 0x137   : > { %2088 = vrcp.f32 %v1619_v55  ;;  %v1614_v62 = vmul.f32 %v2077_v57, %v1606_v60  ;;  %v1609_v63 = vadd.f32 2.0, %v2079_v61 }
 0x138   : > { %v1624_v45 = vadd.f32 2.0, %v1616_v59  ;;  %v2081_v0 = vpop.eup %2080 }
 0x139   : > { %v1622_v1 = vadd.f32 2.0, %v1614_v62  ;;  %v1617_v5 = vmul.f32 %v2079_v61, %v1609_v63  ;;  %v1607_v48 = vadd.f32 2.0, %v2081_v0 }
 0x13a   : > { %2090 = vrcp.f32 %v1624_v45 }
 0x13b   : > { %2092 = vrcp.f32 %v1622_v1  ;;  %v1625_v8 = vadd.f32 2.0, %v1617_v5  ;;  %v1615_v9 = vmul.f32 %v2081_v0, %v1607_v48 }
 0x13d   : > { %2094 = vrcp.f32 %v1625_v8  ;;  %v1623_v13 = vadd.f32 2.0, %v1615_v9 }
 0x13e   : > { %v2083_v10 = vpop.eup %2082 }
 0x13f   : > { %v1636_v11 = vmul.f32 %v2083_v10, %v1612_v33  ;;  %2096 = vrcp.f32 %v1623_v13 }
 0x140   : > { %v2085_v15 = vpop.eup %2084 }
 0x141   : > { %v1644_v43 = vmul.f32 %v1636_v11, %v2378_v52  ;;  %v1634_v18 = vmul.f32 %v2085_v15, %v1610_v32 }
 0x142   : > { %v2087_v20 = vpop.eup %2086 }
 0x143   : > { %v1652_v3 = vpack.c.bf16 %v1644_v43, %v1644_v43  ;;  %v1642_v16 = vmul.f32 %v1634_v18, %v2382_v58  ;;  %v1637_v22 = vmul.f32 %v2087_v20, %v1613_v53 }
 0x144   : > { %v2089_v23 = vpop.eup %2088 }
 0x145   : > { %1661 = vst.msk [vmem:[%s2408_s16 + $0x8] sm:$0xf] %vm1658_vm5, %v1652_v3  ;;  %v1650_v52 = vpack.c.bf16 %v1642_v16, %v1642_v16  ;;  %v1645_v24 = vmul.f32 %v1637_v22, %v2385_v2  ;;  %v1635_v17 = vmul.f32 %v2089_v23, %v1611_v39 }
 0x147   : > { %1659 = vst.msk [vmem:[%s2408_s16] sm:$0xf] %vm1658_vm5, %v1650_v52  ;;  %v1653_v26 = vpack.c.bf16 %v1645_v24, %v1645_v24  ;;  %v1643_v29 = vmul.f32 %v1635_v17, %v2388_v12  ;;  %v2091_v36 = vpop.eup %2090 }
 0x148   : > { %v1640_v58 = vmul.f32 %v2091_v36, %v1616_v59  ;;  %v2093_v41 = vpop.eup %2092 }
 0x149   : > { %1662 = vst.msk [vmem:[%s2408_s16 + $0xc] sm:$0xf] %vm1658_vm5, %v1653_v26  ;;  %v1651_v25 = vpack.c.bf16 %v1643_v29, %v1643_v29  ;;  %v1638_v2 = vmul.f32 %v2093_v41, %v1614_v62 }
 0x14a   : > { %v1648_v6 = vmul.f32 %v1640_v58, %v2391_v4  ;;  %v2095_v37 = vpop.eup %2094 }
 0x14b   : > { %1660 = vst.msk [vmem:[%s2408_s16 + $0x4] sm:$0xf] %vm1658_vm5, %v1651_v25  ;;  %v1646_v14 = vmul.f32 %v1638_v2, %v2394_v34  ;;  %v1641_v47 = vmul.f32 %v2095_v37, %v1617_v5 }
 0x14c   : > { %v1656_v44 = vpack.c.bf16 %v1648_v6, %v1648_v6  ;;  %v2097_v12 = vpop.eup %2096 }
 0x14d   : > { %v1654_v7 = vpack.c.bf16 %v1646_v14, %v1646_v14  ;;  %v1649_v21 = vmul.f32 %v1641_v47, %v2397_v19  ;;  %v1639_v31 = vmul.f32 %v2097_v12, %v1615_v9 }
 0x14e   : > { %1665 = vst.msk [vmem:[%s2408_s16 + $0x18] sm:$0xf] %vm1658_vm5, %v1656_v44 }
 0x14f   : > { %1663 = vst.msk [vmem:[%s2408_s16 + $0x10] sm:$0xf] %vm1658_vm5, %v1654_v7  ;;  %v1657_v27 = vpack.c.bf16 %v1649_v21, %v1649_v21  ;;  %v1647_v46 = vmul.f32 %v1639_v31, %v2400_v28 }
 0x151   : > { %1666 = vst.msk [vmem:[%s2408_s16 + $0x1c] sm:$0xf] %vm1658_vm5, %v1657_v27  ;;  %v1655_v4 = vpack.c.bf16 %v1647_v46, %v1647_v46 }
 0x153   : > { %1664 = vst.msk [vmem:[%s2408_s16 + $0x14] sm:$0xf] %vm1658_vm5, %v1655_v4 }
 0x154 PF: > { %s13_s12 = sadd.s32 1, %s2104_s12  }
 0x155   : > { %p10_p4 = scmp.ge.s32.totalorder %s13_s12, 4  }
 0x157   :  { %12 = sbr.rel (!%p10_p4) target bundleno = 1 (0x1), region = 75 }

// kernel: downsample_forward.8
= control target key start
LH: loop header
LB: loop body
LE: loop exit
PB: predicated region body
PF: predicated region fallthrough
CT: control target
= control target key end

     0   :  { %s2377_s12 = smov 0   ;;  %s2972_s0 = inlined_call_operand.vmem [shape: bf16[2,8,8,8], index: 0, kind: input, shape index: {}]   ;;  %s2973_s1 = inlined_call_operand.vmem [shape: bf16[9,8,8], index: 1, kind: input, shape index: {}]   ;;  %s2974_s2 = inlined_call_operand.vmem [shape: f32[1,8], index: 2, kind: input, shape index: {}]   ;;  %s2975_s3 = inlined_call_operand.vmem [shape: bf16[2,8,8,8], index: 3, kind: output, shape index: {}]  }
   0x1 LB: > { %s2031_s13 = sadd.s32 4294967295, %s2354_s12   ;;  %p2035_p0 = scmp.ge.s32.totalorder %s2354_s12, 1  ;;  %s2354_s12 = sphi %s2377_s12, %s13_s12  }
   0x2   : > { %p137_p1 = scmp.lt.s32.totalorder %s2354_s12, 3 }
   0x4   : > { %p138_p2 = pnand %p2035_p0, %p137_p1 }
   0x5   : > { %p161_p3 = scmp.lt.s32.totalorder (!%p138_p2), %s2031_s13, 1 }
   0x6   : > { %141 = sbr.rel (%p138_p2) target bundleno = 392 (0x188), region = 32 }
   0xb   : > { %v2040_v0 = vld [vmem:[%s2973_s1 + $0x4] sm:$0xf]  ;;  %vm530_vm0 = vcmask 1043456   ;;  %vm172_vm1 = vcmask 60416   ;;  %v2356_v2 = vmov 0   ;;  %vm174_vm2 = vcmask 57344  }
   0xc   : > { %2287 = vmatprep.subr.msk.bf16.mxu1 %vm530_vm0, %v2040_v0  ;;  %2286 = vmatprep.subr.msk.bf16.mxu0 %vm530_vm0, %v2040_v0  ;;  %v532_v1 = vsel %vm530_vm0, %v2040_v0, 0  ;;  %173 = vst.msk [vmem:[#allocation2] sm:$0xf] %vm172_vm1, %v2356_v2  ;;  %vm181_vm3 = vsmask.f32 256  ;;  %s2987_s13 = smov (!%p161_p3, %s2031_s13), 1 }
   0xd   : > { %v183_v3 = vld [vmem:[#allocation2 + $0x8] sm:$0x1]  ;;  %177 = vst.msk [vmem:[#allocation2 + $0x48] sm:$0xf] %vm172_vm1, %v2356_v2  ;;  %2285 = vmatpush3.bf16.msra.mxu1 %v532_v1  ;;  %2195 = vmatpush3.bf16.msra.mxu0 %v532_v1  ;;  %vm2395_vm4 = vmand %vm174_vm2, %vm181_vm3  ;;  %vm207_vm5 = vsmask.f32 7938 }
   0xe   : > { %175 = vst.msk [vmem:[#allocation2 + $0x4] sm:$0x1] %vm174_vm2, %v2356_v2  ;;  %v209_v5 = vld [vmem:[#allocation2 + $0xc] sm:$0x1]  ;;  %178 = vst.msk [vmem:[#allocation2 + $0x4c] sm:$0x1] %vm174_vm2, %v2356_v2 }
   0xf   : > { %v184_v6 = vsel %vm2395_vm4, 0, %v183_v3  ;;  %vm2402_vm6 = vmand %vm174_vm2, %vm207_vm5  ;;  %s2147_s16 = sshll.u32 %s2987_s13, 5  ;;  %v192_v9 = vld [vmem:[#allocation2 + $0x20] sm:$0x1]  ;;  %v195_v10 = vld [vmem:[#allocation2 + $0x28] sm:$0x1] }
  0x10   : > { %185 = vst [vmem:[#allocation2 + $0x8] sm:$0x1] %v184_v6  ;;  %v210_v8 = vsel %vm2402_vm6, 0, %v209_v5  ;;  %s2414_s19 = scalar_lea.vmem %s2972_s0, %s2147_s16  ;;  %v193_v11 = vsel %vm2395_vm4, 0, %v192_v9  ;;  %v196_v12 = vsel %vm2395_vm4, 0, %v195_v10  ;;  %vm2440_vm7 = vmand %vm172_vm1, %vm207_vm5  ;;  %vm517_vm10 = vcmask 64512   ;;  %s2944_s15 = scalar_lea.vmem %s2975_s3, %s2147_s16 }
  0x11   : > { %211 = vst [vmem:[#allocation2 + $0xc] sm:$0x1] %v210_v8  ;;  %v218_v13 = vld [vmem:[#allocation2 + $0x24] sm:$0x1]  ;;  %v221_v14 = vld [vmem:[#allocation2 + $0x2c] sm:$0x1] }
  0x12   : > { %v233_v15 = vld [vmem:[%s2414_s19] sm:$0xf]  ;;  %194 = vst [vmem:[#allocation2 + $0x20] sm:$0x1] %v193_v11  ;;  %197 = vst [vmem:[#allocation2 + $0x28] sm:$0x1] %v196_v12 }
  0x13   : > { %v219_v16 = vsel %vm2402_vm6, 0, %v218_v13  ;;  %v222_v17 = vsel %vm2402_vm6, 0, %v221_v14  ;;  %v236_v18 = vld [vmem:[%s2414_s19 + $0xc] sm:$0xf]  ;;  %v242_v19 = vshrl.u32 %v233_v15, 16  ;;  %v245_v20 = vshll.u32 %v233_v15, 16 }
  0x14   : > { %220 = vst [vmem:[#allocation2 + $0x24] sm:$0x1] %v219_v16  ;;  %223 = vst [vmem:[#allocation2 + $0x2c] sm:$0x1] %v222_v17  ;;  %v237_v21 = vld [vmem:[%s2414_s19 + $0x10] sm:$0xf] }
  0x15   : > { %v266_v22 = vshrl.u32 %v236_v18, 16  ;;  %v269_v23 = vshll.u32 %v236_v18, 16  ;;  %v2427_v24 = vld [vmem:[#allocation2] sm:$0xf]  ;;  %v274_v25 = vshrl.u32 %v237_v21, 16  ;;  %v277_v26 = vshll.u32 %v237_v21, 16 }
  0x16   : > { %v2432_v27 = vld [vmem:[%s2973_s1] sm:$0xf]  ;;  %v244_v28 = vrot.slane %v242_v19, 7  ;;  %v392_v29 = vshrl.u32 %v2427_v24, 16  ;;  %v395_v30 = vshll.u32 %v2427_v24, 16  ;;  %vm723_vm11 = vcmask 1042432  }
  0x17   : > { %v268_v31 = vrot.slane %v266_v22, 7  ;;  %2288 = vmatprep.subr.msk.bf16.mxu1 %vm530_vm0, %v2432_v27  ;;  %v2444_v33 = vld [vmem:[#allocation2 + $0x4] sm:$0x1]  ;;  %v276_v34 = vrot.slane %v274_v25, 7  ;;  %v323_v37 = vld [vmem:[#allocation2 + $0x8] sm:$0xf] }
  0x18   : > { %v247_v35 = vor.u32 %v245_v20, %v244_v28  ;;  %v248_v36 = vrot.slane %v244_v28, 4  ;;  %v186_v38 = vld [vmem:[#allocation2 + $0x10] sm:$0x1]  ;;  %v326_v39 = vld [vmem:[#allocation2 + $0xc] sm:$0x1]  ;;  %v394_v40 = vrot.slane %v392_v29, 4 }
  0x19   : > { %v271_v41 = vor.u32 %v269_v23, %v268_v31  ;;  %v272_v42 = vrot.slane %v268_v31, 4  ;;  %v279_v43 = vor.u32 %v277_v26, %v276_v34  ;;  %v189_v44 = vld [vmem:[#allocation2 + $0x18] sm:$0x1]  ;;  %vm388_vm8 = vsmask.f32 3328 }
  0x1a   : > { %v324_v45 = vsel %vm2440_vm7, %v247_v35, %v323_v37  ;;  %v327_v46 = vsel %vm2395_vm4, %v248_v36, %v326_v39  ;;  %vm389_vm9 = vsmask.f32 7440  ;;  %v397_v47 = vrot.slane %v395_v30, 5  ;;  %v341_v49 = vld [vmem:[#allocation2 + $0x20] sm:$0xf] }
  0x1b   : > { %v280_v48 = vrot.slane %v276_v34, 4  ;;  %v347_v50 = vld [vmem:[#allocation2 + $0x28] sm:$0xf]  ;;  %325 = vst [vmem:[#allocation2 + $0x8] sm:$0xf] %v324_v45  ;;  %v342_v51 = vsel %vm2440_vm7, %v271_v41, %v341_v49  ;;  %v187_v55 = vsel %vm2395_vm4, 0, %v186_v38  ;;  %vm2505_vm13 = vmor %vm388_vm8, %vm389_vm9 }
  0x1c   : > { %328 = vst [vmem:[#allocation2 + $0xc] sm:$0x1] %v327_v46  ;;  %v344_v52 = vld [vmem:[#allocation2 + $0x24] sm:$0x1]  ;;  %v348_v53 = vsel %vm2440_vm7, %v279_v43, %v347_v50  ;;  %v350_v54 = vld [vmem:[#allocation2 + $0x2c] sm:$0x1]  ;;  %v398_v2 = vor.u32 %v397_v47, %v394_v40 }
  0x1d   : > { %v190_v56 = vsel %vm2395_vm4, 0, %v189_v44  ;;  %v401_v57 = vshll.u32 %v2444_v33, 16  ;;  %343 = vst [vmem:[#allocation2 + $0x20] sm:$0xf] %v342_v51  ;;  %v345_v58 = vsel %vm2395_vm4, %v272_v42, %v344_v52  ;;  %349 = vst [vmem:[#allocation2 + $0x28] sm:$0xf] %v348_v53  ;;  %v351_v59 = vsel %vm2395_vm4, %v280_v48, %v350_v54 }
  0x1e   : > { %188 = vst [vmem:[#allocation2 + $0x10] sm:$0x1] %v187_v55  ;;  %191 = vst [vmem:[#allocation2 + $0x18] sm:$0x1] %v190_v56  ;;  %v212_v60 = vld [vmem:[#allocation2 + $0x14] sm:$0x1] }
  0x1f   : > { %v215_v61 = vld [vmem:[#allocation2 + $0x1c] sm:$0x1]  ;;  %346 = vst [vmem:[#allocation2 + $0x24] sm:$0x1] %v345_v58  ;;  %352 = vst [vmem:[#allocation2 + $0x2c] sm:$0x1] %v351_v59 }
  0x20   : > { %v213_v62 = vsel %vm2402_vm6, 0, %v212_v60  ;;  %v216_v63 = vsel %vm2402_vm6, 0, %v215_v61  ;;  %v234_v0 = vld [vmem:[%s2414_s19 + $0x4] sm:$0xf]  ;;  %v235_v1 = vld [vmem:[%s2414_s19 + $0x8] sm:$0xf] }
  0x21   : > { %214 = vst [vmem:[#allocation2 + $0x14] sm:$0x1] %v213_v62  ;;  %217 = vst [vmem:[#allocation2 + $0x1c] sm:$0x1] %v216_v63  ;;  %v250_v3 = vshrl.u32 %v234_v0, 16  ;;  %v253_v5 = vshll.u32 %v234_v0, 16 }
  0x22   : > { %v258_v6 = vshrl.u32 %v235_v1, 16  ;;  %v198_v8 = vld [vmem:[#allocation2 + $0x30] sm:$0x1]  ;;  %v261_v9 = vshll.u32 %v235_v1, 16  ;;  %v201_v11 = vld [vmem:[#allocation2 + $0x38] sm:$0x1] }
  0x23   : > { %v199_v10 = vsel %vm2395_vm4, 0, %v198_v8  ;;  %v224_v12 = vld [vmem:[#allocation2 + $0x34] sm:$0x1]  ;;  %v252_v13 = vrot.slane %v250_v3, 7  ;;  %v202_v15 = vsel %vm2395_vm4, 0, %v201_v11  ;;  %v2477_v18 = vrot.slane %v401_v57, 5 }
  0x24   : > { %v2471_v14 = vrot.slane %v258_v6, 7  ;;  %200 = vst [vmem:[#allocation2 + $0x30] sm:$0x1] %v199_v10  ;;  %v225_v16 = vsel %vm2402_vm6, 0, %v224_v12  ;;  %v227_v17 = vld [vmem:[#allocation2 + $0x3c] sm:$0x1] }
  0x25   : > { %v728_v19 = vrot.slane %v2444_v33, 5  ;;  %203 = vst [vmem:[#allocation2 + $0x38] sm:$0x1] %v202_v15  ;;  %226 = vst [vmem:[#allocation2 + $0x34] sm:$0x1] %v225_v16  ;;  %v228_v20 = vsel %vm2402_vm6, 0, %v227_v17  ;;  %v255_v37 = vor.u32 %v253_v5, %v252_v13 }
  0x26   : > { %v2484_v21 = vsel %vm530_vm0, %v2432_v27, 0  ;;  %v2486_v22 = vld [vmem:[#allocation2 + $0x8] sm:$0xf]  ;;  %v2488_v23 = vld [vmem:[#allocation2 + $0xc] sm:$0x1]  ;;  %v399_v25 = vrot.slane %v398_v2, 4  ;;  %v263_v38 = vor.u32 %v261_v9, %v2471_v14 }
  0x27   : > { %v256_v26 = vrot.slane %v252_v13, 4  ;;  %229 = vst [vmem:[#allocation2 + $0x3c] sm:$0x1] %v228_v20  ;;  %v406_v28 = vshrl.u32 %v2486_v22, 16  ;;  %v409_v29 = vshll.u32 %v2486_v22, 16  ;;  %v415_v30 = vshll.u32 %v2488_v23, 16 }
  0x28   : > { %v2493_v31 = vld [vmem:[#allocation2 + $0x20] sm:$0xf]  ;;  %v264_v34 = vrot.slane %v2471_v14, 4  ;;  %vm724_vm12 = vcmask 1046532   ;;  %v2496_v27 = vld [vmem:[#allocation2 + $0x28] sm:$0xf]  ;;  %v404_v55 = vsel %vm2505_vm13, %v399_v25, %v2477_v18 }
  0x29   : > { %v2498_v35 = vld [vmem:[#allocation2 + $0x24] sm:$0x1]  ;;  %v2500_v36 = vld [vmem:[#allocation2 + $0x2c] sm:$0x1]  ;;  %v408_v40 = vrot.slane %v406_v28, 4  ;;  %v411_v41 = vrot.slane %v409_v29, 5  ;;  %vm2543_vm14 = vmor %vm723_vm11, %vm724_vm12 }
  0x2a   : > { %v417_v42 = vrot.slane %v415_v30, 5  ;;  %v448_v43 = vshrl.u32 %v2493_v31, 16  ;;  %v451_v44 = vshll.u32 %v2493_v31, 16  ;;  %v457_v45 = vshll.u32 %v2498_v35, 16  ;;  %v329_v48 = vld [vmem:[#allocation2 + $0x10] sm:$0xf] }
  0x2b   : > { %v462_v46 = vshrl.u32 %v2496_v27, 16  ;;  %v465_v47 = vshll.u32 %v2496_v27, 16  ;;  %v238_v49 = vld [vmem:[%s2414_s19 + $0x14] sm:$0xf]  ;;  %v412_v50 = vor.u32 %v411_v41, %v408_v40  ;;  %v471_v52 = vshll.u32 %v2500_v36, 16 }
  0x2c   : > { %v450_v51 = vrot.slane %v448_v43, 4  ;;  %v332_v53 = vld [vmem:[#allocation2 + $0x14] sm:$0x1]  ;;  %v335_v54 = vld [vmem:[#allocation2 + $0x18] sm:$0xf]  ;;  %v453_v56 = vrot.slane %v451_v44, 5  ;;  %v330_v63 = vsel %vm2440_vm7, %v255_v37, %v329_v48 }
  0x2d   : > { %v464_v57 = vrot.slane %v462_v46, 4  ;;  %v467_v58 = vrot.slane %v465_v47, 5  ;;  %v338_v59 = vld [vmem:[#allocation2 + $0x1c] sm:$0x1]  ;;  %v413_v60 = vrot.slane %v412_v50, 4  ;;  %v459_v61 = vrot.slane %v457_v45, 5 }
  0x2e   : > { %v473_v62 = vrot.slane %v471_v52, 5  ;;  %v239_v0 = vld [vmem:[%s2414_s19 + $0x18] sm:$0xf]  ;;  %v454_v1 = vor.u32 %v453_v56, %v450_v51  ;;  %331 = vst [vmem:[#allocation2 + $0x10] sm:$0xf] %v330_v63  ;;  %v333_v3 = vsel %vm2395_vm4, %v256_v26, %v332_v53  ;;  %v336_v5 = vsel %vm2440_vm7, %v263_v38, %v335_v54 }
  0x2f   : > { %v468_v2 = vor.u32 %v467_v58, %v464_v57  ;;  %v418_v6 = vsel %vm2505_vm13, %v413_v60, %v417_v42  ;;  %334 = vst [vmem:[#allocation2 + $0x14] sm:$0x1] %v333_v3  ;;  %337 = vst [vmem:[#allocation2 + $0x18] sm:$0xf] %v336_v5  ;;  %v339_v8 = vsel %vm2395_vm4, %v264_v34, %v338_v59  ;;  %v282_v9 = vshrl.u32 %v238_v49, 16 }
  0x30   : > { %v285_v10 = vshll.u32 %v238_v49, 16  ;;  %v2065_v11 = vld [vmem:[%s2973_s1 + $0x8] sm:$0xf]  ;;  %v699_v12 = vld [vmem:[#allocation2] sm:$0xe]  ;;  %v2041_v13 = vcombine.low %v404_v55, %v418_v6  ;;  %v455_v14 = vrot.slane %v454_v1, 4  ;;  %v2049_v53 = vcombine.low %v2427_v24, %v2486_v22 }
  0x31   : > { %v469_v15 = vrot.slane %v468_v2, 4  ;;  %340 = vst [vmem:[#allocation2 + $0x1c] sm:$0x1] %v339_v8  ;;  %v290_v16 = vshrl.u32 %v239_v0, 16  ;;  %2289 = vmatprep.subr.msk.bf16.mxu0 %vm530_vm0, %v2065_v11  ;;  %v700_v17 = vld [vmem:[#allocation2 + $0x8] sm:$0xe] }
  0x32   : > { %v732_v18 = vrot.slane %v2488_v23, 5  ;;  %v284_v20 = vrot.slane %v282_v9, 7  ;;  %v293_v25 = vshll.u32 %v239_v0, 16  ;;  %v353_v26 = vld [vmem:[#allocation2 + $0x30] sm:$0xf]  ;;  %v2057_v28 = vrot.slane %v699_v12, 9  ;;  %2196 = vmatprep.mubr.msk.bf16.mxu0 %vm517_vm10, %v2041_v13 }
  0x33   : > { %v460_v29 = vsel %vm2505_vm13, %v455_v14, %v459_v61  ;;  %v474_v30 = vsel %vm2505_vm13, %v469_v15, %v473_v62  ;;  %v744_v34 = vrot.slane %v2498_v35, 5  ;;  %v292_v37 = vrot.slane %v290_v16, 7  ;;  %v356_v38 = vld [vmem:[#allocation2 + $0x34] sm:$0x1]  ;;  %v359_v40 = vld [vmem:[#allocation2 + $0x38] sm:$0xf] }
  0x34   : > { %v2043_v41 = vcombine.low %v460_v29, %v474_v30  ;;  %v287_v42 = vor.u32 %v285_v10, %v284_v20  ;;  %v288_v43 = vrot.slane %v284_v20, 4  ;;  %v362_v44 = vld [vmem:[#allocation2 + $0x3c] sm:$0x1]  ;;  %v2058_v45 = vrot.slane %v700_v17, 9  ;;  %v2569_v55 = vld [vmem:[%s2973_s1 + $0xc] sm:$0xf] }
  0x35   : > { %v748_v46 = vrot.slane %v2500_v36, 5  ;;  %v295_v47 = vor.u32 %v293_v25, %v292_v37  ;;  %v296_v48 = vrot.slane %v292_v37, 4  ;;  %v2549_v49 = vsel %vm530_vm0, %v2065_v11, 0  ;;  %v2552_v50 = vld [vmem:[#allocation2 + $0x10] sm:$0xf] }
  0x36   : > { %2200 = vmatprep.mubr.msk.bf16.mxu1 %vm517_vm10, %v2043_v41  ;;  %v354_v51 = vsel %vm2440_vm7, %v287_v42, %v353_v26  ;;  %v357_v52 = vsel %vm2395_vm4, %v288_v43, %v356_v38  ;;  %v2564_v54 = vsel %vm2543_vm14, %v2057_v28, %v728_v19  ;;  %v701_v56 = vld [vmem:[#allocation2 + $0x10] sm:$0xe]  ;;  %v2571_v57 = vld [vmem:[#allocation2 + $0x18] sm:$0xf]  ;;  %v382_v58 = vld [vmem:[#allocation2 + $0x14] sm:$0x1]  ;;  %v733_v3 = vsel %vm2543_vm14, %v2058_v45, %v732_v18 }
  0x37   : > { %v420_v59 = vshrl.u32 %v2552_v50, 16  ;;  %v423_v60 = vshll.u32 %v2552_v50, 16  ;;  %355 = vst [vmem:[#allocation2 + $0x30] sm:$0xf] %v354_v51  ;;  %358 = vst [vmem:[#allocation2 + $0x34] sm:$0x1] %v357_v52  ;;  %v360_v33 = vsel %vm2440_vm7, %v295_v47, %v359_v40  ;;  %v363_v19 = vsel %vm2395_vm4, %v296_v48, %v362_v44 }
  0x38   : > { %v703_v61 = vld [vmem:[#allocation2 + $0x20] sm:$0xe]  ;;  %v704_v62 = vld [vmem:[#allocation2 + $0x28] sm:$0xe]  ;;  %v383_v63 = vld [vmem:[#allocation2 + $0x1c] sm:$0x1]  ;;  %v2066_v38 = vcombine.low %v2564_v54, %v733_v3 }
  0x39   : > { %v429_v0 = vshll.u32 %v382_v58, 16  ;;  %v434_v1 = vshrl.u32 %v2571_v57, 16  ;;  %v437_v2 = vshll.u32 %v2571_v57, 16  ;;  %361 = vst [vmem:[#allocation2 + $0x38] sm:$0xf] %v360_v33  ;;  %v422_v6 = vrot.slane %v420_v59, 4 }
  0x3a   : > { %364 = vst [vmem:[#allocation2 + $0x3c] sm:$0x1] %v363_v19  ;;  %v2586_v5 = vld [vmem:[%s2973_s1 + $0x10] sm:$0xf]  ;;  %v425_v8 = vrot.slane %v423_v60, 5  ;;  %v443_v9 = vshll.u32 %v383_v63, 16 }
  0x3b   : > { %v736_v10 = vrot.slane %v382_v58, 5  ;;  %v702_v11 = vld [vmem:[#allocation2 + $0x18] sm:$0xe]  ;;  %v436_v12 = vrot.slane %v434_v1, 4  ;;  %v439_v13 = vrot.slane %v437_v2, 5  ;;  %v740_v14 = vrot.slane %v383_v63, 5 }
  0x3c   : > { %v2590_v15 = vsel %vm530_vm0, %v2569_v55, 0  ;;  %v426_v16 = vor.u32 %v425_v8, %v422_v6  ;;  %v431_v17 = vrot.slane %v429_v0, 5  ;;  %v2059_v18 = vrot.slane %v701_v56, 9  ;;  %v978_v25 = vld [vmem:[#allocation2 + $0x8] sm:$0xf] }
  0x3d   : > { %v2060_v20 = vrot.slane %v702_v11, 9  ;;  %v440_v26 = vor.u32 %v439_v13, %v436_v12  ;;  %v445_v28 = vrot.slane %v443_v9, 5  ;;  %v2061_v29 = vrot.slane %v703_v61, 9  ;;  %v2633_v6 = vld [vmem:[#allocation2 + $0xc] sm:$0x1] }
  0x3e   : > { %v2062_v30 = vrot.slane %v704_v62, 9  ;;  %v427_v37 = vrot.slane %v426_v16, 4  ;;  %v2595_v40 = vsel %vm2543_vm14, %v2059_v18, %v736_v10  ;;  %v2599_v41 = vsel %vm530_vm0, %v2586_v5, 0  ;;  %v2601_v43 = vld [vmem:[#allocation2 + $0x30] sm:$0xf] }
  0x3f   : > { %v441_v42 = vrot.slane %v440_v26, 4  ;;  %v386_v44 = vld [vmem:[#allocation2 + $0x34] sm:$0x1]  ;;  %v2605_v45 = vsel %vm2543_vm14, %v2060_v20, %v740_v14  ;;  %v2611_v47 = vsel %vm2543_vm14, %v2061_v29, %v744_v34  ;;  %v995_v48 = vshrl.u32 %v978_v25, 16  ;;  %v705_v19 = vld [vmem:[#allocation2 + $0x30] sm:$0xe] }
  0x40   : > { %v432_v51 = vsel %vm2505_vm13, %v427_v37, %v431_v17  ;;  %v2615_v52 = vld [vmem:[#allocation2 + $0x38] sm:$0xf]  ;;  %v476_v56 = vshrl.u32 %v2601_v43, 16  ;;  %v479_v58 = vshll.u32 %v2601_v43, 16  ;;  %v2623_v35 = vsel %vm2543_vm14, %v2062_v30, %v748_v46  ;;  %v980_v12 = vld [vmem:[#allocation2 + $0x10] sm:$0xf] }
  0x41   : > { %v387_v54 = vld [vmem:[#allocation2 + $0x3c] sm:$0x1]  ;;  %v446_v34 = vsel %vm2505_vm13, %v441_v42, %v445_v28  ;;  %v485_v59 = vshll.u32 %v386_v44, 16  ;;  %v490_v60 = vshrl.u32 %v2615_v52, 16  ;;  %v493_v33 = vshll.u32 %v2615_v52, 16 }
  0x42   : > { %v2042_v61 = vcombine.low %v432_v51, %v446_v34  ;;  %v478_v62 = vrot.slane %v476_v56, 4  ;;  %v481_v63 = vrot.slane %v479_v58, 5  ;;  %v499_v0 = vshll.u32 %v387_v54, 16  ;;  %v706_v1 = vld [vmem:[#allocation2 + $0x38] sm:$0xe] }
  0x43   : > { %v492_v2 = vrot.slane %v490_v60, 4  ;;  %v495_v36 = vrot.slane %v493_v33, 5  ;;  %v2067_v46 = vcombine.low %v2595_v40, %v2605_v45  ;;  %v2068_v3 = vcombine.low %v2611_v47, %v2623_v35  ;;  %v2640_v20 = vld [vmem:[#allocation2 + $0x14] sm:$0x1]  ;;  %v2658_v60 = vld [vmem:[#allocation2 + $0x24] sm:$0x1] }
  0x44   : > { %2197 = vmatmul.mubr.msk.bf16.vlgmr.msra.gmra.mxu0 %vm517_vm10, %v2042_v61  ;;  %v482_v8 = vor.u32 %v481_v63, %v478_v62  ;;  %v487_v9 = vrot.slane %v485_v59, 5  ;;  %v2063_v10 = vrot.slane %v705_v19, 9  ;;  %v752_v11 = vrot.slane %v386_v44, 5  ;;  %v1213_v4 = vld [vmem:[#allocation2 + $0x30] sm:$0xe] }
  0x45   : > { %v496_v13 = vor.u32 %v495_v36, %v492_v2  ;;  %v501_v14 = vrot.slane %v499_v0, 5  ;;  %2215 = vmatpush3.bf16.msra.mxu0 %v2549_v49  ;;  %2216 = vmatprep.mubr.msk.bf16.mxu0 %vm517_vm10, %v2066_v38  ;;  %v2064_v16 = vrot.slane %v706_v1, 9  ;;  %v756_v17 = vrot.slane %v387_v54, 5  ;;  %v982_v38 = vld [vmem:[#allocation2 + $0x18] sm:$0xf] }
  0x46   : > { %v483_v18 = vrot.slane %v482_v8, 4  ;;  %2291 = vmatprep.subr.msk.bf16.mxu0 %vm530_vm0, %v2586_v5  ;;  %v997_v26 = vrot.slane %v995_v48, 4  ;;  %v998_v28 = vshll.u32 %v978_v25, 16  ;;  %v1004_v29 = vshll.u32 %v2633_v6, 16  ;;  %v2653_v25 = vld [vmem:[#allocation2 + $0x1c] sm:$0x1] }
  0x47   : > { %v497_v30 = vrot.slane %v496_v13, 4  ;;  %v2645_v37 = vsel %vm2543_vm14, %v2063_v10, %v752_v11  ;;  %v1009_v49 = vshrl.u32 %v980_v12, 16  ;;  %v1012_v40 = vshll.u32 %v980_v12, 16  ;;  %v984_v48 = vld [vmem:[#allocation2 + $0x20] sm:$0xf] }
  0x48   : > { %v488_v42 = vsel %vm2505_vm13, %v483_v18, %v487_v9  ;;  %v2651_v5 = vsel %vm2543_vm14, %v2064_v16, %v756_v17  ;;  %v1000_v44 = vrot.slane %v998_v28, 5  ;;  %v1006_v45 = vrot.slane %v1004_v29, 5  ;;  %v2664_v1 = vld [vmem:[%s2973_s1 + $0x18] sm:$0xf]  ;;  %v986_v10 = vld [vmem:[#allocation2 + $0x28] sm:$0xf] }
  0x49   : > { %v502_v51 = vsel %vm2505_vm13, %v497_v30, %v501_v14  ;;  %v1011_v54 = vrot.slane %v1009_v49, 4  ;;  %v1014_v56 = vrot.slane %v1012_v40, 5  ;;  %v1018_v58 = vshll.u32 %v2640_v20, 16  ;;  %v204_v16 = vld [vmem:[#allocation2 + $0x40] sm:$0x1] }
  0x4a   : > { %v2044_v34 = vcombine.low %v488_v42, %v502_v51  ;;  %v1001_v59 = vor.u32 %v1000_v44, %v997_v26  ;;  %v1023_v33 = vshrl.u32 %v982_v38, 16  ;;  %v1026_v19 = vshll.u32 %v982_v38, 16 }
  0x4b   : > { %v1015_v61 = vor.u32 %v1014_v56, %v1011_v54  ;;  %v1020_v62 = vrot.slane %v1018_v58, 5  ;;  %v1032_v63 = vshll.u32 %v2653_v25, 16  ;;  %v1037_v0 = vshrl.u32 %v984_v48, 16  ;;  %v990_v54 = vld [vmem:[#allocation2 + $0x38] sm:$0xf] }
  0x4c   : > { %2201 = vmatmul.mubr.msk.bf16.vlgmr.msra.gmra.mxu1 %vm517_vm10, %v2044_v34  ;;  %2217 = vmatmul.mubr.msk.bf16.vlgmr.msra.gmra.mxu0 %vm517_vm10, %v2067_v46  ;;  %v1002_v2 = vrot.slane %v1001_v59, 4  ;;  %v1025_v36 = vrot.slane %v1023_v33, 4  ;;  %v1028_v8 = vrot.slane %v1026_v19, 5  ;;  %v1040_v9 = vshll.u32 %v984_v48, 16  ;;  %v2683_v46 = vld [vmem:[#allocation2 + $0x2c] sm:$0x1] }
  0x4d   : > { %2205 = vmatpush3.bf16.msra.mxu1 %v2484_v21  ;;  %2206 = vmatprep.mubr.msk.bf16.mxu1 %vm517_vm10, %v2049_v53  ;;  %v2050_v11 = vcombine.low %v2552_v50, %v2571_v57  ;;  %v1016_v12 = vrot.slane %v1015_v61, 4  ;;  %v1039_v13 = vrot.slane %v1037_v0, 4  ;;  %v1046_v14 = vshll.u32 %v2658_v60, 16  ;;  %v988_v50 = vld [vmem:[#allocation2 + $0x30] sm:$0xf] }
  0x4e   : > { %2290 = vmatprep.subr.msk.bf16.mxu1 %vm530_vm0, %v2569_v55  ;;  %2235 = vmatpush3.bf16.msra.mxu0 %v2599_v41  ;;  %v2051_v21 = vcombine.low %v2493_v31, %v2496_v27  ;;  %v2069_v24 = vcombine.low %v2645_v37, %v2651_v5  ;;  %v1029_v22 = vor.u32 %v1028_v8, %v1025_v36  ;;  %v1042_v53 = vrot.slane %v1040_v9, 5  ;;  %v2695_v57 = vld [vmem:[#allocation2 + $0x34] sm:$0x1]  ;;  %v240_v37 = vld [vmem:[%s2414_s19 + $0x1c] sm:$0xf] }
  0x4f   : > { %2220 = vmatprep.mubr.msk.bf16.mxu0 %vm517_vm10, %v2068_v3  ;;  %v1007_v55 = vsel %vm2505_vm13, %v1002_v2, %v1006_v45  ;;  %v1021_v31 = vsel %vm2505_vm13, %v1016_v12, %v1020_v62  ;;  %v1034_v27 = vrot.slane %v1032_v63, 5  ;;  %2293 = vmatprep.subr.msk.bf16.mxu0 %vm530_vm0, %v2664_v1  ;;  %v1051_v41 = vshrl.u32 %v986_v10, 16  ;;  %v2100_v3 = vld [vmem:[%s2973_s1 + $0x14] sm:$0xf]  ;;  %v230_v5 = vld [vmem:[#allocation2 + $0x44] sm:$0x1] }
  0x50   : > { %v1030_v17 = vrot.slane %v1029_v22, 4  ;;  %v1043_v18 = vor.u32 %v1042_v53, %v1039_v13  ;;  %v1048_v47 = vrot.slane %v1046_v14, 5  ;;  %v1054_v35 = vshll.u32 %v986_v10, 16  ;;  %v2717_v9 = vld [vmem:[#allocation2 + $0x3c] sm:$0x1] }
  0x51   : > { %v1053_v26 = vrot.slane %v1051_v41, 4  ;;  %v1060_v28 = vshll.u32 %v2683_v46, 16  ;;  %v1065_v29 = vshrl.u32 %v988_v50, 16  ;;  %v1068_v30 = vshll.u32 %v988_v50, 16  ;;  %v2308_v10 = vld [vmem:[#allocation2 + $0x8] ss:$8 sps:$4 sm:$0xff]  }
  0x52   : > { %v2084_v49 = vcombine.low %v1007_v55, %v1021_v31  ;;  %v1044_v40 = vrot.slane %v1043_v18, 4  ;;  %v1056_v38 = vrot.slane %v1054_v35, 5  ;;  %v1074_v42 = vshll.u32 %v2695_v57, 16  ;;  %v2728_v31 = vld [vmem:[#allocation2 + $0x18] sm:$0xe] }
  0x53   : > { %v1035_v44 = vsel %vm2505_vm13, %v1030_v17, %v1034_v27  ;;  %v1067_v45 = vrot.slane %v1065_v29, 4  ;;  %v1070_v48 = vrot.slane %v1068_v30, 5  ;;  %v205_v51 = vsel %vm2395_vm4, 0, %v204_v16  ;;  %v2733_v27 = vld [vmem:[%s2973_s1 + $0x20] sm:$0xf] }
  0x54   : > { %2207 = vmatmul.mubr.msk.bf16.vlgmr.msra.gmra.mxu1 %vm517_vm10, %v2050_v11  ;;  %2221 = vmatmul.mubr.msk.bf16.gmra.mxu0 %vm517_vm10, %v2069_v24  ;;  %v1049_v56 = vsel %vm2505_vm13, %v1044_v40, %v1048_v47  ;;  %v1057_v58 = vor.u32 %v1056_v38, %v1053_v26  ;;  %v1062_v34 = vrot.slane %v1060_v28, 5  ;;  %206 = vst [vmem:[#allocation2 + $0x40] sm:$0x1] %v205_v51  ;;  %v298_v59 = vshrl.u32 %v240_v37, 16  ;;  %v1208_v24 = vld [vmem:[#allocation2 + $0x8] sm:$0xe] }
  0x55   : > { %2225 = vmatpush3.bf16.msra.mxu1 %v2590_v15  ;;  %2210 = vmatprep.mubr.msk.bf16.mxu1 %vm517_vm10, %v2051_v21  ;;  %v1071_v33 = vor.u32 %v1070_v48, %v1067_v45  ;;  %v1076_v19 = vrot.slane %v1074_v42, 5  ;;  %v301_v61 = vshll.u32 %v240_v37, 16  ;;  %v231_v62 = vsel %vm2402_vm6, 0, %v230_v5  ;;  %v2741_v18 = vld [vmem:[#allocation2 + $0x20] sm:$0xe] }
  0x56   : > { %2236 = vmatprep.mubr.msk.bf16.mxu0 %vm517_vm10, %v2084_v49  ;;  %2292 = vmatprep.subr.msk.bf16.mxu1 %vm530_vm0, %v2100_v3  ;;  %v1058_v63 = vrot.slane %v1057_v58, 4  ;;  %v300_v0 = vrot.slane %v298_v59, 7  ;;  %232 = vst [vmem:[#allocation2 + $0x44] sm:$0x1] %v231_v62  ;;  %v1079_v2 = vshrl.u32 %v990_v54, 16  ;;  %v1082_v36 = vshll.u32 %v990_v54, 16 }
  0x57   : > { %v1072_v8 = vrot.slane %v1071_v33, 4  ;;  %v2052_v15 = vcombine.low %v2601_v43, %v2615_v52  ;;  %v2085_v11 = vcombine.low %v1035_v44, %v1049_v56  ;;  %v1410_v22 = vsel %vm530_vm0, %v2664_v1, 0  ;;  %v1209_v43 = vld [vmem:[#allocation2 + $0x10] sm:$0xe]  ;;  %v2309_v29 = vld [vmem:[#allocation2 + $0x18] ss:$8 sps:$4 sm:$0xff]  }
  0x58   : > { %v1063_v7 = vsel %vm2505_vm13, %v1058_v63, %v1062_v34  ;;  %v303_v12 = vor.u32 %v301_v61, %v300_v0  ;;  %v1081_v14 = vrot.slane %v1079_v2, 4  ;;  %v1084_v21 = vrot.slane %v1082_v36, 5  ;;  %v2310_v37 = vld [vmem:[#allocation2 + $0x28] ss:$8 sps:$4 sm:$0xff]   ;;  %v1214_v42 = vld [vmem:[#allocation2 + $0x38] sm:$0xe] }
  0x59   : > { %v1077_v13 = vsel %vm2505_vm13, %v1072_v8, %v1076_v19  ;;  %v304_v50 = vrot.slane %v300_v0, 4  ;;  %v1088_v55 = vshll.u32 %v2717_v9, 16  ;;  %v1291_v41 = vsel %vm530_vm0, %v2100_v3, 0  ;;  %v1212_v40 = vld [vmem:[#allocation2 + $0x28] sm:$0xe] }
  0x5a   : > { %v2086_v53 = vcombine.low %v1063_v7, %v1077_v13  ;;  %v2092_v16 = vrot.slane %v1208_v24, 9  ;;  %v1234_v17 = vrot.slane %v2633_v6, 5  ;;  %v1085_v35 = vor.u32 %v1084_v21, %v1081_v14  ;;  %v2118_v6 = vld [vmem:[%s2973_s1 + $0x1c] sm:$0xf]  ;;  %v1485_v5 = vld [vmem:[#allocation2 + $0x10] sm:$0xf] }
  0x5b   : > { %v365_v52 = vld [vmem:[#allocation2 + $0x40] sm:$0xf]  ;;  %v2093_v26 = vrot.slane %v1209_v43, 9  ;;  %v1238_v28 = vrot.slane %v2640_v20, 5  ;;  %v2748_v3 = vrot.slane %v1088_v55, 5  ;;  %v2094_v30 = vrot.slane %v2728_v31, 9 }
  0x5c   : > { %2211 = vmatmul.mubr.msk.bf16.gmra.mxu1 %vm517_vm10, %v2052_v15  ;;  %2237 = vmatmul.mubr.msk.bf16.vlgmr.msra.gmra.mxu0 %vm517_vm10, %v2085_v11  ;;  %v366_v1 = vsel %vm2440_vm7, %v303_v12, %v365_v52  ;;  %v1242_v20 = vrot.slane %v2653_v25, 5  ;;  %v2095_v49 = vrot.slane %v2741_v18, 9  ;;  %v2760_v38 = vsel %vm2543_vm14, %v2092_v16, %v1234_v17  ;;  %v1487_v25 = vld [vmem:[#allocation2 + $0x18] sm:$0xf]  ;;  %v2773_v61 = vld [vmem:[#allocation2 + $0x14] sm:$0x1] }
  0x5d   : > { %2226 = vmatprep.mubr.msk.bf16.mxu1 %vm517_vm10, %v2308_v10  ;;  %2255 = vmatpush3.bf16.msra.mxu0 %v1410_v22  ;;  %367 = vst [vmem:[#allocation2 + $0x40] sm:$0xf] %v366_v1  ;;  %v368_v47 = vld [vmem:[#allocation2 + $0x44] sm:$0x1]  ;;  %v2762_v44 = vrot.slane %v1085_v35, 4  ;;  %v1239_v45 = vsel %vm2543_vm14, %v2093_v26, %v1238_v28  ;;  %v1246_v48 = vrot.slane %v2658_v60, 5 }
  0x5e   : > { %2240 = vmatprep.mubr.msk.bf16.mxu0 %vm517_vm10, %v2086_v53  ;;  %v369_v32 = vsel %vm2395_vm4, %v304_v50, %v368_v47  ;;  %2295 = vmatprep.subr.msk.bf16.mxu0 %vm530_vm0, %v2733_v27  ;;  %v2768_v51 = vsel %vm530_vm0, %v2118_v6, 0  ;;  %v2096_v54 = vrot.slane %v1212_v40, 9  ;;  %v1250_v56 = vrot.slane %v2683_v46, 5  ;;  %v1489_v31 = vld [vmem:[#allocation2 + $0x20] sm:$0xf] }
  0x5f   : > { %370 = vst [vmem:[#allocation2 + $0x44] sm:$0x1] %v369_v32  ;;  %v2097_v58 = vrot.slane %v1213_v4, 9  ;;  %v1502_v34 = vshrl.u32 %v1485_v5, 16  ;;  %v1254_v59 = vrot.slane %v2695_v57, 5  ;;  %v2098_v33 = vrot.slane %v1214_v42, 9 }
  0x60   : > { %v1258_v19 = vrot.slane %v2717_v9, 5  ;;  %v1505_v62 = vshll.u32 %v1485_v5, 16  ;;  %v1516_v63 = vshrl.u32 %v1487_v25, 16  ;;  %v1519_v0 = vshll.u32 %v1487_v25, 16  ;;  %v2779_v9 = vld [vmem:[#allocation2 + $0x1c] sm:$0x1] }
  0x61   : > { %v2101_v57 = vcombine.low %v2760_v38, %v1239_v45  ;;  %v1504_v15 = vrot.slane %v1502_v34, 4  ;;  %v1511_v10 = vshll.u32 %v2773_v61, 16  ;;  %v1243_v43 = vsel %vm2543_vm14, %v2094_v30, %v1242_v20  ;;  %v1715_v18 = vld [vmem:[#allocation2 + $0x10] sm:$0xe]  ;;  %v1716_v32 = vld [vmem:[#allocation2 + $0x18] sm:$0xe] }
  0x62   : > { %v1507_v24 = vrot.slane %v1505_v62, 5  ;;  %v1518_v22 = vrot.slane %v1516_v63, 4  ;;  %v1521_v53 = vrot.slane %v1519_v0, 5  ;;  %v1525_v52 = vshll.u32 %v2779_v9, 16  ;;  %v2312_v35 = vld [vmem:[#allocation2 + $0x10] ss:$8 sps:$4 sm:$0xff]  }
  0x63   : > { %v1247_v1 = vsel %vm2543_vm14, %v2095_v49, %v1246_v48  ;;  %v1251_v16 = vsel %vm2543_vm14, %v2096_v54, %v1250_v56  ;;  %v1255_v26 = vsel %vm2543_vm14, %v2097_v58, %v1254_v59  ;;  %v2797_v28 = vsel %vm2543_vm14, %v2098_v33, %v1258_v19  ;;  %v2804_v30 = vld [vmem:[#allocation2 + $0x24] sm:$0x1]  ;;  %v1491_v42 = vld [vmem:[#allocation2 + $0x28] sm:$0xf]  ;;  %v1493_v34 = vld [vmem:[#allocation2 + $0x30] sm:$0xf] }
  0x64   : > { %2227 = vmatmul.mubr.msk.bf16.vlgmr.msra.gmra.mxu1 %vm517_vm10, %v2309_v29  ;;  %v992_v60 = vld [vmem:[#allocation2 + $0x40] sm:$0xf]  ;;  %v1508_v17 = vor.u32 %v1507_v24, %v1504_v15  ;;  %v1522_v29 = vor.u32 %v1521_v53, %v1518_v22  ;;  %v1533_v20 = vshll.u32 %v1489_v31, 16  ;;  %v1527_v40 = vrot.slane %v1525_v52, 5  ;;  %v2822_v0 = vld [vmem:[#allocation2 + $0x2c] sm:$0x1] }
  0x65   : > { %2245 = vmatpush3.bf16.msra.mxu1 %v1291_v41  ;;  %2230 = vmatprep.mubr.msk.bf16.mxu1 %vm517_vm10, %v2310_v37  ;;  %v1093_v2 = vshrl.u32 %v992_v60, 16  ;;  %v1096_v46 = vshll.u32 %v992_v60, 16  ;;  %v1215_v36 = vld [vmem:[#allocation2 + $0x40] sm:$0xe]  ;;  %v1091_v41 = vsel %vm2505_vm13, %v2762_v44, %v2748_v3  ;;  %v1530_v37 = vshrl.u32 %v1489_v31, 16 }
  0x66   : > { %v993_v8 = vld [vmem:[#allocation2 + $0x44] sm:$0x1]  ;;  %2294 = vmatprep.subr.msk.bf16.mxu1 %vm530_vm0, %v2118_v6  ;;  %v2099_v13 = vrot.slane %v1215_v36, 9  ;;  %v2311_v14 = vld [vmem:[#allocation2 + $0x38] ss:$8 sps:$4 sm:$0xff]   ;;  %v1513_v6 = vrot.slane %v1511_v10, 5  ;;  %v2102_v59 = vcombine.low %v1243_v43, %v1247_v1  ;;  %v2103_v62 = vcombine.low %v1251_v16, %v1255_v26 }
  0x67   : > { %v1095_v11 = vrot.slane %v1093_v2, 4  ;;  %v1098_v7 = vrot.slane %v1096_v46, 5  ;;  %v1102_v12 = vshll.u32 %v993_v8, 16  ;;  %v1262_v21 = vrot.slane %v993_v8, 5  ;;  %v2824_v46 = vld [vmem:[#allocation2 + $0x34] sm:$0x1] }
  0x68   : > { %v2127_v4 = vrot.slane %v1715_v18, 9  ;;  %v1741_v38 = vrot.slane %v2773_v61, 5  ;;  %v1509_v44 = vrot.slane %v1508_v17, 4  ;;  %v2128_v45 = vrot.slane %v1716_v32, 9  ;;  %v2313_v36 = vld [vmem:[#allocation2 + $0x20] ss:$8 sps:$4 sm:$0xff]  }
  0x69   : > { %v1099_v50 = vor.u32 %v1098_v7, %v1095_v11  ;;  %v1104_v55 = vrot.slane %v1102_v12, 5  ;;  %v2802_v3 = vsel %vm2543_vm14, %v2099_v13, %v1262_v21  ;;  %v1745_v48 = vrot.slane %v2779_v9, 5  ;;  %v1495_v9 = vld [vmem:[#allocation2 + $0x38] sm:$0xf]  ;;  %v2836_v12 = vld [vmem:[#allocation2 + $0x20] sm:$0xe] }
  0x6a   : > { %v1523_v25 = vrot.slane %v1522_v29, 4  ;;  %v1532_v54 = vrot.slane %v1530_v37, 4  ;;  %v1535_v56 = vrot.slane %v1533_v20, 5  ;;  %v1539_v58 = vshll.u32 %v2804_v30, 16  ;;  %v2838_v13 = vld [vmem:[#allocation2 + $0x3c] sm:$0x1] }
  0x6b   : > { %v1100_v47 = vrot.slane %v1099_v50, 4  ;;  %v1798_v33 = vsel %vm530_vm0, %v2733_v27, 0  ;;  %v1544_v19 = vshrl.u32 %v1491_v42, 16  ;;  %v1547_v61 = vshll.u32 %v1491_v42, 16  ;;  %v2314_v21 = vld [vmem:[#allocation2 + $0x30] ss:$8 sps:$4 sm:$0xff]  }
  0x6c   : > { %2231 = vmatmul.mubr.msk.bf16.gmra.mxu1 %vm517_vm10, %v2311_v14  ;;  %v2104_v60 = vcombine.low %v2797_v28, %v2802_v3  ;;  %v2820_v63 = vsel %vm2543_vm14, %v2127_v4, %v1741_v38  ;;  %v1536_v2 = vor.u32 %v1535_v56, %v1532_v54  ;;  %v2828_v27 = vsel %vm2543_vm14, %v2128_v45, %v1745_v48  ;;  %v1499_v4 = vld [vmem:[#allocation2 + $0x48] sm:$0xf] }
  0x6d   : > { %v1105_v49 = vsel %vm2505_vm13, %v1100_v47, %v1104_v55  ;;  %2246 = vmatprep.mubr.msk.bf16.mxu1 %vm517_vm10, %v2101_v57  ;;  %v1546_v8 = vrot.slane %v1544_v19, 4  ;;  %v1549_v57 = vrot.slane %v1547_v61, 5  ;;  %v1558_v15 = vshrl.u32 %v1493_v34, 16  ;;  %v1718_v55 = vld [vmem:[#allocation2 + $0x28] sm:$0xe] }
  0x6e   : > { %v2087_v5 = vcombine.low %v1091_v41, %v1105_v49  ;;  %v1514_v10 = vsel %vm2505_vm13, %v1509_v44, %v1513_v6  ;;  %v1528_v11 = vsel %vm2505_vm13, %v1523_v25, %v1527_v40  ;;  %v2834_v7 = vrot.slane %v1539_v58, 5  ;;  %v1719_v47 = vld [vmem:[#allocation2 + $0x30] sm:$0xe]  ;;  %v1497_v6 = vld [vmem:[#allocation2 + $0x40] sm:$0xf] }
  0x6f   : > { %v1561_v14 = vshll.u32 %v1493_v34, 16  ;;  %v2841_v24 = vrot.slane %v1536_v2, 4  ;;  %v1550_v22 = vor.u32 %v1549_v57, %v1546_v8  ;;  %v1553_v53 = vshll.u32 %v2822_v0, 16  ;;  %v1498_v44 = vld [vmem:[#allocation2 + $0x44] sm:$0x1] }
  0x70   : > { %2241 = vmatmul.mubr.msk.bf16.gmra.mxu0 %vm517_vm10, %v2087_v5  ;;  %v1560_v50 = vrot.slane %v1558_v15, 4  ;;  %v1567_v52 = vshll.u32 %v2824_v46, 16  ;;  %v1572_v31 = vshrl.u32 %v1495_v9, 16  ;;  %v1575_v41 = vshll.u32 %v1495_v9, 16  ;;  %v1500_v25 = vld [vmem:[#allocation2 + $0x4c] sm:$0x1] }
  0x71   : > { %2256 = vmatprep.mubr.msk.bf16.mxu0 %vm517_vm10, %v2312_v35  ;;  %v1563_v43 = vrot.slane %v1561_v14, 5  ;;  %v2119_v1 = vcombine.low %v1514_v10, %v1528_v11  ;;  %v2136_v16 = vcombine.low %v2820_v63, %v2828_v27  ;;  %v2129_v17 = vrot.slane %v2836_v12, 9  ;;  %v1720_v35 = vld [vmem:[#allocation2 + $0x38] sm:$0xe] }
  0x72   : > { %v1581_v18 = vshll.u32 %v2838_v13, 16  ;;  %v1574_v29 = vrot.slane %v1572_v31, 4  ;;  %v1577_v32 = vrot.slane %v1575_v41, 5  ;;  %v1542_v37 = vsel %vm2505_vm13, %v2841_v24, %v2834_v7  ;;  %v1721_v24 = vld [vmem:[#allocation2 + $0x40] sm:$0xe] }
  0x73   : > { %v1564_v26 = vor.u32 %v1563_v43, %v1560_v50  ;;  %v1555_v20 = vrot.slane %v1553_v53, 5  ;;  %v2130_v49 = vrot.slane %v1718_v55, 9  ;;  %v1753_v40 = vrot.slane %v2822_v0, 5  ;;  %v1722_v53 = vld [vmem:[#allocation2 + $0x48] sm:$0xe] }
  0x74   : > { %2247 = vmatmul.mubr.msk.bf16.vlgmr.msra.gmra.mxu1 %vm517_vm10, %v2102_v59  ;;  %v1569_v38 = vrot.slane %v1567_v52, 5  ;;  %v1578_v42 = vor.u32 %v1577_v32, %v1574_v29  ;;  %v2131_v5 = vrot.slane %v1719_v47, 9  ;;  %v1583_v48 = vrot.slane %v1581_v18, 5 }
  0x75   : > { %2265 = vmatpush3.bf16.msra.mxu1 %v2768_v51  ;;  %2250 = vmatprep.mubr.msk.bf16.mxu1 %vm517_vm10, %v2103_v62  ;;  %v1749_v51 = vrot.slane %v2804_v30, 5  ;;  %v1551_v30 = vrot.slane %v1550_v22, 4  ;;  %v1565_v45 = vrot.slane %v1564_v26, 4  ;;  %v1586_v54 = vshrl.u32 %v1497_v6, 16 }
  0x76   : > { %v1589_v56 = vshll.u32 %v1497_v6, 16  ;;  %v1579_v58 = vrot.slane %v1578_v42, 4  ;;  %v1757_v34 = vrot.slane %v2824_v46, 5  ;;  %v2132_v59 = vrot.slane %v1720_v35, 9 }
  0x77   : > { %v1600_v19 = vshrl.u32 %v1499_v4, 16  ;;  %v1761_v61 = vrot.slane %v2838_v13, 5  ;;  %v1588_v62 = vrot.slane %v1586_v54, 4  ;;  %v1603_v0 = vshll.u32 %v1499_v4, 16 }
  0x78   : > { %2257 = vmatmul.mubr.msk.bf16.vlgmr.msra.gmra.mxu0 %vm517_vm10, %v2313_v36  ;;  %v1591_v63 = vrot.slane %v1589_v56, 5  ;;  %v1556_v2 = vsel %vm2505_vm13, %v1551_v30, %v1555_v20  ;;  %v1595_v36 = vshll.u32 %v1498_v44, 16  ;;  %v1609_v27 = vshll.u32 %v1500_v25, 16 }
  0x79   : > { %2275 = vmatpush3.bf16.msra.mxu0 %v1798_v33  ;;  %2260 = vmatprep.mubr.msk.bf16.mxu0 %vm517_vm10, %v2314_v21  ;;  %v2315_v33 = vld [vmem:[#allocation2 + $0x40] ss:$8 sps:$4 sm:$0xff]   ;;  %v1602_v46 = vrot.slane %v1600_v19, 4  ;;  %v1570_v8 = vsel %vm2505_vm13, %v1565_v45, %v1569_v38  ;;  %v1584_v28 = vsel %vm2505_vm13, %v1579_v58, %v1583_v48  ;;  %v1750_v57 = vsel %vm2543_vm14, %v2129_v17, %v1749_v51 }
  0x7a   : > { %v1592_v3 = vor.u32 %v1591_v63, %v1588_v62  ;;  %v1754_v9 = vsel %vm2543_vm14, %v2130_v49, %v1753_v40  ;;  %v2120_v15 = vcombine.low %v1542_v37, %v1556_v2  ;;  %v1758_v10 = vsel %vm2543_vm14, %v2131_v5, %v1757_v34 }
  0x7b   : > { %v1762_v11 = vsel %vm2543_vm14, %v2132_v59, %v1761_v61  ;;  %v2121_v12 = vcombine.low %v1570_v8, %v1584_v28  ;;  %v1597_v14 = vrot.slane %v1595_v36, 5  ;;  %v1611_v21 = vrot.slane %v1609_v27, 5 }
  0x7c   : > { %2251 = vmatmul.mubr.msk.bf16.gmra.mxu1 %vm517_vm10, %v2104_v60  ;;  %v1605_v60 = vrot.slane %v1603_v0, 5  ;;  %v1593_v13 = vrot.slane %v1592_v3, 4  ;;  %v2137_v50 = vcombine.low %v1750_v57, %v1754_v9  ;;  %v2138_v55 = vcombine.low %v1758_v10, %v1762_v11 }
  0x7d   : > { %2266 = vmatprep.mubr.msk.bf16.mxu1 %vm517_vm10, %v2119_v1  ;;  %v2133_v43 = vrot.slane %v1721_v24, 9  ;;  %v1765_v52 = vrot.slane %v1498_v44, 5  ;;  %v2134_v1 = vrot.slane %v1722_v53, 9 }
  0x7e   : > { %v1606_v7 = vor.u32 %v1605_v60, %v1602_v46  ;;  %v1598_v31 = vsel %vm2505_vm13, %v1593_v13, %v1597_v14 }
  0x7f   : > { %v1766_v18 = vsel %vm2543_vm14, %v2133_v43, %v1765_v52 }
  0x80   : > { %2261 = vmatmul.mubr.msk.bf16.gmra.mxu0 %vm517_vm10, %v2315_v33  ;;  %v1607_v22 = vrot.slane %v1606_v7, 4 }
  0x81   : > { %2276 = vmatprep.mubr.msk.bf16.mxu0 %vm517_vm10, %v2136_v16  ;;  %v1769_v16 = vrot.slane %v1500_v25, 5 }
  0x82   : > { %v1612_v41 = vsel %vm2505_vm13, %v1607_v22, %v1611_v21 }
  0x83   : > { %v2122_v17 = vcombine.low %v1598_v31, %v1612_v41  ;;  %v1770_v47 = vsel %vm2543_vm14, %v2134_v1, %v1769_v16 }
  0x84   : > { %2267 = vmatmul.mubr.msk.bf16.vlgmr.msra.gmra.mxu1 %vm517_vm10, %v2120_v15  ;;  %v2139_v35 = vcombine.low %v1766_v18, %v1770_v47 }
  0x85   : > { %2270 = vmatprep.mubr.msk.bf16.mxu1 %vm517_vm10, %v2121_v12 }
  0x88   : > { %2277 = vmatmul.mubr.msk.bf16.vlgmr.msra.gmra.mxu0 %vm517_vm10, %v2137_v50 }
  0x89   : > { %2280 = vmatprep.mubr.msk.bf16.mxu0 %vm517_vm10, %v2138_v55 }
  0x8c   : > { %2271 = vmatmul.mubr.msk.bf16.gmra.mxu1 %vm517_vm10, %v2122_v17 }
  0x90   : > { %2281 = vmatmul.mubr.msk.bf16.gmra.mxu0 %vm517_vm10, %v2139_v35 }
 0x104   : > { %v2198_v39 = vpop.f32.mrf.mxu0 }
 0x106   : > { %v568_v51 = vpop.f32.mrf.mxu0 }
 0x108   : > { %v2199_v26 = vpop.f32.mrf.mxu0 }
 0x10a   : > { %v571_v29 = vpop.f32.mrf.mxu0 }
 0x10c   : > { %v2202_v32 = vpop.f32.mrf.mxu1  ;;  %v2218_v6 = vpop.f32.mrf.mxu0 }
 0x10e   : > { %v584_v37 = vpop.f32.mrf.mxu1  ;;  %v821_v20 = vpop.f32.mrf.mxu0 }
 0x110   : > { %v2203_v49 = vpop.f32.mrf.mxu1  ;;  %v2219_v40 = vpop.f32.mrf.mxu0 }
 0x112   : > { %v2896_v4 = vpop.f32.mrf.mxu1  ;;  %v824_v30 = vpop.f32.mrf.mxu0 }
 0x114   : > { %v2208_v23 = vpop.f32.mrf.mxu1  ;;  %v2222_v38 = vpop.f32.mrf.mxu0 }
 0x115   : > { %v677_v60 = vadd.f32 %v2208_v23, %v2198_v39 }
 0x116   : > { %v668_v42 = vpop.f32.mrf.mxu1  ;;  %v837_v5 = vpop.f32.mrf.mxu0 }
 0x117   : > { %v669_v15 = vadd.f32 %v668_v42, %v568_v51  ;;  %v854_v7 = vadd.f32 %v2218_v6, %v677_v60 }
 0x118   : > { %v2209_v44 = vpop.f32.mrf.mxu1  ;;  %v2898_v45 = vpop.f32.mrf.mxu0 }
 0x119   : > { %v680_v12 = vadd.f32 %v2209_v44, %v2199_v26  ;;  %v852_v21 = vadd.f32 %v821_v20, %v669_v15 }
 0x11a   : > { %v671_v48 = vpop.f32.mrf.mxu1  ;;  %v2900_v54 = vpop.f32.mrf.mxu0 }
 0x11b   : > { %v672_v24 = vadd.f32 %v671_v48, %v571_v29  ;;  %v855_v55 = vadd.f32 %v2219_v40, %v680_v12 }
 0x11c   : > { %v2212_v25 = vpop.f32.mrf.mxu1  ;;  %v2238_v34 = vpop.f32.mrf.mxu0 }
 0x11d   : > { %v693_v52 = vadd.f32 %v2212_v25, %v2202_v32  ;;  %v853_v1 = vadd.f32 %v824_v30, %v672_v24 }
 0x11e   : > { %v684_v56 = vpop.f32.mrf.mxu1  ;;  %v1169_v33 = vpop.f32.mrf.mxu0 }
 0x11f   : > { %v685_v18 = vadd.f32 %v684_v56, %v584_v37  ;;  %v858_v6 = vadd.f32 %v2222_v38, %v693_v52 }
 0x120   : > { %v2213_v58 = vpop.f32.mrf.mxu1  ;;  %v2239_v63 = vpop.f32.mrf.mxu0 }
 0x121   : > { %v696_v20 = vadd.f32 %v2213_v58, %v2203_v49  ;;  %v856_v40 = vadd.f32 %v837_v5, %v685_v18 }
 0x122   : > { %v687_v59 = vpop.f32.mrf.mxu1  ;;  %v1172_v2 = vpop.f32.mrf.mxu0 }
 0x123   : > { %v688_v32 = vadd.f32 %v687_v59, %v2896_v4  ;;  %v859_v56 = vadd.f32 %v2898_v45, %v696_v20  ;;  %v2144_v45 = vld [vmem:[%s2974_s2] ss:$0 sm:$0xff] }
 0x124   : > { %v2228_v19 = vpop.f32.mrf.mxu1 }
 0x125   : > { %v972_v22 = vadd.f32 %v2228_v19, %v854_v7 }
 0x126   : > { %v939_v61 = vpop.f32.mrf.mxu1 }
 0x127   : > { %v970_v43 = vadd.f32 %v939_v61, %v852_v21  ;;  %v1202_v16 = vadd.f32 %v2238_v34, %v972_v22 }
 0x128   : > { %v2229_v62 = vpop.f32.mrf.mxu1 }
 0x129   : > { %v973_v17 = vadd.f32 %v2229_v62, %v855_v55  ;;  %v1200_v39 = vadd.f32 %v1169_v33, %v970_v43 }
 0x12a   : > { %v942_v0 = vpop.f32.mrf.mxu1 }
 0x12b   : > { %v971_v51 = vadd.f32 %v942_v0, %v853_v1  ;;  %v1203_v42 = vadd.f32 %v2239_v63, %v973_v17  ;;  %v857_v63 = vadd.f32 %v2900_v54, %v688_v32 }
 0x12c   : > { %v2232_v36 = vpop.f32.mrf.mxu1 }
 0x12d   : > { %v976_v48 = vadd.f32 %v2232_v36, %v858_v6  ;;  %v1201_v34 = vadd.f32 %v1172_v2, %v971_v51 }
 0x12e   : > { %v955_v46 = vpop.f32.mrf.mxu1 }
 0x12f   : > { %v974_v33 = vadd.f32 %v955_v46, %v856_v40 }
 0x130   : > { %v2242_v27 = vpop.f32.mrf.mxu0  ;;  %v2233_v8 = vpop.f32.mrf.mxu1 }
 0x131   : > { %v1206_v0 = vadd.f32 %v2242_v27, %v976_v48  ;;  %v977_v5 = vadd.f32 %v2233_v8, %v859_v56 }
 0x132   : > { %v1185_v28 = vpop.f32.mrf.mxu0  ;;  %v958_v3 = vpop.f32.mrf.mxu1 }
 0x133   : > { %v975_v2 = vadd.f32 %v958_v3, %v857_v63 }
 0x134   : > { %v2902_v57 = vpop.f32.mrf.mxu0  ;;  %v2248_v9 = vpop.f32.mrf.mxu1 }
 0x135   : > { %v1360_v26 = vadd.f32 %v2248_v9, %v1202_v16  ;;  %v1204_v9 = vadd.f32 %v1185_v28, %v974_v33  ;;  %v1207_v54 = vadd.f32 %v2902_v57, %v977_v5 }
 0x136   : > { %v2904_v10 = vpop.f32.mrf.mxu0  ;;  %v1327_v11 = vpop.f32.mrf.mxu1 }
 0x137   : > { %v1358_v44 = vadd.f32 %v1327_v11, %v1200_v39  ;;  %v1205_v3 = vadd.f32 %v2904_v10, %v975_v2 }
 0x138   : > { %v2258_v13 = vpop.f32.mrf.mxu0  ;;  %v2249_v14 = vpop.f32.mrf.mxu1 }
 0x139   : > { %v1479_v19 = vadd.f32 %v2258_v13, %v1360_v26  ;;  %v1361_v37 = vadd.f32 %v2249_v14, %v1203_v42 }
 0x13a   : > { %v1446_v53 = vpop.f32.mrf.mxu0  ;;  %v1330_v50 = vpop.f32.mrf.mxu1 }
 0x13b   : > { %v1477_v38 = vadd.f32 %v1446_v53, %v1358_v44  ;;  %v1359_v49 = vadd.f32 %v1330_v50, %v1201_v34 }
 0x13c   : > { %v2259_v31 = vpop.f32.mrf.mxu0  ;;  %v2252_v41 = vpop.f32.mrf.mxu1 }
 0x13d   : > { %v1480_v59 = vadd.f32 %v2259_v31, %v1361_v37  ;;  %v1364_v15 = vadd.f32 %v2252_v41, %v1206_v0 }
 0x13e   : > { %v1449_v47 = vpop.f32.mrf.mxu0  ;;  %v1343_v35 = vpop.f32.mrf.mxu1 }
 0x13f   : > { %v1478_v7 = vadd.f32 %v1449_v47, %v1359_v49  ;;  %v1362_v27 = vadd.f32 %v1343_v35, %v1204_v9 }
 0x140   : > { %v2262_v29 = vpop.f32.mrf.mxu0  ;;  %v2253_v23 = vpop.f32.mrf.mxu1 }
 0x141   : > { %v1483_v22 = vadd.f32 %v2262_v29, %v1364_v15  ;;  %v1365_v53 = vadd.f32 %v2253_v23, %v1207_v54 }
 0x142   : > { %v1462_v25 = vpop.f32.mrf.mxu0  ;;  %v1346_v30 = vpop.f32.mrf.mxu1 }
 0x143   : > { %v1481_v41 = vadd.f32 %v1462_v25, %v1362_v27  ;;  %v1363_v57 = vadd.f32 %v1346_v30, %v1205_v3 }
 0x144   : > { %v2263_v61 = vpop.f32.mrf.mxu0  ;;  %v2268_v62 = vpop.f32.mrf.mxu1 }
 0x145   : > { %v1709_v58 = vadd.f32 %v2268_v62, %v1479_v19  ;;  %v1484_v39 = vadd.f32 %v2263_v61, %v1365_v53 }
 0x146   : > { %v1465_v60 = vpop.f32.mrf.mxu0  ;;  %v1676_v4 = vpop.f32.mrf.mxu1 }
 0x147   : > { %v1707_v36 = vadd.f32 %v1676_v4, %v1477_v38  ;;  %v1482_v42 = vadd.f32 %v1465_v60, %v1363_v57 }
 0x148   : > { %v2278_v11 = vpop.f32.mrf.mxu0  ;;  %v2269_v46 = vpop.f32.mrf.mxu1 }
 0x149   : > { %v1867_v12 = vadd.f32 %v2278_v11, %v1709_v58  ;;  %v1710_v13 = vadd.f32 %v2269_v46, %v1480_v59 }
 0x14a   : > { %v1834_v8 = vpop.f32.mrf.mxu0  ;;  %v1679_v14 = vpop.f32.mrf.mxu1 }
 0x14b   : > { %v2913_v21 = vadd.f32 %v2144_v45, %v1867_v12  ;;  %v1865_v24 = vadd.f32 %v1834_v8, %v1707_v36  ;;  %v1708_v28 = vadd.f32 %v1679_v14, %v1478_v7 }
 0x14c   : > { %v2279_v50 = vpop.f32.mrf.mxu0  ;;  %v2272_v55 = vpop.f32.mrf.mxu1 }
 0x14d   : > { %v1890_v43 = vmin.f32 %v2913_v21, 20.0  ;;  %v2917_v52 = vadd.f32 %v2144_v45, %v1865_v24  ;;  %v1868_v31 = vadd.f32 %v2279_v50, %v1710_v13  ;;  %v1713_v16 = vadd.f32 %v2272_v55, %v1483_v22 }
 0x14e   : > { %v1837_v1 = vpop.f32.mrf.mxu0  ;;  %v1692_v17 = vpop.f32.mrf.mxu1 }
 0x14f   : > { %v1900_v18 = vmul.f32 1.442695, %v1890_v43  ;;  %v1888_v47 = vmin.f32 %v2917_v52, 20.0  ;;  %v2920_v35 = vadd.f32 %v2144_v45, %v1868_v31  ;;  %v1866_v10 = vadd.f32 %v1837_v1, %v1708_v28 }
 0x150   : > { %v2282_v51 = vpop.f32.mrf.mxu0  ;;  %v1711_v26 = vadd.f32 %v1692_v17, %v1481_v41  ;;  %v2273_v6 = vpop.f32.mrf.mxu1 }
 0x151   : > { %2316 = vpow2.f32 %v1900_v18  ;;  %v1896_v20 = vmul.f32 1.442695, %v1888_v47  ;;  %v1891_v29 = vmin.f32 %v2920_v35, 20.0  ;;  %v2923_v23 = vadd.f32 %v2144_v45, %v1866_v10 }
 0x152   : > { %v1871_v44 = vadd.f32 %v2282_v51, %v1713_v16  ;;  %v1850_v40 = vpop.f32.mrf.mxu0  ;;  %v1714_v32 = vadd.f32 %v2273_v6, %v1484_v39  ;;  %v1695_v48 = vpop.f32.mrf.mxu1 }
 0x153   : > { %2318 = vpow2.f32 %v1896_v20  ;;  %v1902_v25 = vmul.f32 1.442695, %v1891_v29  ;;  %v1889_v30 = vmin.f32 %v2923_v23, 20.0  ;;  %v1869_v34 = vadd.f32 %v1850_v40, %v1711_v26 }
 0x154   : > { %v2926_v19 = vadd.f32 %v2144_v45, %v1871_v44  ;;  %v2283_v37 = vpop.f32.mrf.mxu0  ;;  %v1712_v56 = vadd.f32 %v1695_v48, %v1482_v42 }
 0x155   : > { %2320 = vpow2.f32 %v1902_v25  ;;  %v1898_v33 = vmul.f32 1.442695, %v1889_v30  ;;  %v2928_v61 = vadd.f32 %v2144_v45, %v1869_v34  ;;  %v1872_v62 = vadd.f32 %v2283_v37, %v1714_v32 }
 0x156   : > { %v1894_v38 = vmin.f32 %v2926_v19, 20.0  ;;  %v1853_v49 = vpop.f32.mrf.mxu0 }
 0x157   : > { %2322 = vpow2.f32 %v1898_v33  ;;  %v1892_v58 = vmin.f32 %v2928_v61, 20.0  ;;  %v2932_v63 = vadd.f32 %v2144_v45, %v1872_v62  ;;  %v1870_v0 = vadd.f32 %v1853_v49, %v1712_v56 }
 0x158   : > { %v1908_v5 = vmul.f32 1.442695, %v1894_v38 }
 0x159   : > { %v1904_v60 = vmul.f32 1.442695, %v1892_v58  ;;  %v1895_v4 = vmin.f32 %v2932_v63, 20.0  ;;  %v2935_v59 = vadd.f32 %v2144_v45, %v1870_v0 }
 0x15a   : > { %2324 = vpow2.f32 %v1908_v5 }
 0x15b   : > { %2326 = vpow2.f32 %v1904_v60  ;;  %v1910_v36 = vmul.f32 1.442695, %v1895_v4  ;;  %v1893_v9 = vmin.f32 %v2935_v59, 20.0 }
 0x15d   : > { %2328 = vpow2.f32 %v1910_v36  ;;  %v1906_v2 = vmul.f32 1.442695, %v1893_v9 }
 0x15e   : > { %v2317_v15 = vpop.eup %2316 }
 0x15f   : > { %v1914_v11 = vadd.f32 2.0, %v2317_v15  ;;  %2330 = vpow2.f32 %v1906_v2 }
 0x160   : > { %v2319_v46 = vpop.eup %2318 }
 0x161   : > { %v1922_v7 = vmul.f32 %v2317_v15, %v1914_v11  ;;  %v1912_v12 = vadd.f32 2.0, %v2319_v46 }
 0x162   : > { %v2321_v13 = vpop.eup %2320 }
 0x163   : > { %v1930_v54 = vadd.f32 2.0, %v1922_v7  ;;  %v1920_v27 = vmul.f32 %v2319_v46, %v1912_v12  ;;  %v1915_v8 = vadd.f32 2.0, %v2321_v13 }
 0x164   : > { %v2323_v14 = vpop.eup %2322 }
 0x165   : > { %2332 = vrcp.f32 %v1930_v54  ;;  %v1928_v45 = vadd.f32 2.0, %v1920_v27  ;;  %v1923_v24 = vmul.f32 %v2321_v13, %v1915_v8  ;;  %v1913_v28 = vadd.f32 2.0, %v2323_v14 }
 0x167   : > { %v2325_v3 = vpop.eup %2324  ;;  %2334 = vrcp.f32 %v1928_v45  ;;  %v1931_v22 = vadd.f32 2.0, %v1923_v24  ;;  %v1921_v53 = vmul.f32 %v2323_v14, %v1913_v28 }
 0x168   : > { %v2327_v50 = vpop.eup %2326  ;;  %v1918_v55 = vadd.f32 2.0, %v2325_v3 }
 0x169   : > { %2336 = vrcp.f32 %v1931_v22  ;;  %v1929_v43 = vadd.f32 2.0, %v1921_v53  ;;  %v1916_v31 = vadd.f32 2.0, %v2327_v50 }
 0x16a   : > { %v2329_v41 = vpop.eup %2328  ;;  %v1926_v57 = vmul.f32 %v2325_v3, %v1918_v55 }
 0x16b   : > { %2338 = vrcp.f32 %v1929_v43  ;;  %v1924_v1 = vmul.f32 %v2327_v50, %v1916_v31  ;;  %v1919_v16 = vadd.f32 2.0, %v2329_v41 }
 0x16c   : > { %v2331_v17 = vpop.eup %2330  ;;  %v1934_v18 = vadd.f32 2.0, %v1926_v57 }
 0x16d   : > { %v1932_v47 = vadd.f32 2.0, %v1924_v1  ;;  %v1927_v10 = vmul.f32 %v2329_v41, %v1919_v16  ;;  %v1917_v39 = vadd.f32 2.0, %v2331_v17 }
 0x16e   : > { %2340 = vrcp.f32 %v1934_v18 }
 0x16f   : > { %2342 = vrcp.f32 %v1932_v47  ;;  %v1935_v51 = vadd.f32 2.0, %v1927_v10  ;;  %v1925_v26 = vmul.f32 %v2331_v17, %v1917_v39 }
 0x171   : > { %2344 = vrcp.f32 %v1935_v51  ;;  %v1933_v6 = vadd.f32 2.0, %v1925_v26 }
 0x172   : > { %v2333_v20 = vpop.eup %2332 }
 0x173   : > { %v1946_v29 = vmul.f32 %v2333_v20, %v1922_v7  ;;  %2346 = vrcp.f32 %v1933_v6 }
 0x174   : > { %v2335_v42 = vpop.eup %2334 }
 0x175   : > { %v1954_v44 = vmul.f32 %v1946_v29, %v2913_v21  ;;  %v1944_v40 = vmul.f32 %v2335_v42, %v1920_v27 }
 0x176   : > { %v2337_v32 = vpop.eup %2336 }
 0x177   : > { %v1962_v48 = vpack.c.bf16 %v1954_v44, %v1954_v44  ;;  %v1952_v25 = vmul.f32 %v1944_v40, %v2917_v52  ;;  %v1947_v30 = vmul.f32 %v2337_v32, %v1923_v24 }
 0x178   : > { %v2339_v34 = vpop.eup %2338 }
 0x179   : > { %1970 = vst.msk [vmem:[%s2944_s15 + $0x8] sm:$0xf] %vm172_vm1, %v1962_v48  ;;  %v1960_v21 = vpack.c.bf16 %v1952_v25, %v1952_v25  ;;  %v1955_v37 = vmul.f32 %v1947_v30, %v2920_v35  ;;  %v1945_v56 = vmul.f32 %v2339_v34, %v1921_v53 }
 0x17b   : > { %v2341_v33 = vpop.eup %2340  ;;  %1968 = vst.msk [vmem:[%s2944_s15] sm:$0xf] %vm172_vm1, %v1960_v21  ;;  %v1963_v62 = vpack.c.bf16 %v1955_v37, %v1955_v37  ;;  %v1953_v38 = vmul.f32 %v1945_v56, %v2923_v23 }
 0x17c   : > { %v2343_v49 = vpop.eup %2342  ;;  %v1950_v58 = vmul.f32 %v2341_v33, %v1926_v57 }
 0x17d   : > { %1971 = vst.msk [vmem:[%s2944_s15 + $0xc] sm:$0xf] %vm172_vm1, %v1963_v62  ;;  %v1961_v52 = vpack.c.bf16 %v1953_v38, %v1953_v38  ;;  %v1948_v0 = vmul.f32 %v2343_v49, %v1924_v1 }
 0x17e   : > { %v2345_v5 = vpop.eup %2344  ;;  %v1958_v35 = vmul.f32 %v1950_v58, %v2926_v19 }
 0x17f   : > { %1969 = vst.msk [vmem:[%s2944_s15 + $0x4] sm:$0xf] %vm172_vm1, %v1961_v52  ;;  %v1956_v60 = vmul.f32 %v1948_v0, %v2928_v61  ;;  %v1951_v4 = vmul.f32 %v2345_v5, %v1927_v10 }
 0x180   : > { %v2347_v36 = vpop.eup %2346  ;;  %v1966_v23 = vpack.c.bf16 %v1958_v35, %v1958_v35 }
 0x181   : > { %v1964_v9 = vpack.c.bf16 %v1956_v60, %v1956_v60  ;;  %v1959_v2 = vmul.f32 %v1951_v4, %v2932_v63  ;;  %v1949_v15 = vmul.f32 %v2347_v36, %v1925_v26 }
 0x182   : > { %1974 = vst.msk [vmem:[%s2944_s15 + $0x18] sm:$0xf] %vm172_vm1, %v1966_v23 }
 0x183   : > { %1972 = vst.msk [vmem:[%s2944_s15 + $0x10] sm:$0xf] %vm172_vm1, %v1964_v9  ;;  %v1967_v11 = vpack.c.bf16 %v1959_v2, %v1959_v2  ;;  %v1957_v46 = vmul.f32 %v1949_v15, %v2935_v59 }
 0x185   : > { %1975 = vst.msk [vmem:[%s2944_s15 + $0x1c] sm:$0xf] %vm172_vm1, %v1967_v11  ;;  %v1965_v19 = vpack.c.bf16 %v1957_v46, %v1957_v46 }
 0x187   : > { %1973 = vst.msk [vmem:[%s2944_s15 + $0x14] sm:$0xf] %vm172_vm1, %v1965_v19 }
 0x188 PF: > { %s13_s12 = sadd.s32 1, %s2354_s12  }
 0x189   : > { %p10_p4 = scmp.ge.s32.totalorder %s13_s12, 4  }
 0x18b   :  { %12 = sbr.rel (!%p10_p4) target bundleno = 1 (0x1), region = 73 }

// kernel: downsample_forward.9
= control target key start
LH: loop header
LB: loop body
LE: loop exit
PB: predicated region body
PF: predicated region fallthrough
CT: control target
= control target key end

     0   :  { %s779_s18 = smov 0   ;;  %s860_s0 = inlined_call_operand.vmem [shape: bf16[2,8,8,8], index: 0, kind: input, shape index: {}]   ;;  %s861_s1 = inlined_call_operand.vmem [shape: bf16[2,8,8,8], index: 1, kind: input, shape index: {}]   ;;  %s862_s2 = inlined_call_operand.vmem [shape: bf16[8,8], index: 2, kind: input, shape index: {}]   ;;  %s863_s3 = inlined_call_operand.vmem [shape: bf16[8,8], index: 3, kind: input, shape index: {}]   ;;  %s864_s4 = inlined_call_operand.vmem [shape: f32[1,8], index: 4, kind: input, shape index: {}]   ;;  %s865_s5 = inlined_call_operand.vmem [shape: f32[2,8,8,8], index: 5, kind: output, shape index: {}]  }
   0x1 LB: > { %s628_s19 = sadd.s32 4294967295, %s747_s18   ;;  %p632_p0 = scmp.ge.s32.totalorder %s747_s18, 1  ;;  %s747_s18 = sphi %s779_s18, %s15_s18  }
   0x2   : > { %p197_p1 = scmp.lt.s32.totalorder %s747_s18, 3 }
   0x4   : > { %p198_p2 = pnand %p632_p0, %p197_p1 }
   0x5   : > { %p230_p3 = scmp.lt.s32.totalorder (!%p198_p2), %s628_s19, 1 }
   0x6   : > { %201 = sbr.rel (%p198_p2) target bundleno = 271 (0x10f), region = 40 }
   0xb   : > { %v263_v0 = vld [vmem:[%s863_s3] sm:$0xf]  ;;  %vm297_vm0 = vcmask 1043456   ;;  %s867_s19 = smov (!%p230_p3, %s628_s19), 1  ;;  %vm284_vm1 = vcmask 64512  }
   0xc   : > { %v254_v1 = vld [vmem:[%s862_s2] sm:$0xf]  ;;  %691 = vmatprep.subr.msk.bf16.mxu0 %vm297_vm0, %v263_v0  ;;  %v299_v2 = vsel %vm297_vm0, %v263_v0, 0  ;;  %s658_s24 = sshll.u32 %s867_s19, 5  ;;  %s660_s8 = sshll.u32 %s867_s19, 6 }
   0xd   : > { %692 = vmatprep.subr.msk.bf16.mxu1 %vm297_vm0, %v254_v1  ;;  %v399_v3 = vsel %vm297_vm0, %v254_v1, 0  ;;  %672 = vmatpush3.bf16.msra.mxu0 %v299_v2  ;;  %s239_s27 = scalar_lea.vmem %s861_s1, %s658_s24  ;;  %s234_s30 = scalar_lea.vmem %s860_s0, %s658_s24  ;;  %v655_v14 = vld [vmem:[%s864_s4] ss:$0 sm:$0xff] }
   0xe   : > { %682 = vmatpush3.bf16.msra.mxu1 %v399_v3  ;;  %v701_v4 = vld [vmem:[%s239_s27] sm:$0xff]   ;;  %v703_v6 = vld [vmem:[%s239_s27 + $0x8] sm:$0xff]   ;;  %v705_v8 = vld [vmem:[%s239_s27 + $0x10] sm:$0xff]   ;;  %s244_s11 = scalar_lea.vmem %s865_s5, %s660_s8 }
   0xf   : > { %v702_v5 = vld [vmem:[%s234_s30] sm:$0xff]   ;;  %673 = vmatprep.mubr.msk.bf16.mxu0 %vm284_vm1, %v701_v4  ;;  %v704_v7 = vld [vmem:[%s234_s30 + $0x8] sm:$0xff]   ;;  %v706_v9 = vld [vmem:[%s234_s30 + $0x10] sm:$0xff]  }
  0x10   : > { %683 = vmatprep.mubr.msk.bf16.mxu1 %vm284_vm1, %v702_v5  ;;  %674 = vmatmul.mubr.msk.bf16.vlgmr.msra.gmra.mxu0 %vm284_vm1, %v703_v6  ;;  %v707_v10 = vld [vmem:[%s239_s27 + $0x18] sm:$0xff]  }
  0x11   : > { %684 = vmatmul.mubr.msk.bf16.vlgmr.msra.gmra.mxu1 %vm284_vm1, %v704_v7  ;;  %677 = vmatprep.mubr.msk.bf16.mxu0 %vm284_vm1, %v705_v8  ;;  %v708_v11 = vld [vmem:[%s234_s30 + $0x18] sm:$0xff]  }
  0x12   : > { %687 = vmatprep.mubr.msk.bf16.mxu1 %vm284_vm1, %v706_v9 }
  0x18   : > { %678 = vmatmul.mubr.msk.bf16.gmra.mxu0 %vm284_vm1, %v707_v10 }
  0x19   : > { %688 = vmatmul.mubr.msk.bf16.gmra.mxu1 %vm284_vm1, %v708_v11 }
  0xd0   : > { %v675_v12 = vpop.f32.mrf.mxu0 }
  0xd1   : > { %v685_v13 = vpop.f32.mrf.mxu1 }
  0xd2   : > { %v444_v15 = vadd.f32 %v685_v13, %v675_v12  ;;  %v335_v16 = vpop.f32.mrf.mxu0 }
  0xd3   : > { %v435_v17 = vpop.f32.mrf.mxu1 }
  0xd4   : > { %v813_v18 = vadd.f32 %v655_v14, %v444_v15  ;;  %v436_v19 = vadd.f32 %v435_v17, %v335_v16  ;;  %v676_v20 = vpop.f32.mrf.mxu0 }
  0xd5   : > { %v686_v21 = vpop.f32.mrf.mxu1 }
  0xd6   : > { %v483_v22 = vmin.f32 %v813_v18, 20.0  ;;  %v816_v23 = vadd.f32 %v655_v14, %v436_v19  ;;  %v447_v24 = vadd.f32 %v686_v21, %v676_v20  ;;  %v338_v25 = vpop.f32.mrf.mxu0 }
  0xd7   : > { %v438_v26 = vpop.f32.mrf.mxu1 }
  0xd8   : > { %v493_v27 = vmul.f32 1.442695, %v483_v22  ;;  %v481_v28 = vmin.f32 %v816_v23, 20.0  ;;  %v819_v29 = vadd.f32 %v655_v14, %v447_v24  ;;  %v439_v30 = vadd.f32 %v438_v26, %v338_v25  ;;  %v679_v31 = vpop.f32.mrf.mxu0 }
  0xd9   : > { %v689_v32 = vpop.f32.mrf.mxu1 }
  0xda   : > { %709 = vpow2.f32 %v493_v27  ;;  %v489_v33 = vmul.f32 1.442695, %v481_v28  ;;  %v484_v34 = vmin.f32 %v819_v29, 20.0  ;;  %v822_v35 = vadd.f32 %v655_v14, %v439_v30  ;;  %v351_v36 = vpop.f32.mrf.mxu0 }
  0xdb   : > { %v460_v37 = vadd.f32 %v689_v32, %v679_v31  ;;  %v451_v38 = vpop.f32.mrf.mxu1 }
  0xdc   : > { %711 = vpow2.f32 %v489_v33  ;;  %v495_v39 = vmul.f32 1.442695, %v484_v34  ;;  %v482_v40 = vmin.f32 %v822_v35, 20.0  ;;  %v452_v41 = vadd.f32 %v451_v38, %v351_v36  ;;  %v680_v42 = vpop.f32.mrf.mxu0 }
  0xdd   : > { %v825_v43 = vadd.f32 %v655_v14, %v460_v37  ;;  %v690_v44 = vpop.f32.mrf.mxu1 }
  0xde   : > { %713 = vpow2.f32 %v495_v39  ;;  %v491_v45 = vmul.f32 1.442695, %v482_v40  ;;  %v827_v46 = vadd.f32 %v655_v14, %v452_v41  ;;  %v463_v47 = vadd.f32 %v690_v44, %v680_v42  ;;  %v354_v48 = vpop.f32.mrf.mxu0 }
  0xdf   : > { %v487_v49 = vmin.f32 %v825_v43, 20.0  ;;  %v454_v50 = vpop.f32.mrf.mxu1 }
  0xe0   : > { %715 = vpow2.f32 %v491_v45  ;;  %v485_v51 = vmin.f32 %v827_v46, 20.0  ;;  %v831_v52 = vadd.f32 %v655_v14, %v463_v47  ;;  %v455_v53 = vadd.f32 %v454_v50, %v354_v48 }
  0xe1   : > { %v501_v54 = vmul.f32 1.442695, %v487_v49 }
  0xe2   : > { %v497_v55 = vmul.f32 1.442695, %v485_v51  ;;  %v488_v56 = vmin.f32 %v831_v52, 20.0  ;;  %v834_v57 = vadd.f32 %v655_v14, %v455_v53 }
  0xe3   : > { %717 = vpow2.f32 %v501_v54 }
  0xe4   : > { %719 = vpow2.f32 %v497_v55  ;;  %v503_v58 = vmul.f32 1.442695, %v488_v56  ;;  %v486_v59 = vmin.f32 %v834_v57, 20.0 }
  0xe6   : > { %721 = vpow2.f32 %v503_v58  ;;  %v499_v60 = vmul.f32 1.442695, %v486_v59 }
  0xe7   : > { %v710_v61 = vpop.eup %709 }
  0xe8   : > { %v507_v62 = vadd.f32 2.0, %v710_v61  ;;  %723 = vpow2.f32 %v499_v60 }
  0xe9   : > { %v712_v63 = vpop.eup %711 }
  0xea   : > { %v515_v0 = vmul.f32 %v710_v61, %v507_v62  ;;  %v505_v1 = vadd.f32 2.0, %v712_v63 }
  0xeb   : > { %v714_v2 = vpop.eup %713 }
  0xec   : > { %v523_v3 = vadd.f32 2.0, %v515_v0  ;;  %v513_v4 = vmul.f32 %v712_v63, %v505_v1  ;;  %v508_v5 = vadd.f32 2.0, %v714_v2 }
  0xed   : > { %v716_v6 = vpop.eup %715 }
  0xee   : > { %725 = vrcp.f32 %v523_v3  ;;  %v521_v7 = vadd.f32 2.0, %v513_v4  ;;  %v516_v8 = vmul.f32 %v714_v2, %v508_v5  ;;  %v506_v9 = vadd.f32 2.0, %v716_v6 }
  0xf0   : > { %v718_v10 = vpop.eup %717  ;;  %727 = vrcp.f32 %v521_v7  ;;  %v524_v11 = vadd.f32 2.0, %v516_v8  ;;  %v514_v12 = vmul.f32 %v716_v6, %v506_v9 }
  0xf1   : > { %v720_v13 = vpop.eup %719  ;;  %v511_v14 = vadd.f32 2.0, %v718_v10 }
  0xf2   : > { %729 = vrcp.f32 %v524_v11  ;;  %v522_v15 = vadd.f32 2.0, %v514_v12  ;;  %v509_v16 = vadd.f32 2.0, %v720_v13 }
  0xf3   : > { %v722_v17 = vpop.eup %721  ;;  %v519_v19 = vmul.f32 %v718_v10, %v511_v14 }
  0xf4   : > { %731 = vrcp.f32 %v522_v15  ;;  %v517_v20 = vmul.f32 %v720_v13, %v509_v16  ;;  %v512_v21 = vadd.f32 2.0, %v722_v17 }
  0xf5   : > { %v724_v22 = vpop.eup %723  ;;  %v527_v24 = vadd.f32 2.0, %v519_v19 }
  0xf6   : > { %v525_v25 = vadd.f32 2.0, %v517_v20  ;;  %v520_v26 = vmul.f32 %v722_v17, %v512_v21  ;;  %v510_v27 = vadd.f32 2.0, %v724_v22 }
  0xf7   : > { %733 = vrcp.f32 %v527_v24 }
  0xf8   : > { %735 = vrcp.f32 %v525_v25  ;;  %v528_v28 = vadd.f32 2.0, %v520_v26  ;;  %v518_v30 = vmul.f32 %v724_v22, %v510_v27 }
  0xfa   : > { %737 = vrcp.f32 %v528_v28  ;;  %v526_v31 = vadd.f32 2.0, %v518_v30 }
  0xfb   : > { %v726_v32 = vpop.eup %725 }
  0xfc   : > { %v539_v33 = vmul.f32 %v726_v32, %v515_v0  ;;  %739 = vrcp.f32 %v526_v31 }
  0xfd   : > { %v728_v34 = vpop.eup %727 }
  0xfe   : > { %v547_v36 = vmul.f32 %v539_v33, %v813_v18  ;;  %v537_v37 = vmul.f32 %v728_v34, %v513_v4 }
  0xff   : > { %v730_v38 = vpop.eup %729 }
 0x100   : > { %555 = vst.msk [vmem:[%s244_s11 + $0x10] sm:$0xff] %vm284_vm1, %v547_v36  ;;  %v545_v39 = vmul.f32 %v537_v37, %v816_v23  ;;  %v540_v40 = vmul.f32 %v730_v38, %v516_v8 }
 0x101   : > { %v732_v41 = vpop.eup %731 }
 0x102   : > { %553 = vst.msk [vmem:[%s244_s11] sm:$0xff] %vm284_vm1, %v545_v39  ;;  %v548_v42 = vmul.f32 %v540_v40, %v819_v29  ;;  %v538_v44 = vmul.f32 %v732_v41, %v514_v12 }
 0x104   : > { %v734_v45 = vpop.eup %733  ;;  %556 = vst.msk [vmem:[%s244_s11 + $0x18] sm:$0xff] %vm284_vm1, %v548_v42  ;;  %v546_v47 = vmul.f32 %v538_v44, %v822_v35 }
 0x105   : > { %v736_v48 = vpop.eup %735  ;;  %v543_v18 = vmul.f32 %v734_v45, %v519_v19 }
 0x106   : > { %554 = vst.msk [vmem:[%s244_s11 + $0x8] sm:$0xff] %vm284_vm1, %v546_v47  ;;  %v541_v49 = vmul.f32 %v736_v48, %v517_v20 }
 0x107   : > { %v738_v50 = vpop.eup %737  ;;  %v551_v23 = vmul.f32 %v543_v18, %v825_v43 }
 0x108   : > { %v549_v51 = vmul.f32 %v541_v49, %v827_v46  ;;  %v544_v53 = vmul.f32 %v738_v50, %v520_v26 }
 0x109   : > { %v740_v54 = vpop.eup %739  ;;  %559 = vst.msk [vmem:[%s244_s11 + $0x30] sm:$0xff] %vm284_vm1, %v551_v23 }
 0x10a   : > { %557 = vst.msk [vmem:[%s244_s11 + $0x20] sm:$0xff] %vm284_vm1, %v549_v51  ;;  %v552_v29 = vmul.f32 %v544_v53, %v831_v52  ;;  %v542_v55 = vmul.f32 %v740_v54, %v518_v30 }
 0x10c   : > { %560 = vst.msk [vmem:[%s244_s11 + $0x38] sm:$0xff] %vm284_vm1, %v552_v29  ;;  %v550_v35 = vmul.f32 %v542_v55, %v834_v57 }
 0x10e   : > { %558 = vst.msk [vmem:[%s244_s11 + $0x28] sm:$0xff] %vm284_vm1, %v550_v35 }
 0x10f PF: > { %s15_s18 = sadd.s32 1, %s747_s18  }
 0x110   : > { %p12_p4 = scmp.ge.s32.totalorder %s15_s18, 4  }
 0x112   :  { %14 = sbr.rel (!%p12_p4) target bundleno = 1 (0x1), region = 73 }

// kernel: downsample_forward.6
= control target key start
LH: loop header
LB: loop body
LE: loop exit
PB: predicated region body
PF: predicated region fallthrough
CT: control target
= control target key end

     0   :  { %s2753_s18 = smov 0   ;;  %s3382_s0 = inlined_call_operand.vmem [shape: bf16[2,8,8,8], index: 0, kind: input, shape index: {}]   ;;  %s3383_s1 = inlined_call_operand.vmem [shape: bf16[8,8], index: 1, kind: input, shape index: {}]   ;;  %s3384_s2 = inlined_call_operand.vmem [shape: f32[1,8], index: 2, kind: input, shape index: {}]   ;;  %s3385_s3 = inlined_call_operand.vmem [shape: bf16[9,8,8], index: 3, kind: input, shape index: {}]   ;;  %s3386_s4 = inlined_call_operand.vmem [shape: f32[1,8], index: 4, kind: input, shape index: {}]   ;;  %s3387_s5 = inlined_call_operand.vmem [shape: bf16[2,8,8,8], index: 5, kind: output, shape index: {}]  }
   0x1 LB: > { %s2313_s19 = sadd.s32 4294967295, %s2720_s18   ;;  %p2317_p0 = scmp.ge.s32.totalorder %s2720_s18, 1  ;;  %s2720_s18 = sphi %s2753_s18, %s15_s18  }
   0x2   : > { %p187_p1 = scmp.lt.s32.totalorder %s2720_s18, 3 }
   0x4   : > { %p188_p2 = pnand %p2317_p0, %p187_p1 }
   0x6   : > { %191 = sbr.rel (%p188_p2) target bundleno = 626 (0x272), region = 40 }
   0xb   : > { %v234_v0 = vld [vmem:[%s3383_s1] sm:$0xf]  ;;  %vm275_vm0 = vcmask 1043456   ;;  %p215_p3 = scmp.lt.s32.totalorder %s2313_s19, 1  ;;  %vm262_vm1 = vcmask 64512   ;;  %vm418_vm2 = vcmask 57344  }
   0xc   : > { %2606 = vmatprep.subr.msk.bf16.mxu0 %vm275_vm0, %v234_v0  ;;  %v277_v1 = vsel %vm275_vm0, %v234_v0, 0  ;;  %vm425_vm3 = vsmask.f32 256  ;;  %vm451_vm4 = vsmask.f32 7938  ;;  %vm416_vm5 = vcmask 60416  }
   0xd   : > { %2507 = vmatpush3.bf16.msra.mxu0 %v277_v1  ;;  %s3405_s19 = smov (!%p215_p3, %s2313_s19), 1  ;;  %vm2784_vm6 = vmand %vm418_vm2, %vm425_vm3  ;;  %v433_v7 = vld [vmem:[#allocation2 + $0x18] sm:$0x1]  ;;  %v459_v8 = vld [vmem:[#allocation2 + $0x1c] sm:$0x1]  ;;  %v2722_v9 = vmov 0  }
   0xe   : > { %s2446_s22 = sshll.u32 %s3405_s19, 5  ;;  %419 = vst.msk [vmem:[#allocation2 + $0x4] sm:$0x1] %vm418_vm2, %v2722_v9  ;;  %422 = vst.msk [vmem:[#allocation2 + $0x4c] sm:$0x1] %vm418_vm2, %v2722_v9  ;;  %v434_v10 = vsel %vm2784_vm6, 0, %v433_v7 }
   0xf   : > { %s2774_s25 = scalar_lea.vmem %s3382_s0, %s2446_s22  ;;  %421 = vst.msk [vmem:[#allocation2 + $0x48] sm:$0xf] %vm416_vm5, %v2722_v9  ;;  %vm2792_vm7 = vmand %vm418_vm2, %vm451_vm4  ;;  %v427_v13 = vld [vmem:[#allocation2 + $0x8] sm:$0x1]  ;;  %v453_v14 = vld [vmem:[#allocation2 + $0xc] sm:$0x1]  ;;  %s3353_s29 = scalar_lea.vmem %s3387_s5, %s2446_s22 }
  0x10   : > { %v226_v2 = vld [vmem:[%s2774_s25] sm:$0xff]   ;;  %v228_v3 = vld [vmem:[%s2774_s25 + $0x8] sm:$0xff]   ;;  %v230_v4 = vld [vmem:[%s2774_s25 + $0x10] sm:$0xff]   ;;  %417 = vst.msk [vmem:[#allocation2] sm:$0xf] %vm416_vm5, %v2722_v9  ;;  %v460_v12 = vsel %vm2792_vm7, 0, %v459_v8 }
  0x11   : > { %2508 = vmatprep.mubr.msk.bf16.mxu0 %vm262_vm1, %v226_v2  ;;  %v232_v5 = vld [vmem:[%s2774_s25 + $0x18] sm:$0xff]   ;;  %435 = vst [vmem:[#allocation2 + $0x18] sm:$0x1] %v434_v10  ;;  %461 = vst [vmem:[#allocation2 + $0x1c] sm:$0x1] %v460_v12  ;;  %v428_v15 = vsel %vm2784_vm6, 0, %v427_v13 }
  0x12   : > { %2509 = vmatmul.mubr.msk.bf16.vlgmr.msra.gmra.mxu0 %vm262_vm1, %v228_v3  ;;  %v454_v16 = vsel %vm2792_vm7, 0, %v453_v14  ;;  %429 = vst [vmem:[#allocation2 + $0x8] sm:$0x1] %v428_v15  ;;  %v436_v17 = vld [vmem:[#allocation2 + $0x20] sm:$0x1]  ;;  %vm989_vm10 = vcmask 1042432   ;;  %vm2968_vm14 = vmand %vm416_vm5, %vm451_vm4 }
  0x13   : > { %2512 = vmatprep.mubr.msk.bf16.mxu0 %vm262_vm1, %v230_v4  ;;  %455 = vst [vmem:[#allocation2 + $0xc] sm:$0x1] %v454_v16  ;;  %v462_v18 = vld [vmem:[#allocation2 + $0x24] sm:$0x1]  ;;  %v437_v19 = vsel %vm2784_vm6, 0, %v436_v17  ;;  %vm990_vm11 = vcmask 1046532  }
  0x14   : > { %v463_v20 = vsel %vm2792_vm7, 0, %v462_v18  ;;  %438 = vst [vmem:[#allocation2 + $0x20] sm:$0x1] %v437_v19  ;;  %v430_v21 = vld [vmem:[#allocation2 + $0x10] sm:$0x1]  ;;  %vm2916_vm13 = vmor %vm989_vm10, %vm990_vm11 }
  0x15   : > { %464 = vst [vmem:[#allocation2 + $0x24] sm:$0x1] %v463_v20  ;;  %v456_v22 = vld [vmem:[#allocation2 + $0x14] sm:$0x1]  ;;  %v431_v23 = vsel %vm2784_vm6, 0, %v430_v21 }
  0x16   : > { %v457_v24 = vsel %vm2792_vm7, 0, %v456_v22  ;;  %432 = vst [vmem:[#allocation2 + $0x10] sm:$0x1] %v431_v23  ;;  %v445_v25 = vld [vmem:[#allocation2 + $0x38] sm:$0x1] }
  0x17   : > { %458 = vst [vmem:[#allocation2 + $0x14] sm:$0x1] %v457_v24  ;;  %v471_v26 = vld [vmem:[#allocation2 + $0x3c] sm:$0x1]  ;;  %v446_v27 = vsel %vm2784_vm6, 0, %v445_v25 }
  0x18   : > { %v472_v28 = vsel %vm2792_vm7, 0, %v471_v26  ;;  %447 = vst [vmem:[#allocation2 + $0x38] sm:$0x1] %v446_v27  ;;  %v439_v29 = vld [vmem:[#allocation2 + $0x28] sm:$0x1] }
  0x19   : > { %473 = vst [vmem:[#allocation2 + $0x3c] sm:$0x1] %v472_v28  ;;  %v465_v30 = vld [vmem:[#allocation2 + $0x2c] sm:$0x1]  ;;  %v440_v31 = vsel %vm2784_vm6, 0, %v439_v29 }
  0x1a   : > { %2513 = vmatmul.mubr.msk.bf16.gmra.mxu0 %vm262_vm1, %v232_v5  ;;  %v466_v32 = vsel %vm2792_vm7, 0, %v465_v30  ;;  %441 = vst [vmem:[#allocation2 + $0x28] sm:$0x1] %v440_v31  ;;  %v448_v33 = vld [vmem:[#allocation2 + $0x40] sm:$0x1] }
  0x1b   : > { %467 = vst [vmem:[#allocation2 + $0x2c] sm:$0x1] %v466_v32  ;;  %v474_v34 = vld [vmem:[#allocation2 + $0x44] sm:$0x1]  ;;  %v449_v35 = vsel %vm2784_vm6, 0, %v448_v33 }
  0x1c   : > { %v475_v36 = vsel %vm2792_vm7, 0, %v474_v34  ;;  %450 = vst [vmem:[#allocation2 + $0x40] sm:$0x1] %v449_v35  ;;  %v442_v37 = vld [vmem:[#allocation2 + $0x30] sm:$0x1] }
  0x1d   : > { %476 = vst [vmem:[#allocation2 + $0x44] sm:$0x1] %v475_v36  ;;  %v468_v38 = vld [vmem:[#allocation2 + $0x34] sm:$0x1]  ;;  %v443_v39 = vsel %vm2784_vm6, 0, %v442_v37 }
  0x1e   : > { %v469_v40 = vsel %vm2792_vm7, 0, %v468_v38  ;;  %444 = vst [vmem:[#allocation2 + $0x30] sm:$0x1] %v443_v39  ;;  %v647_v41 = vld [vmem:[%s3385_s3] sm:$0xf] }
  0x1f   : > { %470 = vst [vmem:[#allocation2 + $0x34] sm:$0x1] %v469_v40  ;;  %2608 = vmatprep.subr.msk.bf16.mxu0 %vm275_vm0, %v647_v41  ;;  %v898_v42 = vsel %vm275_vm0, %v647_v41, 0  ;;  %v2339_v43 = vld [vmem:[%s3385_s3 + $0x4] sm:$0xf] }
  0x20   : > { %2527 = vmatpush3.bf16.msra.mxu0 %v898_v42  ;;  %2607 = vmatprep.subr.msk.bf16.mxu1 %vm275_vm0, %v2339_v43  ;;  %v798_v44 = vsel %vm275_vm0, %v2339_v43, 0  ;;  %v2840_v45 = vld [vmem:[%s3385_s3 + $0x8] sm:$0xf]  ;;  %v2847_v46 = vld [vmem:[%s3385_s3 + $0xc] sm:$0xf] }
  0x21   : > { %2517 = vmatpush3.bf16.msra.mxu1 %v798_v44  ;;  %2610 = vmatprep.subr.msk.bf16.mxu0 %vm275_vm0, %v2847_v46  ;;  %v2322_v47 = vld [vmem:[%s3384_s2] ss:$0 sm:$0xff]  ;;  %vm656_vm8 = vsmask.f32 3328  ;;  %vm657_vm9 = vsmask.f32 7440 }
  0x22   : > { %2609 = vmatprep.subr.msk.bf16.mxu1 %vm275_vm0, %v2840_v45  ;;  %v2878_v26 = vld [vmem:[#allocation2] sm:$0xf]  ;;  %vm2903_vm12 = vmor %vm656_vm8, %vm657_vm9 }
  0x23   : > { %v660_v32 = vshrl.u32 %v2878_v26, 16  ;;  %v663_v33 = vshll.u32 %v2878_v26, 16 }
  0x25   : > { %v662_v42 = vrot.slane %v660_v32, 4  ;;  %v665_v43 = vrot.slane %v663_v33, 5  ;;  %v2942_v33 = vsel %vm275_vm0, %v2840_v45, 0 }
  0xd2   : > { %v2510_v48 = vpop.f32.mrf.mxu0 }
  0xd3   : > { %v2854_v49 = vadd.f32 %v2510_v48, %v2322_v47 }
  0xd4   : > { %v313_v50 = vpop.f32.mrf.mxu0 }
  0xd5   : > { %v346_v51 = vmin.f32 %v2854_v49, 20.0  ;;  %v2857_v52 = vadd.f32 %v2322_v47, %v313_v50 }
  0xd6   : > { %v2511_v53 = vpop.f32.mrf.mxu0 }
  0xd7   : > { %v356_v54 = vmul.f32 1.442695, %v346_v51  ;;  %v344_v55 = vmin.f32 %v2857_v52, 20.0  ;;  %v2860_v56 = vadd.f32 %v2511_v53, %v2322_v47 }
  0xd8   : > { %v316_v57 = vpop.f32.mrf.mxu0 }
  0xd9   : > { %2645 = vpow2.f32 %v356_v54  ;;  %v352_v58 = vmul.f32 1.442695, %v344_v55  ;;  %v347_v59 = vmin.f32 %v2860_v56, 20.0  ;;  %v2863_v60 = vadd.f32 %v2322_v47, %v316_v57  ;;  %v648_v55 = vld [vmem:[#allocation2 + $0x4] sm:$0x1] }
  0xda   : > { %v2514_v61 = vpop.f32.mrf.mxu0  ;;  %v1765_v57 = vld [vmem:[#allocation2 + $0x48] sm:$0xf] }
  0xdb   : > { %2647 = vpow2.f32 %v352_v58  ;;  %v358_v62 = vmul.f32 1.442695, %v347_v59  ;;  %v345_v63 = vmin.f32 %v2863_v60, 20.0  ;;  %v2866_v0 = vadd.f32 %v2514_v61, %v2322_v47 }
  0xdc   : > { %v329_v1 = vpop.f32.mrf.mxu0  ;;  %v666_v58 = vor.u32 %v665_v43, %v662_v42  ;;  %v669_v59 = vshll.u32 %v648_v55, 16 }
  0xdd   : > { %2649 = vpow2.f32 %v358_v62  ;;  %v354_v2 = vmul.f32 1.442695, %v345_v63  ;;  %v350_v3 = vmin.f32 %v2866_v0, 20.0  ;;  %v2869_v4 = vadd.f32 %v2322_v47, %v329_v1  ;;  %v965_v63 = vld [vmem:[#allocation2] sm:$0xe] }
  0xde   : > { %v2515_v5 = vpop.f32.mrf.mxu0  ;;  %v1866_v1 = vshrl.u32 %v1765_v57, 16 }
  0xdf   : > { %2651 = vpow2.f32 %v354_v2  ;;  %v364_v7 = vmul.f32 1.442695, %v350_v3  ;;  %v348_v8 = vmin.f32 %v2869_v4, 20.0  ;;  %v2872_v9 = vadd.f32 %v2515_v5, %v2322_v47 }
  0xe0   : > { %v332_v10 = vpop.f32.mrf.mxu0  ;;  %v1869_v2 = vshll.u32 %v1765_v57, 16  ;;  %v994_v5 = vrot.slane %v648_v55, 5  ;;  %v606_v57 = vld [vmem:[#allocation2 + $0x1c] sm:$0x1] }
  0xe1   : > { %2653 = vpow2.f32 %v364_v7  ;;  %v360_v11 = vmul.f32 1.442695, %v348_v8  ;;  %v351_v12 = vmin.f32 %v2872_v9, 20.0  ;;  %v2875_v13 = vadd.f32 %v2322_v47, %v332_v10 }
  0xe2   : > { %v2897_v8 = vrot.slane %v666_v58, 4  ;;  %v2899_v10 = vrot.slane %v669_v59, 5 }
  0xe3   : > { %2655 = vpow2.f32 %v360_v11  ;;  %v366_v14 = vmul.f32 1.442695, %v351_v12  ;;  %v349_v15 = vmin.f32 %v2875_v13, 20.0  ;;  %v2356_v12 = vrot.slane %v965_v63, 9 }
  0xe5   : > { %2657 = vpow2.f32 %v366_v14  ;;  %v362_v16 = vmul.f32 1.442695, %v349_v15  ;;  %v1868_v15 = vrot.slane %v1866_v1, 4 }
  0xe6   : > { %v2646_v17 = vpop.eup %2645 }
  0xe7   : > { %v370_v18 = vadd.f32 2.0, %v2646_v17  ;;  %2659 = vpow2.f32 %v362_v16  ;;  %v1871_v16 = vrot.slane %v1869_v2, 5 }
  0xe8   : > { %v2648_v19 = vpop.eup %2647 }
  0xe9   : > { %v378_v20 = vmul.f32 %v2646_v17, %v370_v18  ;;  %v368_v21 = vadd.f32 2.0, %v2648_v19 }
  0xea   : > { %v2650_v22 = vpop.eup %2649 }
  0xeb   : > { %v386_v23 = vadd.f32 2.0, %v378_v20  ;;  %v376_v24 = vmul.f32 %v2648_v19, %v368_v21  ;;  %v371_v25 = vadd.f32 2.0, %v2650_v22  ;;  %v2910_v21 = vld [vmem:[%s3385_s3 + $0x10] sm:$0xf] }
  0xec   : > { %v2652_v27 = vpop.eup %2651 }
  0xed   : > { %2661 = vrcp.f32 %v386_v23  ;;  %v384_v28 = vadd.f32 2.0, %v376_v24  ;;  %v379_v29 = vmul.f32 %v2650_v22, %v371_v25  ;;  %v369_v30 = vadd.f32 2.0, %v2652_v27 }
  0xee   : > { %v2654_v31 = vpop.eup %2653  ;;  %v672_v22 = vsel %vm2903_vm12, %v2897_v8, %v2899_v10 }
  0xef   : > { %2663 = vrcp.f32 %v384_v28  ;;  %v387_v34 = vadd.f32 2.0, %v379_v29  ;;  %v2882_v35 = vmul.f32 %v2652_v27, %v369_v30  ;;  %v374_v36 = vadd.f32 2.0, %v2654_v31  ;;  %v2933_v30 = vld [vmem:[%s3385_s3 + $0x18] sm:$0xf] }
  0xf0   : > { %v2656_v37 = vpop.eup %2655  ;;  %v2928_v28 = vsel %vm2916_vm13, %v2356_v12, %v994_v5  ;;  %v594_v12 = vld [vmem:[#allocation2 + $0xc] sm:$0x1] }
  0xf1   : > { %2665 = vrcp.f32 %v387_v34  ;;  %v385_v38 = vadd.f32 2.0, %v2882_v35  ;;  %v2885_v39 = vmul.f32 %v2654_v31, %v374_v36  ;;  %v372_v40 = vadd.f32 2.0, %v2656_v37  ;;  %v2938_v31 = vld [vmem:[%s3385_s3 + $0x1c] sm:$0xf] }
  0xf2   : > { %v2658_v41 = vpop.eup %2657  ;;  %v1872_v34 = vor.u32 %v1871_v16, %v1868_v15  ;;  %v2964_v43 = vsel %vm275_vm0, %v2938_v31, 0 }
  0xf3   : > { %2667 = vrcp.f32 %v385_v38  ;;  %v390_v44 = vadd.f32 2.0, %v2885_v39  ;;  %v2888_v47 = vmul.f32 %v2656_v37, %v372_v40  ;;  %v375_v48 = vadd.f32 2.0, %v2658_v41 }
  0xf4   : > { %v2660_v50 = vpop.eup %2659  ;;  %v2974_v63 = vrot.slane %v1872_v34, 4 }
  0xf5   : > { %2669 = vrcp.f32 %v390_v44  ;;  %v388_v51 = vadd.f32 2.0, %v2888_v47  ;;  %v2891_v53 = vmul.f32 %v2658_v41, %v375_v48  ;;  %v373_v54 = vadd.f32 2.0, %v2660_v50  ;;  %v1766_v41 = vld [vmem:[#allocation2 + $0x4c] sm:$0x1] }
  0xf6   : > { %v1875_v44 = vshll.u32 %v1766_v41, 16 }
  0xf7   : > { %2671 = vrcp.f32 %v388_v51  ;;  %v391_v61 = vadd.f32 2.0, %v2891_v53  ;;  %v2894_v62 = vmul.f32 %v2660_v50, %v373_v54 }
  0xf9   : > { %2673 = vrcp.f32 %v391_v61  ;;  %v389_v3 = vadd.f32 2.0, %v2894_v62 }
  0xfa   : > { %v2662_v7 = vpop.eup %2661 }
  0xfb   : > { %v402_v11 = vmul.f32 %v2662_v7, %v378_v20  ;;  %2675 = vrcp.f32 %v389_v3 }
  0xfc   : > { %v2664_v14 = vpop.eup %2663 }
  0xfd   : > { %v410_v17 = vmul.f32 %v402_v11, %v2854_v49  ;;  %v400_v18 = vmul.f32 %v2664_v14, %v376_v24  ;;  %v2923_v49 = vld [vmem:[%s3385_s3 + $0x14] sm:$0xf]  ;;  %v591_v11 = vld [vmem:[#allocation2 + $0x8] sm:$0xf] }
  0xfe   : > { %v2666_v20 = vpop.eup %2665  ;;  %v2955_v40 = vsel %vm275_vm0, %v2923_v49, 0 }
  0xff   : > { %v2450_v24 = vpack.c.bf16 %v410_v17, %v410_v17  ;;  %v408_v25 = vmul.f32 %v400_v18, %v2857_v52  ;;  %v403_v27 = vmul.f32 %v2666_v20, %v379_v29  ;;  %v2946_v52 = vsel %vm275_vm0, %v2847_v46, 0 }
 0x100   : > { %v2668_v32 = vpop.eup %2667  ;;  %v2950_v29 = vsel %vm275_vm0, %v2910_v21, 0  ;;  %v2960_v46 = vsel %vm275_vm0, %v2933_v30, 0 }
 0x101   : > { %v526_v36 = vshrl.u32 %v2450_v24, 16  ;;  %v2448_v37 = vpack.c.bf16 %v408_v25, %v408_v25  ;;  %v411_v38 = vmul.f32 %v403_v27, %v2860_v56  ;;  %v401_v42 = vmul.f32 %v2668_v32, %v2882_v35  ;;  %v603_v35 = vld [vmem:[#allocation2 + $0x18] sm:$0xf] }
 0x102   : > { %v2670_v45 = vpop.eup %2669  ;;  %v529_v50 = vshll.u32 %v2450_v24, 16 }
 0x103   : > { %v528_v48 = vrot.slane %v526_v36, 7  ;;  %v510_v56 = vshrl.u32 %v2448_v37, 16  ;;  %v2451_v51 = vpack.c.bf16 %v411_v38, %v411_v38  ;;  %v513_v58 = vshll.u32 %v2448_v37, 16  ;;  %v609_v36 = vld [vmem:[#allocation2 + $0x20] sm:$0xf] }
 0x104   : > { %v2672_v54 = vpop.eup %2671  ;;  %v409_v59 = vmul.f32 %v401_v42, %v2863_v60  ;;  %v406_v61 = vmul.f32 %v2670_v45, %v2885_v39  ;;  %v612_v37 = vld [vmem:[#allocation2 + $0x24] sm:$0x1] }
 0x105   : > { %v531_v1 = vor.u32 %v529_v50, %v528_v48  ;;  %v532_v2 = vrot.slane %v528_v48, 4  ;;  %v512_v3 = vrot.slane %v510_v56, 7  ;;  %v534_v5 = vshrl.u32 %v2451_v51, 16  ;;  %v597_v56 = vld [vmem:[#allocation2 + $0x10] sm:$0xf] }
 0x106   : > { %v2674_v7 = vpop.eup %2673  ;;  %v537_v14 = vshll.u32 %v2451_v51, 16  ;;  %v2449_v15 = vpack.c.bf16 %v409_v59, %v409_v59  ;;  %v414_v16 = vmul.f32 %v406_v61, %v2866_v0  ;;  %v404_v17 = vmul.f32 %v2672_v54, %v2888_v47  ;;  %v600_v51 = vld [vmem:[#allocation2 + $0x14] sm:$0x1] }
 0x107   : > { %v604_v60 = vsel %vm2968_vm14, %v531_v1, %v603_v35  ;;  %v607_v39 = vsel %vm2784_vm6, %v532_v2, %v606_v57  ;;  %v515_v18 = vor.u32 %v513_v58, %v512_v3  ;;  %v516_v20 = vrot.slane %v512_v3, 4  ;;  %v627_v3 = vld [vmem:[#allocation2 + $0x38] sm:$0xf] }
 0x108   : > { %v2676_v24 = vpop.eup %2675  ;;  %605 = vst [vmem:[#allocation2 + $0x18] sm:$0xf] %v604_v60  ;;  %608 = vst [vmem:[#allocation2 + $0x1c] sm:$0x1] %v607_v39  ;;  %v536_v25 = vrot.slane %v534_v5, 7  ;;  %v518_v27 = vshrl.u32 %v2449_v15, 16  ;;  %v2454_v34 = vpack.c.bf16 %v414_v16, %v414_v16  ;;  %v412_v38 = vmul.f32 %v404_v17, %v2869_v4 }
 0x109   : > { %v521_v32 = vshll.u32 %v2449_v15, 16  ;;  %v592_v0 = vsel %vm2968_vm14, %v515_v18, %v591_v11  ;;  %v595_v47 = vsel %vm2784_vm6, %v516_v20, %v594_v12  ;;  %v407_v41 = vmul.f32 %v2674_v7, %v2891_v53  ;;  %v615_v12 = vld [vmem:[#allocation2 + $0x28] sm:$0xf]  ;;  %v618_v18 = vld [vmem:[#allocation2 + $0x2c] sm:$0x1] }
 0x10a   : > { %593 = vst [vmem:[#allocation2 + $0x8] sm:$0xf] %v592_v0  ;;  %596 = vst [vmem:[#allocation2 + $0xc] sm:$0x1] %v595_v47  ;;  %v539_v45 = vor.u32 %v537_v14, %v536_v25  ;;  %v540_v42 = vrot.slane %v536_v25, 4  ;;  %v520_v48 = vrot.slane %v518_v27, 7  ;;  %v2452_v54 = vpack.c.bf16 %v412_v38, %v412_v38 }
 0x10b   : > { %v558_v50 = vshrl.u32 %v2454_v34, 16  ;;  %v415_v35 = vmul.f32 %v407_v41, %v2872_v9  ;;  %v405_v57 = vmul.f32 %v2676_v24, %v2894_v62  ;;  %v2990_v58 = vrot.slane %v1875_v44, 5  ;;  %v630_v44 = vld [vmem:[#allocation2 + $0x3c] sm:$0x1]  ;;  %v633_v47 = vld [vmem:[#allocation2 + $0x40] sm:$0xf] }
 0x10c   : > { %v610_v4 = vsel %vm2968_vm14, %v539_v45, %v609_v36  ;;  %v613_v53 = vsel %vm2784_vm6, %v540_v42, %v612_v37  ;;  %v523_v59 = vor.u32 %v521_v32, %v520_v48  ;;  %v524_v61 = vrot.slane %v520_v48, 4  ;;  %v636_v36 = vld [vmem:[#allocation2 + $0x44] sm:$0x1] }
 0x10d   : > { %611 = vst [vmem:[#allocation2 + $0x20] sm:$0xf] %v610_v4  ;;  %614 = vst [vmem:[#allocation2 + $0x24] sm:$0x1] %v613_v53  ;;  %v560_v1 = vrot.slane %v558_v50, 7  ;;  %v561_v2 = vshll.u32 %v2454_v34, 16  ;;  %v2455_v7 = vpack.c.bf16 %v415_v35, %v415_v35  ;;  %v413_v14 = vmul.f32 %v405_v57, %v2875_v13 }
 0x10e   : > { %v542_v5 = vshrl.u32 %v2452_v54, 16  ;;  %v598_v9 = vsel %vm2968_vm14, %v523_v59, %v597_v56  ;;  %v601_v62 = vsel %vm2784_vm6, %v524_v61, %v600_v51  ;;  %v545_v11 = vshll.u32 %v2452_v54, 16  ;;  %v621_v51 = vld [vmem:[#allocation2 + $0x30] sm:$0xf] }
 0x10f   : > { %599 = vst [vmem:[#allocation2 + $0x10] sm:$0xf] %v598_v9  ;;  %602 = vst [vmem:[#allocation2 + $0x14] sm:$0x1] %v601_v62  ;;  %v563_v15 = vor.u32 %v561_v2, %v560_v1  ;;  %v564_v16 = vrot.slane %v560_v1, 4  ;;  %v566_v60 = vshrl.u32 %v2455_v7, 16  ;;  %v2453_v24 = vpack.c.bf16 %v413_v14, %v413_v14 }
 0x110   : > { %v544_v17 = vrot.slane %v542_v5, 7  ;;  %v3001_v39 = vld [vmem:[#allocation2 + $0x18] sm:$0xf]  ;;  %v569_v20 = vshll.u32 %v2455_v7, 16  ;;  %v3032_v55 = vld [vmem:[#allocation2 + $0x1c] sm:$0x1] }
 0x111   : > { %v702_v25 = vshrl.u32 %v3001_v39, 16  ;;  %v705_v27 = vshll.u32 %v3001_v39, 16  ;;  %v628_v32 = vsel %vm2968_vm14, %v563_v15, %v627_v3  ;;  %v631_v13 = vsel %vm2784_vm6, %v564_v16, %v630_v44  ;;  %v640_v37 = vld [vmem:[#allocation2 + $0x8] sm:$0xf]  ;;  %v3009_v38 = vld [vmem:[#allocation2 + $0xc] sm:$0x1] }
 0x112   : > { %v547_v34 = vor.u32 %v545_v11, %v544_v17  ;;  %v548_v0 = vrot.slane %v544_v17, 4  ;;  %629 = vst [vmem:[#allocation2 + $0x38] sm:$0xf] %v628_v32  ;;  %632 = vst [vmem:[#allocation2 + $0x3c] sm:$0x1] %v631_v13  ;;  %v568_v41 = vrot.slane %v566_v60, 7  ;;  %v2348_v48 = vcombine.low %v2878_v26, %v640_v37 }
 0x113   : > { %v550_v45 = vshrl.u32 %v2453_v24, 16  ;;  %v553_v42 = vshll.u32 %v2453_v24, 16  ;;  %v674_v54 = vshrl.u32 %v640_v37, 16  ;;  %v677_v35 = vshll.u32 %v640_v37, 16  ;;  %v624_v26 = vld [vmem:[#allocation2 + $0x34] sm:$0x1] }
 0x114   : > { %v616_v50 = vsel %vm2968_vm14, %v547_v34, %v615_v12  ;;  %v619_v56 = vsel %vm2784_vm6, %v548_v0, %v618_v18  ;;  %v571_v57 = vor.u32 %v569_v20, %v568_v41  ;;  %v572_v4 = vrot.slane %v568_v41, 4  ;;  %2528 = vmatprep.mubr.msk.bf16.mxu0 %vm262_vm1, %v2348_v48  ;;  %v643_v59 = vld [vmem:[#allocation2 + $0x20] sm:$0xf] }
 0x115   : > { %617 = vst [vmem:[#allocation2 + $0x28] sm:$0xf] %v616_v50  ;;  %620 = vst [vmem:[#allocation2 + $0x2c] sm:$0x1] %v619_v56  ;;  %v552_v53 = vrot.slane %v550_v45, 7  ;;  %v683_v61 = vshll.u32 %v3009_v38, 16 }
 0x116   : > { %v716_v1 = vshrl.u32 %v643_v59, 16  ;;  %v719_v2 = vshll.u32 %v643_v59, 16  ;;  %v676_v3 = vrot.slane %v674_v54, 4  ;;  %v679_v5 = vrot.slane %v677_v35, 5  ;;  %v641_v11 = vld [vmem:[#allocation2 + $0x10] sm:$0xf] }
 0x117   : > { %v634_v7 = vsel %vm2968_vm14, %v571_v57, %v633_v47  ;;  %v637_v9 = vsel %vm2784_vm6, %v572_v4, %v636_v36  ;;  %v555_v62 = vor.u32 %v553_v42, %v552_v53  ;;  %v556_v44 = vrot.slane %v552_v53, 4  ;;  %v3022_v12 = vld [vmem:[#allocation2 + $0x14] sm:$0x1] }
 0x118   : > { %635 = vst [vmem:[#allocation2 + $0x40] sm:$0xf] %v634_v7  ;;  %638 = vst [vmem:[#allocation2 + $0x44] sm:$0x1] %v637_v9  ;;  %v2349_v14 = vcombine.low %v641_v11, %v3001_v39  ;;  %v718_v15 = vrot.slane %v716_v1, 4  ;;  %v721_v16 = vrot.slane %v719_v2, 5  ;;  %v680_v17 = vor.u32 %v679_v5, %v676_v3 }
 0x119   : > { %v622_v60 = vsel %vm2968_vm14, %v555_v62, %v621_v51  ;;  %v625_v18 = vsel %vm2784_vm6, %v556_v44, %v624_v26  ;;  %v685_v20 = vrot.slane %v683_v61, 5  ;;  %v998_v24 = vrot.slane %v3009_v38, 5  ;;  %v646_v13 = vld [vmem:[#allocation2 + $0x38] sm:$0xf]  ;;  %v3053_v2 = vld [vmem:[#allocation2 + $0x3c] sm:$0x1] }
 0x11a   : > { %623 = vst [vmem:[#allocation2 + $0x30] sm:$0xf] %v622_v60  ;;  %626 = vst [vmem:[#allocation2 + $0x34] sm:$0x1] %v625_v18  ;;  %2529 = vmatmul.mubr.msk.bf16.vlgmr.msra.gmra.mxu0 %vm262_vm1, %v2349_v14  ;;  %v681_v32 = vrot.slane %v680_v17, 4  ;;  %v688_v34 = vshrl.u32 %v641_v11, 16  ;;  %v722_v1 = vor.u32 %v721_v16, %v718_v15 }
 0x11b   : > { %v691_v39 = vshll.u32 %v641_v11, 16  ;;  %v697_v0 = vshll.u32 %v3022_v12, 16  ;;  %v758_v47 = vshrl.u32 %v646_v13, 16  ;;  %v761_v36 = vshll.u32 %v646_v13, 16  ;;  %2547 = vmatpush3.bf16.msra.mxu0 %v2946_v52  ;;  %v3044_v52 = vld [vmem:[#allocation2 + $0x24] sm:$0x1] }
 0x11c   : > { %v704_v37 = vrot.slane %v702_v25, 4  ;;  %v707_v6 = vrot.slane %v705_v27, 5  ;;  %v644_v41 = vld [vmem:[#allocation2 + $0x28] sm:$0xf]  ;;  %v686_v45 = vsel %vm2903_vm12, %v681_v32, %v685_v20  ;;  %v690_v42 = vrot.slane %v688_v34, 4  ;;  %2612 = vmatprep.subr.msk.bf16.mxu0 %vm275_vm0, %v2923_v49 }
 0x11d   : > { %v693_v48 = vrot.slane %v691_v39, 5  ;;  %v699_v50 = vrot.slane %v697_v0, 5  ;;  %v730_v56 = vshrl.u32 %v644_v41, 16  ;;  %v733_v51 = vshll.u32 %v644_v41, 16  ;;  %v3046_v53 = vld [vmem:[#allocation2 + $0x2c] sm:$0x1] }
 0x11e   : > { %v2350_v54 = vcombine.low %v643_v59, %v644_v41  ;;  %v2340_v25 = vcombine.low %v672_v22, %v686_v45  ;;  %v760_v27 = vrot.slane %v758_v47, 4  ;;  %v763_v35 = vrot.slane %v761_v36, 5  ;;  %v2633_v7 = vld [vmem:[#allocation2 + $0x8] ss:$8 sps:$4 sm:$0xff]   ;;  %v968_v41 = vld [vmem:[#allocation2 + $0x18] sm:$0xe] }
 0x11f   : > { %v694_v57 = vor.u32 %v693_v48, %v690_v42  ;;  %v708_v4 = vor.u32 %v707_v6, %v704_v37  ;;  %v732_v61 = vrot.slane %v730_v56, 4  ;;  %v735_v26 = vrot.slane %v733_v51, 5  ;;  %v966_v11 = vld [vmem:[#allocation2 + $0x8] sm:$0xe]  ;;  %v967_v34 = vld [vmem:[#allocation2 + $0x10] sm:$0xe] }
 0x120   : > { %2532 = vmatprep.mubr.msk.bf16.mxu0 %vm262_vm1, %v2350_v54  ;;  %2518 = vmatprep.mubr.msk.bf16.mxu1 %vm262_vm1, %v2340_v25  ;;  %v711_v49 = vshll.u32 %v3032_v55, 16  ;;  %v1002_v59 = vrot.slane %v3022_v12, 5  ;;  %v1006_v22 = vrot.slane %v3032_v55, 5  ;;  %v725_v9 = vshll.u32 %v3044_v52, 16  ;;  %v3069_v45 = vld [vmem:[#allocation2 + $0xc] sm:$0x1] }
 0x121   : > { %v695_v8 = vrot.slane %v694_v57, 4  ;;  %v709_v10 = vrot.slane %v708_v4, 4  ;;  %v645_v3 = vld [vmem:[#allocation2 + $0x30] sm:$0xf]  ;;  %v736_v62 = vor.u32 %v735_v26, %v732_v61  ;;  %v739_v44 = vshll.u32 %v3046_v53, 16 }
 0x122   : > { %v713_v5 = vrot.slane %v711_v49, 5  ;;  %v744_v14 = vshrl.u32 %v645_v3, 16  ;;  %v747_v17 = vshll.u32 %v645_v3, 16  ;;  %v2351_v60 = vcombine.low %v645_v3, %v646_v13  ;;  %v3059_v18 = vld [vmem:[#allocation2 + $0x34] sm:$0x1] }
 0x123   : > { %v700_v12 = vsel %vm2903_vm12, %v695_v8, %v699_v50  ;;  %v723_v16 = vrot.slane %v722_v1, 4  ;;  %v727_v20 = vrot.slane %v725_v9, 5  ;;  %v737_v32 = vrot.slane %v736_v62, 4  ;;  %v3074_v51 = vld [vmem:[#allocation2 + $0x14] sm:$0x1] }
 0x124   : > { %v714_v15 = vsel %vm2903_vm12, %v709_v10, %v713_v5  ;;  %v746_v39 = vrot.slane %v744_v14, 4  ;;  %v749_v0 = vrot.slane %v747_v17, 5  ;;  %2533 = vmatmul.mubr.msk.bf16.gmra.mxu0 %vm262_vm1, %v2351_v60  ;;  %v741_v36 = vrot.slane %v739_v44, 5  ;;  %v1474_v54 = vld [vmem:[#allocation2 + $0x8] sm:$0xe] }
 0x125   : > { %v2341_v47 = vcombine.low %v700_v12, %v714_v15  ;;  %2548 = vmatprep.mubr.msk.bf16.mxu0 %vm262_vm1, %v2633_v7  ;;  %v728_v13 = vsel %vm2903_vm12, %v723_v16, %v727_v20  ;;  %v753_v55 = vshll.u32 %v3059_v18, 16  ;;  %v764_v37 = vor.u32 %v763_v35, %v760_v27  ;;  %v1475_v4 = vld [vmem:[#allocation2 + $0x10] sm:$0xe]  ;;  %v2634_v61 = vld [vmem:[#allocation2 + $0x18] ss:$8 sps:$4 sm:$0xff]  }
 0x126   : > { %v767_v6 = vshll.u32 %v3053_v2, 16  ;;  %v742_v42 = vsel %vm2903_vm12, %v737_v32, %v741_v36  ;;  %v750_v48 = vor.u32 %v749_v0, %v746_v39  ;;  %v2357_v50 = vrot.slane %v966_v11, 9  ;;  %v969_v10 = vld [vmem:[#allocation2 + $0x20] sm:$0xe]  ;;  %v970_v1 = vld [vmem:[#allocation2 + $0x28] sm:$0xe] }
 0x127   : > { %2519 = vmatmul.mubr.msk.bf16.vlgmr.msra.gmra.mxu1 %vm262_vm1, %v2341_v47  ;;  %v2358_v56 = vrot.slane %v967_v34, 9  ;;  %v2342_v25 = vcombine.low %v728_v13, %v742_v42  ;;  %v755_v27 = vrot.slane %v753_v55, 5  ;;  %v765_v35 = vrot.slane %v764_v37, 4  ;;  %v2635_v5 = vld [vmem:[#allocation2 + $0x28] ss:$8 sps:$4 sm:$0xff]  }
 0x128   : > { %2537 = vmatpush3.bf16.msra.mxu1 %v2942_v33  ;;  %v769_v57 = vrot.slane %v767_v6, 5  ;;  %v751_v26 = vrot.slane %v750_v48, 4  ;;  %v999_v49 = vsel %vm2916_vm13, %v2357_v50, %v998_v24  ;;  %v2359_v33 = vrot.slane %v968_v41, 9  ;;  %v3091_v24 = vld [vmem:[#allocation2 + $0x1c] sm:$0x1] }
 0x129   : > { %2611 = vmatprep.subr.msk.bf16.mxu1 %vm275_vm0, %v2910_v21  ;;  %v3085_v8 = vsel %vm2916_vm13, %v2358_v56, %v1002_v59  ;;  %2522 = vmatprep.mubr.msk.bf16.mxu1 %vm262_vm1, %v2342_v25  ;;  %v2391_v38 = vrot.slane %v1474_v54, 9  ;;  %v1500_v7 = vrot.slane %v3069_v45, 5  ;;  %v3093_v9 = vld [vmem:[#allocation2 + $0x24] sm:$0x1]  ;;  %v2392_v62 = vrot.slane %v1475_v4, 9 }
 0x12a   : > { %v770_v3 = vsel %vm2903_vm12, %v765_v35, %v769_v57  ;;  %v756_v21 = vsel %vm2903_vm12, %v751_v26, %v755_v27  ;;  %v3099_v59 = vsel %vm2916_vm13, %v2359_v33, %v1006_v22  ;;  %v1504_v44 = vrot.slane %v3074_v51, 5  ;;  %v1476_v11 = vld [vmem:[#allocation2 + $0x18] sm:$0xe]  ;;  %v1477_v14 = vld [vmem:[#allocation2 + $0x20] sm:$0xe] }
 0x12b   : > { %v2343_v17 = vcombine.low %v756_v21, %v770_v3  ;;  %v2365_v60 = vcombine.low %v2928_v28, %v999_v49  ;;  %v2366_v12 = vcombine.low %v3085_v8, %v3099_v59  ;;  %v2360_v15 = vrot.slane %v969_v10, 9  ;;  %v971_v16 = vld [vmem:[#allocation2 + $0x30] sm:$0xe]  ;;  %v972_v20 = vld [vmem:[#allocation2 + $0x38] sm:$0xe] }
 0x12c   : > { %2549 = vmatmul.mubr.msk.bf16.vlgmr.msra.gmra.mxu0 %vm262_vm1, %v2634_v61  ;;  %v1505_v22 = vsel %vm2916_vm13, %v2392_v62, %v1504_v44  ;;  %v1010_v32 = vrot.slane %v3044_v52, 5  ;;  %v2361_v34 = vrot.slane %v970_v1, 9  ;;  %v1014_v39 = vrot.slane %v3046_v53, 5  ;;  %v3110_v0 = vld [vmem:[#allocation2 + $0x2c] sm:$0x1] }
 0x12d   : > { %2552 = vmatprep.mubr.msk.bf16.mxu0 %vm262_vm1, %v2635_v5  ;;  %v1501_v28 = vsel %vm2916_vm13, %v2391_v38, %v1500_v7  ;;  %2567 = vmatpush3.bf16.msra.mxu0 %v2955_v40  ;;  %v2393_v47 = vrot.slane %v1476_v11, 9  ;;  %v1508_v36 = vrot.slane %v3091_v24, 5  ;;  %v2394_v13 = vrot.slane %v1477_v14, 9  ;;  %v1478_v55 = vld [vmem:[#allocation2 + $0x28] sm:$0xe] }
 0x12e   : > { %v1011_v52 = vsel %vm2916_vm13, %v2360_v15, %v1010_v32  ;;  %v1015_v53 = vsel %vm2916_vm13, %v2361_v34, %v1014_v39  ;;  %v1512_v37 = vrot.slane %v3093_v9, 5  ;;  %v2362_v6 = vrot.slane %v971_v16, 9  ;;  %v3123_v41 = vld [vmem:[#allocation2 + $0x34] sm:$0x1]  ;;  %v1479_v42 = vld [vmem:[#allocation2 + $0x30] sm:$0xe]  ;;  %2614 = vmatprep.subr.msk.bf16.mxu0 %vm275_vm0, %v2938_v31 }
 0x12f   : > { %2523 = vmatmul.mubr.msk.bf16.gmra.mxu1 %vm262_vm1, %v2343_v17  ;;  %v2400_v40 = vcombine.low %v1501_v28, %v1505_v22  ;;  %v2367_v48 = vcombine.low %v1011_v52, %v1015_v53  ;;  %v1018_v50 = vrot.slane %v3059_v18, 5  ;;  %v2363_v56 = vrot.slane %v972_v20, 9  ;;  %v1244_v54 = vld [vmem:[#allocation2 + $0x8] sm:$0xf]  ;;  %v1246_v4 = vld [vmem:[#allocation2 + $0x10] sm:$0xf] }
 0x130   : > { %2538 = vmatprep.mubr.msk.bf16.mxu1 %vm262_vm1, %v2365_v60  ;;  %v3131_v25 = vsel %vm2916_vm13, %v2394_v13, %v1512_v37  ;;  %v1022_v27 = vrot.slane %v3053_v2, 5  ;;  %v2395_v35 = vrot.slane %v1478_v55, 9  ;;  %v1516_v57 = vrot.slane %v3110_v0, 5  ;;  %v2636_v61 = vld [vmem:[#allocation2 + $0x38] ss:$8 sps:$4 sm:$0xff]  }
 0x131   : > { %v1509_v31 = vsel %vm2916_vm13, %v2393_v47, %v1508_v36  ;;  %v3139_v26 = vsel %vm2916_vm13, %v2362_v6, %v1018_v50  ;;  %v2396_v18 = vrot.slane %v1479_v42, 9  ;;  %v1520_v49 = vrot.slane %v3123_v41, 5  ;;  %v3147_v3 = vld [vmem:[#allocation2 + $0x3c] sm:$0x1]  ;;  %v1480_v5 = vld [vmem:[#allocation2 + $0x38] sm:$0xe] }
 0x132   : > { %v2401_v33 = vcombine.low %v1509_v31, %v3131_v25  ;;  %v3145_v2 = vsel %vm2916_vm13, %v2363_v56, %v1022_v27  ;;  %v1261_v10 = vshrl.u32 %v1244_v54, 16  ;;  %v1264_v1 = vshll.u32 %v1244_v54, 16  ;;  %v3154_v44 = vld [vmem:[#allocation2 + $0x44] sm:$0x1]  ;;  %v1481_v11 = vld [vmem:[#allocation2 + $0x40] sm:$0xe] }
 0x133   : > { %v1517_v38 = vsel %vm2916_vm13, %v2395_v35, %v1516_v57  ;;  %v1521_v7 = vsel %vm2916_vm13, %v2396_v18, %v1520_v49  ;;  %v1270_v21 = vshll.u32 %v3069_v45, 16  ;;  %v1275_v62 = vshrl.u32 %v1246_v4, 16  ;;  %v1248_v16 = vld [vmem:[#allocation2 + $0x18] sm:$0xf]  ;;  %v1250_v36 = vld [vmem:[#allocation2 + $0x20] sm:$0xf] }
 0x134   : > { %2553 = vmatmul.mubr.msk.bf16.gmra.mxu0 %vm262_vm1, %v2636_v61  ;;  %v2368_v14 = vcombine.low %v3139_v26, %v3145_v2  ;;  %v1263_v17 = vrot.slane %v1261_v10, 4  ;;  %v1266_v60 = vrot.slane %v1264_v1, 5  ;;  %v1278_v15 = vshll.u32 %v1246_v4, 16  ;;  %v1753_v57 = vld [vmem:[#allocation2 + $0x18] sm:$0xf] }
 0x135   : > { %2568 = vmatprep.mubr.msk.bf16.mxu0 %vm262_vm1, %v2400_v40  ;;  %v2402_v20 = vcombine.low %v1517_v38, %v1521_v7  ;;  %v1277_v22 = vrot.slane %v1275_v62, 4  ;;  %v1284_v32 = vshll.u32 %v3074_v51, 16  ;;  %v2397_v45 = vrot.slane %v1480_v5, 9  ;;  %v3184_v61 = vld [vmem:[#allocation2 + $0x1c] sm:$0x1] }
 0x136   : > { %v1267_v34 = vor.u32 %v1266_v60, %v1263_v17  ;;  %v1280_v39 = vrot.slane %v1278_v15, 5  ;;  %v1524_v28 = vrot.slane %v3147_v3, 5  ;;  %v2398_v47 = vrot.slane %v1481_v11, 9  ;;  %v1252_v5 = vld [vmem:[#allocation2 + $0x28] sm:$0xf] }
 0x137   : > { %2539 = vmatmul.mubr.msk.bf16.vlgmr.msra.gmra.mxu1 %vm262_vm1, %v2366_v12  ;;  %v1272_v13 = vrot.slane %v1270_v21, 5  ;;  %v1528_v55 = vrot.slane %v3154_v44, 5  ;;  %v1289_v51 = vshrl.u32 %v1248_v16, 16  ;;  %v1292_v52 = vshll.u32 %v1248_v16, 16  ;;  %v1751_v12 = vld [vmem:[#allocation2 + $0x10] sm:$0xf] }
 0x138   : > { %2557 = vmatpush3.bf16.msra.mxu1 %v2950_v29  ;;  %2542 = vmatprep.mubr.msk.bf16.mxu1 %vm262_vm1, %v2367_v48  ;;  %v1268_v53 = vrot.slane %v1267_v34, 4  ;;  %v1281_v37 = vor.u32 %v1280_v39, %v1277_v22  ;;  %v1525_v8 = vsel %vm2916_vm13, %v2397_v45, %v1524_v28  ;;  %v1298_v59 = vshll.u32 %v3091_v24, 16  ;;  %v3176_v48 = vld [vmem:[#allocation2 + $0x14] sm:$0x1]  ;;  %v1254_v21 = vld [vmem:[#allocation2 + $0x30] sm:$0xf] }
 0x139   : > { %2613 = vmatprep.subr.msk.bf16.mxu1 %vm275_vm0, %v2933_v30  ;;  %v1529_v29 = vsel %vm2916_vm13, %v2398_v47, %v1528_v55  ;;  %v1291_v6 = vrot.slane %v1289_v51, 4  ;;  %v1294_v42 = vrot.slane %v1292_v52, 5  ;;  %v1303_v40 = vshrl.u32 %v1250_v36, 16 }
 0x13a   : > { %v1273_v50 = vsel %vm2903_vm12, %v1268_v53, %v1272_v13  ;;  %v1282_v56 = vrot.slane %v1281_v37, 4  ;;  %v1286_v54 = vrot.slane %v1284_v32, 5  ;;  %v2403_v25 = vcombine.low %v1525_v8, %v1529_v29  ;;  %v1757_v53 = vld [vmem:[#allocation2 + $0x28] sm:$0xf]  ;;  %v3200_v37 = vld [vmem:[%s3385_s3 + $0x20] sm:$0xf] }
 0x13b   : > { %v1295_v27 = vor.u32 %v1294_v42, %v1291_v6  ;;  %v1305_v35 = vrot.slane %v1303_v40, 4  ;;  %v1306_v30 = vshll.u32 %v1250_v36, 16  ;;  %v1312_v24 = vshll.u32 %v3093_v9, 16  ;;  %v1755_v36 = vld [vmem:[#allocation2 + $0x20] sm:$0xf] }
 0x13c   : > { %2569 = vmatmul.mubr.msk.bf16.vlgmr.msra.gmra.mxu0 %vm262_vm1, %v2401_v33  ;;  %v1287_v4 = vsel %vm2903_vm12, %v1282_v56, %v1286_v54  ;;  %v1768_v31 = vshrl.u32 %v1751_v12, 16  ;;  %v1771_v26 = vshll.u32 %v1751_v12, 16  ;;  %v1777_v18 = vshll.u32 %v3176_v48, 16  ;;  %v3205_v6 = vld [vmem:[#allocation2 + $0x24] sm:$0x1] }
 0x13d   : > { %2572 = vmatprep.mubr.msk.bf16.mxu0 %vm262_vm1, %v2402_v20  ;;  %v2383_v49 = vcombine.low %v1273_v50, %v1287_v4  ;;  %v1296_v2 = vrot.slane %v1295_v27, 4  ;;  %v1300_v10 = vrot.slane %v1298_v59, 5  ;;  %v1308_v1 = vrot.slane %v1306_v30, 5  ;;  %2587 = vmatpush3.bf16.msra.mxu0 %v2964_v43  ;;  %v3209_v56 = vld [vmem:[#allocation2 + $0x2c] sm:$0x1] }
 0x13e   : > { %v1314_v9 = vrot.slane %v1312_v24, 5  ;;  %v1770_v33 = vrot.slane %v1768_v31, 4  ;;  %v1773_v38 = vrot.slane %v1771_v26, 5  ;;  %v1782_v7 = vshrl.u32 %v1753_v57, 16 }
 0x13f   : > { %2543 = vmatmul.mubr.msk.bf16.gmra.mxu1 %vm262_vm1, %v2368_v14  ;;  %v1309_v62 = vor.u32 %v1308_v1, %v1305_v35  ;;  %v1779_v11 = vrot.slane %v1777_v18, 5  ;;  %v1785_v17 = vshll.u32 %v1753_v57, 16  ;;  %v1791_v60 = vshll.u32 %v3184_v61, 16  ;;  %v1256_v57 = vld [vmem:[#allocation2 + $0x38] sm:$0xf] }
 0x140   : > { %2558 = vmatprep.mubr.msk.bf16.mxu1 %vm262_vm1, %v2383_v49  ;;  %v1774_v15 = vor.u32 %v1773_v38, %v1770_v33  ;;  %v1784_v16 = vrot.slane %v1782_v7, 4  ;;  %v1317_v20 = vshrl.u32 %v1252_v5, 16  ;;  %v1320_v22 = vshll.u32 %v1252_v5, 16  ;;  %v1258_v18 = vld [vmem:[#allocation2 + $0x40] sm:$0xf] }
 0x141   : > { %v1301_v43 = vsel %vm2903_vm12, %v1296_v2, %v1300_v10  ;;  %v1310_v14 = vrot.slane %v1309_v62, 4  ;;  %v1787_v32 = vrot.slane %v1785_v17, 5  ;;  %v1793_v45 = vrot.slane %v1791_v60, 5 }
 0x142   : > { %v1775_v34 = vrot.slane %v1774_v15, 4  ;;  %v1319_v39 = vrot.slane %v1317_v20, 4  ;;  %v1322_v28 = vrot.slane %v1320_v22, 5  ;;  %v1331_v47 = vshrl.u32 %v1254_v21, 16  ;;  %v3223_v20 = vld [vmem:[#allocation2 + $0x34] sm:$0x1] }
 0x143   : > { %v1315_v13 = vsel %vm2903_vm12, %v1310_v14, %v1314_v9  ;;  %v1788_v55 = vor.u32 %v1787_v32, %v1784_v16  ;;  %v1326_v51 = vshll.u32 %v3110_v0, 16  ;;  %v1334_v52 = vshll.u32 %v1254_v21, 16 }
 0x144   : > { %2573 = vmatmul.mubr.msk.bf16.gmra.mxu0 %vm262_vm1, %v2403_v25  ;;  %v2384_v8 = vcombine.low %v1301_v43, %v1315_v13  ;;  %v1780_v59 = vsel %vm2903_vm12, %v1775_v34, %v1779_v11  ;;  %v1323_v12 = vor.u32 %v1322_v28, %v1319_v39  ;;  %v1333_v29 = vrot.slane %v1331_v47, 4  ;;  %v1759_v11 = vld [vmem:[#allocation2 + $0x30] sm:$0xf] }
 0x145   : > { %v1789_v42 = vrot.slane %v1788_v55, 4  ;;  %v1336_v40 = vrot.slane %v1334_v52, 5  ;;  %v1340_v0 = vshll.u32 %v3123_v41, 16  ;;  %v1796_v50 = vshrl.u32 %v1755_v36, 16 }
 0x146   : > { %v1799_v54 = vshll.u32 %v1755_v36, 16  ;;  %v1810_v27 = vshrl.u32 %v1757_v53, 16  ;;  %v1324_v35 = vrot.slane %v1323_v12, 4  ;;  %v1328_v31 = vrot.slane %v1326_v51, 5  ;;  %v1763_v12 = vld [vmem:[#allocation2 + $0x40] sm:$0xf] }
 0x147   : > { %2559 = vmatmul.mubr.msk.bf16.vlgmr.msra.gmra.mxu1 %vm262_vm1, %v2384_v8  ;;  %v1794_v25 = vsel %vm2903_vm12, %v1789_v42, %v1793_v45  ;;  %v1337_v30 = vor.u32 %v1336_v40, %v1333_v29  ;;  %v1798_v24 = vrot.slane %v1796_v50, 4  ;;  %v1805_v41 = vshll.u32 %v3205_v6, 16  ;;  %v1761_v45 = vld [vmem:[#allocation2 + $0x38] sm:$0xf] }
 0x148   : > { %2577 = vmatpush3.bf16.msra.mxu1 %v2960_v46  ;;  %v2418_v4 = vcombine.low %v1780_v59, %v1794_v25  ;;  %v1801_v26 = vrot.slane %v1799_v54, 5  ;;  %v1342_v2 = vrot.slane %v1340_v0, 5  ;;  %v1812_v10 = vrot.slane %v1810_v27, 4 }
 0x149   : > { %2615 = vmatprep.subr.msk.bf16.mxu1 %vm275_vm0, %v3200_v37  ;;  %v1338_v49 = vrot.slane %v1337_v30, 4  ;;  %v1813_v46 = vshll.u32 %v1757_v53, 16  ;;  %v1819_v5 = vshll.u32 %v3209_v56, 16  ;;  %v1345_v9 = vshrl.u32 %v1256_v57, 16 }
 0x14a   : > { %2588 = vmatprep.mubr.msk.bf16.mxu0 %vm262_vm1, %v2418_v4  ;;  %v1802_v1 = vor.u32 %v1801_v26, %v1798_v24  ;;  %v1348_v33 = vshll.u32 %v1256_v57, 16  ;;  %v1329_v38 = vsel %vm2903_vm12, %v1324_v35, %v1328_v31  ;;  %v1359_v62 = vshrl.u32 %v1258_v18, 16  ;;  %v3235_v24 = vld [vmem:[#allocation2 + $0x44] sm:$0x1] }
 0x14b   : > { %v1343_v7 = vsel %vm2903_vm12, %v1338_v49, %v1342_v2  ;;  %v1815_v21 = vrot.slane %v1813_v46, 5  ;;  %v1347_v15 = vrot.slane %v1345_v9, 4  ;;  %v1807_v22 = vrot.slane %v1805_v41, 5 }
 0x14c   : > { %v2385_v17 = vcombine.low %v1329_v38, %v1343_v7  ;;  %v1803_v60 = vrot.slane %v1802_v1, 4  ;;  %v1350_v16 = vrot.slane %v1348_v33, 5  ;;  %v1361_v14 = vrot.slane %v1359_v62, 4  ;;  %v2637_v33 = vld [vmem:[#allocation2 + $0x10] ss:$8 sps:$4 sm:$0xff]  }
 0x14d   : > { %v1816_v43 = vor.u32 %v1815_v21, %v1812_v10  ;;  %v1362_v32 = vshll.u32 %v1258_v18, 16  ;;  %v1821_v34 = vrot.slane %v1819_v5, 5  ;;  %v1354_v28 = vshll.u32 %v3147_v3, 16  ;;  %v3233_v3 = vld [vmem:[#allocation2 + $0x3c] sm:$0x1] }
 0x14e   : > { %2562 = vmatprep.mubr.msk.bf16.mxu1 %vm262_vm1, %v2385_v17  ;;  %v1351_v39 = vor.u32 %v1350_v16, %v1347_v15  ;;  %v1824_v47 = vshrl.u32 %v1759_v11, 16  ;;  %v1368_v55 = vshll.u32 %v3154_v44, 16  ;;  %v1827_v51 = vshll.u32 %v1759_v11, 16 }
 0x14f   : > { %v1817_v36 = vrot.slane %v1816_v43, 4  ;;  %v1364_v13 = vrot.slane %v1362_v32, 5  ;;  %v1808_v52 = vsel %vm2903_vm12, %v1803_v60, %v1807_v22  ;;  %v1833_v8 = vshll.u32 %v3223_v20, 16  ;;  %v2638_v32 = vld [vmem:[#allocation2 + $0x20] ss:$8 sps:$4 sm:$0xff]  }
 0x150   : > { %v1826_v53 = vrot.slane %v1824_v47, 4  ;;  %v1838_v59 = vshrl.u32 %v1761_v45, 16  ;;  %v1352_v42 = vrot.slane %v1351_v39, 4  ;;  %v1829_v0 = vrot.slane %v1827_v51, 5  ;;  %v1982_v39 = vld [vmem:[#allocation2 + $0x18] sm:$0xe] }
 0x151   : > { %v1822_v29 = vsel %vm2903_vm12, %v1817_v36, %v1821_v34  ;;  %v1365_v40 = vor.u32 %v1364_v13, %v1361_v14  ;;  %v1356_v54 = vrot.slane %v1354_v28, 5  ;;  %v1841_v27 = vshll.u32 %v1761_v45, 16  ;;  %v1981_v14 = vld [vmem:[#allocation2 + $0x10] sm:$0xe]  ;;  %v1984_v36 = vld [vmem:[#allocation2 + $0x28] sm:$0xe] }
 0x152   : > { %v2419_v50 = vcombine.low %v1808_v52, %v1822_v29  ;;  %v1840_v44 = vrot.slane %v1838_v59, 4  ;;  %v1370_v35 = vrot.slane %v1368_v55, 5  ;;  %v1830_v30 = vor.u32 %v1829_v0, %v1826_v53  ;;  %v2639_v34 = vld [vmem:[#allocation2 + $0x30] ss:$8 sps:$4 sm:$0xff]   ;;  %v2640_v13 = vld [vmem:[#allocation2 + $0x40] ss:$8 sps:$4 sm:$0xff]  }
 0x153   : > { %v1366_v25 = vrot.slane %v1365_v40, 4  ;;  %v1852_v57 = vshrl.u32 %v1763_v12, 16  ;;  %v1835_v4 = vrot.slane %v1833_v8, 5  ;;  %v1843_v31 = vrot.slane %v1841_v27, 5  ;;  %v1983_v51 = vld [vmem:[#allocation2 + $0x20] sm:$0xe] }
 0x154   : > { %2589 = vmatmul.mubr.msk.bf16.vlgmr.msra.gmra.mxu0 %vm262_vm1, %v2419_v50  ;;  %v1847_v26 = vshll.u32 %v3233_v3, 16  ;;  %v1855_v41 = vshll.u32 %v1763_v12, 16  ;;  %v1357_v18 = vsel %vm2903_vm12, %v1352_v42, %v1356_v54  ;;  %v1831_v2 = vrot.slane %v1830_v30, 4  ;;  %v1986_v8 = vld [vmem:[#allocation2 + $0x38] sm:$0xe] }
 0x155   : > { %v1371_v49 = vsel %vm2903_vm12, %v1366_v25, %v1370_v35  ;;  %v1854_v10 = vrot.slane %v1852_v57, 4  ;;  %v1844_v1 = vor.u32 %v1843_v31, %v1840_v44  ;;  %v1861_v9 = vshll.u32 %v3235_v24, 16  ;;  %v1988_v50 = vld [vmem:[#allocation2 + $0x48] sm:$0xe]  ;;  %v1987_v54 = vld [vmem:[#allocation2 + $0x40] sm:$0xe] }
 0x156   : > { %v2386_v46 = vcombine.low %v1357_v18, %v1371_v49  ;;  %v1857_v5 = vrot.slane %v1855_v41, 5  ;;  %v1836_v38 = vsel %vm2903_vm12, %v1831_v2, %v1835_v4  ;;  %v1849_v21 = vrot.slane %v1847_v26, 5  ;;  %v2709_v30 = vld [vmem:[#allocation2 + $0x4c] sm:$0x1] }
 0x157   : > { %v1845_v7 = vrot.slane %v1844_v1, 4  ;;  %v1863_v60 = vrot.slane %v1861_v9, 5  ;;  %v1878_v15 = vsel %vm2903_vm12, %v2974_v63, %v2990_v58  ;;  %v2064_v45 = vsel %vm275_vm0, %v3200_v37, 0  ;;  %v1985_v37 = vld [vmem:[#allocation2 + $0x30] sm:$0xe] }
 0x158   : > { %2563 = vmatmul.mubr.msk.bf16.gmra.mxu1 %vm262_vm1, %v2386_v46  ;;  %v1858_v62 = vor.u32 %v1857_v5, %v1854_v10  ;;  %v2426_v28 = vrot.slane %v1981_v14, 9  ;;  %v2007_v63 = vrot.slane %v3176_v48, 5  ;;  %v2427_v19 = vrot.slane %v1982_v39, 9 }
 0x159   : > { %2578 = vmatprep.mubr.msk.bf16.mxu1 %vm262_vm1, %v2637_v33  ;;  %v1850_v11 = vsel %vm2903_vm12, %v1845_v7, %v1849_v21  ;;  %v2011_v58 = vrot.slane %v3184_v61, 5  ;;  %v2429_v53 = vrot.slane %v1984_v36, 9  ;;  %v2019_v48 = vrot.slane %v3209_v56, 5 }
 0x15a   : > { %v1859_v17 = vrot.slane %v1858_v62, 4  ;;  %v2420_v16 = vcombine.low %v1836_v38, %v1850_v11  ;;  %v2008_v47 = vsel %vm2916_vm13, %v2426_v28, %v2007_v63  ;;  %v2430_v59 = vrot.slane %v1985_v37, 9 }
 0x15b   : > { %v2012_v55 = vsel %vm2916_vm13, %v2427_v19, %v2011_v58  ;;  %v2023_v61 = vrot.slane %v3223_v20, 5  ;;  %v2428_v12 = vrot.slane %v1983_v51, 9  ;;  %v2015_v29 = vrot.slane %v3205_v6, 5 }
 0x15c   : > { %v1864_v22 = vsel %vm2903_vm12, %v1859_v17, %v1863_v60  ;;  %2592 = vmatprep.mubr.msk.bf16.mxu0 %vm262_vm1, %v2420_v16  ;;  %v2435_v52 = vcombine.low %v2008_v47, %v2012_v55  ;;  %v2431_v42 = vrot.slane %v1986_v8, 9  ;;  %v2027_v40 = vrot.slane %v3233_v3, 5 }
 0x15d   : > { %v2421_v43 = vcombine.low %v1864_v22, %v1878_v15  ;;  %v2020_v0 = vsel %vm2916_vm13, %v2429_v53, %v2019_v48  ;;  %v2024_v56 = vsel %vm2916_vm13, %v2430_v59, %v2023_v61  ;;  %v2016_v44 = vsel %vm2916_vm13, %v2428_v12, %v2015_v29 }
 0x15e   : > { %v2436_v20 = vcombine.low %v2016_v44, %v2020_v0  ;;  %v2028_v27 = vsel %vm2916_vm13, %v2431_v42, %v2027_v40  ;;  %v2433_v25 = vrot.slane %v1988_v50, 9  ;;  %v2432_v35 = vrot.slane %v1987_v54, 9 }
 0x15f   : > { %2593 = vmatmul.mubr.msk.bf16.gmra.mxu0 %vm262_vm1, %v2421_v43  ;;  %v2437_v6 = vcombine.low %v2024_v56, %v2028_v27  ;;  %v2031_v3 = vrot.slane %v3235_v24, 5  ;;  %v2035_v57 = vrot.slane %v2709_v30, 5 }
 0x160   : > { %2579 = vmatmul.mubr.msk.bf16.vlgmr.msra.gmra.mxu1 %vm262_vm1, %v2638_v32 }
 0x161   : > { %2597 = vmatpush3.bf16.msra.mxu1 %v2064_v45  ;;  %2582 = vmatprep.mubr.msk.bf16.mxu1 %vm262_vm1, %v2639_v34  ;;  %v2032_v4 = vsel %vm2916_vm13, %v2432_v35, %v2031_v3  ;;  %v2036_v31 = vsel %vm2916_vm13, %v2433_v25, %v2035_v57 }
 0x162   : > { %v2438_v26 = vcombine.low %v2032_v4, %v2036_v31 }
 0x168   : > { %2583 = vmatmul.mubr.msk.bf16.gmra.mxu1 %vm262_vm1, %v2640_v13 }
 0x169   : > { %2598 = vmatprep.mubr.msk.bf16.mxu1 %vm262_vm1, %v2435_v52 }
 0x170   : > { %2599 = vmatmul.mubr.msk.bf16.vlgmr.msra.gmra.mxu1 %vm262_vm1, %v2436_v20 }
 0x171   : > { %2602 = vmatprep.mubr.msk.bf16.mxu1 %vm262_vm1, %v2437_v6 }
 0x178   : > { %2603 = vmatmul.mubr.msk.bf16.gmra.mxu1 %vm262_vm1, %v2438_v26 }
 0x1da   : > { %v2530_v41 = vpop.f32.mrf.mxu0 }
 0x1dc   : > { %v934_v18 = vpop.f32.mrf.mxu0 }
 0x1de   : > { %v2531_v49 = vpop.f32.mrf.mxu0 }
 0x1e0   : > { %v937_v2 = vpop.f32.mrf.mxu0 }
 0x1e4   : > { %v2534_v24 = vpop.f32.mrf.mxu0 }
 0x1e6   : > { %v950_v46 = vpop.f32.mrf.mxu0 }
 0x1e7   : > { %v2520_v10 = vpop.f32.mrf.mxu1 }
 0x1e8   : > { %v2535_v5 = vpop.f32.mrf.mxu0  ;;  %v943_v40 = vadd.f32 %v2530_v41, %v2520_v10 }
 0x1e9   : > { %v834_v1 = vpop.f32.mrf.mxu1 }
 0x1ea   : > { %v3290_v33 = vpop.f32.mrf.mxu0  ;;  %v935_v50 = vadd.f32 %v934_v18, %v834_v1 }
 0x1eb   : > { %v2521_v9 = vpop.f32.mrf.mxu1 }
 0x1ec   : > { %v2550_v7 = vpop.f32.mrf.mxu0  ;;  %v946_v20 = vadd.f32 %v2531_v49, %v2521_v9 }
 0x1ed   : > { %v837_v38 = vpop.f32.mrf.mxu1 }
 0x1ee   : > { %v1205_v23 = vpop.f32.mrf.mxu0  ;;  %v938_v6 = vadd.f32 %v937_v2, %v837_v38 }
 0x1ef   : > { %v2524_v21 = vpop.f32.mrf.mxu1 }
 0x1f0   : > { %v2551_v11 = vpop.f32.mrf.mxu0 }
 0x1f1   : > { %v850_v62 = vpop.f32.mrf.mxu1 }
 0x1f2   : > { %v1208_v60 = vpop.f32.mrf.mxu0 }
 0x1f3   : > { %v2525_v17 = vpop.f32.mrf.mxu1 }
 0x1f4   : > { %v3292_v16 = vpop.f32.mrf.mxu0  ;;  %v962_v1 = vadd.f32 %v2535_v5, %v2525_v17 }
 0x1f5   : > { %v853_v15 = vpop.f32.mrf.mxu1 }
 0x1f6   : > { %v3294_v43 = vpop.f32.mrf.mxu0  ;;  %v954_v38 = vadd.f32 %v3290_v33, %v853_v15 }
 0x1f7   : > { %v2540_v22 = vpop.f32.mrf.mxu1 }
 0x1f8   : > { %v3296_v32 = vpop.f32.mrf.mxu0  ;;  %v1120_v56 = vadd.f32 %v2540_v22, %v943_v40 }
 0x1f9   : > { %v1087_v14 = vpop.f32.mrf.mxu1 }
 0x1fa   : > { %v3298_v34 = vpop.f32.mrf.mxu0  ;;  %v1118_v27 = vadd.f32 %v1087_v14, %v935_v50  ;;  %v1238_v3 = vadd.f32 %v2550_v7, %v1120_v56 }
 0x1fb   : > { %v2541_v45 = vpop.f32.mrf.mxu1 }
 0x1fc   : > { %v2570_v63 = vpop.f32.mrf.mxu0  ;;  %v1121_v35 = vadd.f32 %v2541_v45, %v946_v20  ;;  %v1236_v26 = vadd.f32 %v1205_v23, %v1118_v27 }
 0x1fd   : > { %v1090_v39 = vpop.f32.mrf.mxu1 }
 0x1fe   : > { %v1593_v47 = vpop.f32.mrf.mxu0  ;;  %v1119_v4 = vadd.f32 %v1090_v39, %v938_v6  ;;  %v1239_v10 = vadd.f32 %v2551_v11, %v1121_v35 }
 0x1ff   : > { %v2544_v28 = vpop.f32.mrf.mxu1 }
 0x200   : > { %v2571_v37 = vpop.f32.mrf.mxu0  ;;  %v1237_v14 = vadd.f32 %v1208_v60, %v1119_v4 }
 0x201   : > { %v1103_v19 = vpop.f32.mrf.mxu1 }
 0x202   : > { %v1596_v55 = vpop.f32.mrf.mxu0 }
 0x203   : > { %v2545_v58 = vpop.f32.mrf.mxu1 }
 0x204   : > { %v3300_v52 = vpop.f32.mrf.mxu0  ;;  %v1125_v7 = vadd.f32 %v2545_v58, %v962_v1 }
 0x205   : > { %v1106_v36 = vpop.f32.mrf.mxu1 }
 0x206   : > { %v3302_v48 = vpop.f32.mrf.mxu0  ;;  %v1243_v60 = vadd.f32 %v3296_v32, %v1125_v7 }
 0x207   : > { %v2560_v13 = vpop.f32.mrf.mxu1  ;;  %3398 = vst [vmem:[#allocation3_spill] sm:$0xff] %v3302_v48 }
 0x208   : > { %v3304_v59 = vpop.f32.mrf.mxu0  ;;  %v1468_v31 = vadd.f32 %v2560_v13, %v1238_v3 }
 0x209   : > { %v1435_v51 = vpop.f32.mrf.mxu1  ;;  %3399 = vst [vmem:[#allocation4_spill] sm:$0xff] %v3304_v59  ;;  %v959_v59 = vadd.f32 %v2534_v24, %v2524_v21 }
 0x20a   : > { %v3306_v29 = vpop.f32.mrf.mxu0  ;;  %v1466_v41 = vadd.f32 %v1435_v51, %v1236_v26  ;;  %v1626_v2 = vadd.f32 %v2570_v63, %v1468_v31 }
 0x20b   : > { %v2561_v53 = vpop.f32.mrf.mxu1  ;;  %3400 = vst [vmem:[#allocation5_spill] sm:$0xff] %v3306_v29  ;;  %v951_v29 = vadd.f32 %v950_v46, %v850_v62  ;;  %v1124_v22 = vadd.f32 %v2544_v28, %v959_v59  ;;  %v1123_v46 = vadd.f32 %v1106_v36, %v954_v38 }
 0x20c   : > { %v1469_v9 = vadd.f32 %v2561_v53, %v1239_v10  ;;  %v1624_v24 = vadd.f32 %v1593_v47, %v1466_v41 }
 0x20d   : > { %v1438_v8 = vpop.f32.mrf.mxu1  ;;  %v1122_v40 = vadd.f32 %v1103_v19, %v951_v29  ;;  %v1242_v21 = vadd.f32 %v3292_v16, %v1124_v22  ;;  %v1241_v47 = vadd.f32 %v3298_v34, %v1123_v46  ;;  %v2443_v16 = vld [vmem:[%s3386_s4] ss:$0 sm:$0xff] }
 0x20e   : > { %v1467_v39 = vadd.f32 %v1438_v8, %v1237_v14  ;;  %v1627_v17 = vadd.f32 %v2571_v37, %v1469_v9  ;;  %v3401_v32 = vld [vmem:[#allocation3_spill] sm:$0xff] }
 0x20f   : > { %v1240_v62 = vadd.f32 %v3294_v43, %v1122_v40 }
 0x210   : > { %v1625_v58 = vadd.f32 %v1596_v55, %v1467_v39 }
 0x212   : > { %v3403_v35 = vld [vmem:[#allocation5_spill] sm:$0xff] }
 0x214   : > { %v2590_v54 = vpop.f32.mrf.mxu0 }
 0x216   : > { %v1942_v30 = vpop.f32.mrf.mxu0 }
 0x218   : > { %v2564_v61 = vpop.f32.mrf.mxu1  ;;  %v2591_v18 = vpop.f32.mrf.mxu0 }
 0x219   : > { %v1472_v28 = vadd.f32 %v2564_v61, %v1242_v21 }
 0x21a   : > { %v1451_v12 = vpop.f32.mrf.mxu1  ;;  %v1945_v13 = vpop.f32.mrf.mxu0 }
 0x21b   : > { %v1470_v19 = vadd.f32 %v1451_v12, %v1240_v62  ;;  %v1630_v61 = vadd.f32 %v3300_v52, %v1472_v28 }
 0x21c   : > { %v2565_v42 = vpop.f32.mrf.mxu1 }
 0x21d   : > { %v1473_v53 = vadd.f32 %v2565_v42, %v1243_v60  ;;  %v1628_v12 = vadd.f32 %v3401_v32, %v1470_v19 }
 0x21e   : > { %v1454_v0 = vpop.f32.mrf.mxu1 }
 0x21f   : > { %v2594_v33 = vpop.f32.mrf.mxu0  ;;  %v1471_v59 = vadd.f32 %v1454_v0, %v1241_v47 }
 0x220   : > { %v2580_v44 = vpop.f32.mrf.mxu1 }
 0x221   : > { %v1745_v23 = vadd.f32 %v2580_v44, %v1626_v2  ;;  %v1958_v50 = vpop.f32.mrf.mxu0  ;;  %v3402_v44 = vld [vmem:[#allocation4_spill] sm:$0xff]  ;;  %v1629_v3 = vadd.f32 %v3403_v35, %v1471_v59 }
 0x222   : > { %v1712_v25 = vpop.f32.mrf.mxu1  ;;  %v1631_v20 = vadd.f32 %v3402_v44, %v1473_v53 }
 0x223   : > { %v1743_v11 = vadd.f32 %v1712_v25, %v1624_v24  ;;  %v1975_v51 = vadd.f32 %v2590_v54, %v1745_v23 }
 0x224   : > { %v2581_v57 = vpop.f32.mrf.mxu1 }
 0x225   : > { %v1746_v15 = vadd.f32 %v2581_v57, %v1627_v17  ;;  %v1973_v37 = vadd.f32 %v1942_v30, %v1743_v11  ;;  %v2595_v57 = vpop.f32.mrf.mxu0 }
 0x226   : > { %v1715_v48 = vpop.f32.mrf.mxu1 }
 0x227   : > { %v1744_v43 = vadd.f32 %v1715_v48, %v1625_v58  ;;  %v1976_v56 = vadd.f32 %v2591_v18, %v1746_v15  ;;  %v1961_v7 = vpop.f32.mrf.mxu0 }
 0x228   : > { %v2584_v49 = vpop.f32.mrf.mxu1 }
 0x229   : > { %v1749_v34 = vadd.f32 %v2584_v49, %v1630_v61  ;;  %v1974_v6 = vadd.f32 %v1945_v13, %v1744_v43 }
 0x22a   : > { %v1728_v45 = vpop.f32.mrf.mxu1 }
 0x22b   : > { %v1747_v54 = vadd.f32 %v1728_v45, %v1628_v12  ;;  %v1979_v18 = vadd.f32 %v2594_v33, %v1749_v34 }
 0x22c   : > { %v2585_v5 = vpop.f32.mrf.mxu1 }
 0x22d   : > { %v1750_v52 = vadd.f32 %v2585_v5, %v1631_v20  ;;  %v1977_v22 = vadd.f32 %v1958_v50, %v1747_v54 }
 0x22e   : > { %v1731_v63 = vpop.f32.mrf.mxu1 }
 0x22f   : > { %v1748_v10 = vadd.f32 %v1731_v63, %v1629_v3  ;;  %v1980_v38 = vadd.f32 %v2595_v57, %v1750_v52 }
 0x230   : > { %v2600_v36 = vpop.f32.mrf.mxu1 }
 0x231   : > { %v2133_v8 = vadd.f32 %v2600_v36, %v1975_v51  ;;  %v1978_v46 = vadd.f32 %v1961_v7, %v1748_v10 }
 0x232   : > { %v2100_v29 = vpop.f32.mrf.mxu1 }
 0x233   : > { %v3318_v55 = vadd.f32 %v2443_v16, %v2133_v8  ;;  %v2131_v42 = vadd.f32 %v2100_v29, %v1973_v37 }
 0x234   : > { %v2601_v27 = vpop.f32.mrf.mxu1 }
 0x235   : > { %v2156_v48 = vmin.f32 %v3318_v55, 20.0  ;;  %v3322_v25 = vadd.f32 %v2443_v16, %v2131_v42  ;;  %v2134_v0 = vadd.f32 %v2601_v27, %v1976_v56 }
 0x236   : > { %v2103_v30 = vpop.f32.mrf.mxu1 }
 0x237   : > { %v2166_v4 = vmul.f32 1.442695, %v2156_v48  ;;  %v2154_v31 = vmin.f32 %v3322_v25, 20.0  ;;  %v3326_v26 = vadd.f32 %v2443_v16, %v2134_v0  ;;  %v2132_v41 = vadd.f32 %v2103_v30, %v1974_v6 }
 0x238   : > { %v2604_v1 = vpop.f32.mrf.mxu1 }
 0x239   : > { %2677 = vpow2.f32 %v2166_v4  ;;  %v2162_v40 = vmul.f32 1.442695, %v2154_v31  ;;  %v2157_v49 = vmin.f32 %v3326_v26, 20.0  ;;  %v3329_v9 = vadd.f32 %v2443_v16, %v2132_v41 }
 0x23a   : > { %v2137_v14 = vadd.f32 %v2604_v1, %v1979_v18  ;;  %v2116_v2 = vpop.f32.mrf.mxu1 }
 0x23b   : > { %2679 = vpow2.f32 %v2162_v40  ;;  %v2168_v45 = vmul.f32 1.442695, %v2157_v49  ;;  %v2155_v39 = vmin.f32 %v3329_v9, 20.0  ;;  %v2135_v13 = vadd.f32 %v2116_v2, %v1977_v22  ;;  %v2710_v49 = vld [vmem:[%s2774_s25 + $0x8] sm:$0xff]  }
 0x23c   : > { %v3332_v23 = vadd.f32 %v2443_v16, %v2137_v14  ;;  %v2605_v24 = vpop.f32.mrf.mxu1  ;;  %v2228_v14 = vunpack.c.l.bf16 %v2710_v49 }
 0x23d   : > { %2681 = vpow2.f32 %v2168_v45  ;;  %v2164_v21 = vmul.f32 1.442695, %v2155_v39  ;;  %v3334_v62 = vadd.f32 %v2443_v16, %v2135_v13  ;;  %v2138_v5 = vadd.f32 %v2605_v24, %v1980_v38  ;;  %v2711_v38 = vld [vmem:[%s2774_s25] sm:$0xff]  }
 0x23e   : > { %v2160_v11 = vmin.f32 %v3332_v23, 20.0  ;;  %v2119_v17 = vpop.f32.mrf.mxu1  ;;  %v2226_v7 = vunpack.c.l.bf16 %v2711_v38 }
 0x23f   : > { %2683 = vpow2.f32 %v2164_v21  ;;  %v2158_v28 = vmin.f32 %v3334_v62, 20.0  ;;  %v3338_v19 = vadd.f32 %v2443_v16, %v2138_v5  ;;  %v2136_v60 = vadd.f32 %v2119_v17, %v1978_v46 }
 0x240   : > { %v2174_v63 = vmul.f32 1.442695, %v2160_v11  ;;  %v2229_v5 = vunpack.c.h.bf16 %v2710_v49  ;;  %v2227_v17 = vunpack.c.h.bf16 %v2711_v38 }
 0x241   : > { %v2170_v33 = vmul.f32 1.442695, %v2158_v28  ;;  %v2161_v15 = vmin.f32 %v3338_v19, 20.0  ;;  %v3341_v58 = vadd.f32 %v2443_v16, %v2136_v60 }
 0x242   : > { %2685 = vpow2.f32 %v2174_v63 }
 0x243   : > { %2687 = vpow2.f32 %v2170_v33  ;;  %v2176_v51 = vmul.f32 1.442695, %v2161_v15  ;;  %v2159_v53 = vmin.f32 %v3341_v58, 20.0 }
 0x245   : > { %2689 = vpow2.f32 %v2176_v51  ;;  %v2172_v47 = vmul.f32 1.442695, %v2159_v53 }
 0x246   : > { %v2678_v36 = vpop.eup %2677 }
 0x247   : > { %v2180_v43 = vadd.f32 2.0, %v2678_v36  ;;  %2691 = vpow2.f32 %v2172_v47 }
 0x248   : > { %v2680_v8 = vpop.eup %2679 }
 0x249   : > { %v2188_v37 = vmul.f32 %v2678_v36, %v2180_v43  ;;  %v2178_v59 = vadd.f32 2.0, %v2680_v8  ;;  %v2712_v36 = vld [vmem:[%s2774_s25 + $0x18] sm:$0xff]  }
 0x24a   : > { %v2682_v61 = vpop.eup %2681  ;;  %v2232_v43 = vunpack.c.l.bf16 %v2712_v36 }
 0x24b   : > { %v2196_v32 = vadd.f32 2.0, %v2188_v37  ;;  %v2186_v12 = vmul.f32 %v2680_v8, %v2178_v59  ;;  %v2181_v29 = vadd.f32 2.0, %v2682_v61 }
 0x24c   : > { %v2684_v50 = vpop.eup %2683 }
 0x24d   : > { %2693 = vrcp.f32 %v2196_v32  ;;  %v2194_v16 = vadd.f32 2.0, %v2186_v12  ;;  %v2189_v42 = vmul.f32 %v2682_v61, %v2181_v29  ;;  %v2179_v56 = vadd.f32 2.0, %v2684_v50 }
 0x24f   : > { %v2686_v34 = vpop.eup %2685  ;;  %2695 = vrcp.f32 %v2194_v16  ;;  %v2197_v54 = vadd.f32 2.0, %v2189_v42  ;;  %v2187_v44 = vmul.f32 %v2684_v50, %v2179_v56  ;;  %v2233_v16 = vunpack.c.h.bf16 %v2712_v36 }
 0x250   : > { %v2688_v20 = vpop.eup %2687  ;;  %v2184_v27 = vadd.f32 2.0, %v2686_v34 }
 0x251   : > { %2697 = vrcp.f32 %v2197_v54  ;;  %v2195_v48 = vadd.f32 2.0, %v2187_v44  ;;  %v2182_v0 = vadd.f32 2.0, %v2688_v20 }
 0x252   : > { %v2690_v6 = vpop.eup %2689  ;;  %v2192_v52 = vmul.f32 %v2686_v34, %v2184_v27 }
 0x253   : > { %2699 = vrcp.f32 %v2195_v48  ;;  %v2190_v35 = vmul.f32 %v2688_v20, %v2182_v0  ;;  %v2185_v3 = vadd.f32 2.0, %v2690_v6 }
 0x254   : > { %v2692_v30 = vpop.eup %2691  ;;  %v2200_v57 = vadd.f32 2.0, %v2192_v52 }
 0x255   : > { %v2198_v4 = vadd.f32 2.0, %v2190_v35  ;;  %v2193_v31 = vmul.f32 %v2690_v6, %v2185_v3  ;;  %v2183_v41 = vadd.f32 2.0, %v2692_v30 }
 0x256   : > { %2701 = vrcp.f32 %v2200_v57 }
 0x257   : > { %2703 = vrcp.f32 %v2198_v4  ;;  %v2201_v10 = vadd.f32 2.0, %v2193_v31  ;;  %v2191_v18 = vmul.f32 %v2692_v30, %v2183_v41 }
 0x259   : > { %2705 = vrcp.f32 %v2201_v10  ;;  %v2199_v1 = vadd.f32 2.0, %v2191_v18 }
 0x25a   : > { %v2694_v22 = vpop.eup %2693 }
 0x25b   : > { %v2212_v40 = vmul.f32 %v2694_v22, %v2188_v37  ;;  %2707 = vrcp.f32 %v2199_v1 }
 0x25c   : > { %v2696_v2 = vpop.eup %2695 }
 0x25d   : > { %v2220_v45 = vmul.f32 %v2212_v40, %v3318_v55  ;;  %v2210_v39 = vmul.f32 %v2696_v2, %v2186_v12 }
 0x25e   : > { %v2698_v13 = vpop.eup %2697 }
 0x25f   : > { %v2236_v24 = vadd.f32 %v2228_v14, %v2220_v45  ;;  %v2218_v46 = vmul.f32 %v2210_v39, %v3322_v25  ;;  %v2213_v21 = vmul.f32 %v2698_v13, %v2189_v42 }
 0x260   : > { %v2700_v11 = vpop.eup %2699 }
 0x261   : > { %v2244_v28 = vpack.c.bf16 %v2236_v24, %v2236_v24  ;;  %v2234_v55 = vadd.f32 %v2226_v7, %v2218_v46  ;;  %v2221_v60 = vmul.f32 %v2213_v21, %v3326_v26  ;;  %v2211_v63 = vmul.f32 %v2700_v11, %v2187_v44  ;;  %v2713_v26 = vld [vmem:[%s2774_s25 + $0x10] sm:$0xff]  }
 0x262   : > { %v2230_v61 = vunpack.c.l.bf16 %v2713_v26 }
 0x263   : > { %v2702_v25 = vpop.eup %2701  ;;  %2252 = vst.msk [vmem:[%s3353_s29 + $0x8] sm:$0xf] %vm416_vm5, %v2244_v28  ;;  %v2242_v33 = vpack.c.bf16 %v2234_v55, %v2234_v55  ;;  %v2237_v15 = vadd.f32 %v2229_v5, %v2221_v60  ;;  %v2219_v51 = vmul.f32 %v2211_v63, %v3329_v9 }
 0x264   : > { %v2704_v53 = vpop.eup %2703  ;;  %v2216_v47 = vmul.f32 %v2702_v25, %v2192_v52 }
 0x265   : > { %2250 = vst.msk [vmem:[%s3353_s29] sm:$0xf] %vm416_vm5, %v2242_v33  ;;  %v2245_v8 = vpack.c.bf16 %v2237_v15, %v2237_v15  ;;  %v2235_v37 = vadd.f32 %v2227_v17, %v2219_v51  ;;  %v2214_v59 = vmul.f32 %v2704_v53, %v2190_v35 }
 0x266   : > { %v2706_v32 = vpop.eup %2705  ;;  %v2224_v12 = vmul.f32 %v2216_v47, %v3332_v23  ;;  %v2231_v23 = vunpack.c.h.bf16 %v2713_v26 }
 0x267   : > { %2253 = vst.msk [vmem:[%s3353_s29 + $0xc] sm:$0xf] %vm416_vm5, %v2245_v8  ;;  %v2243_v29 = vpack.c.bf16 %v2235_v37, %v2235_v37  ;;  %v2222_v9 = vmul.f32 %v2214_v59, %v3334_v62  ;;  %v2217_v50 = vmul.f32 %v2706_v32, %v2193_v31 }
 0x268   : > { %v2708_v42 = vpop.eup %2707  ;;  %v2240_v56 = vadd.f32 %v2232_v43, %v2224_v12 }
 0x269   : > { %2251 = vst.msk [vmem:[%s3353_s29 + $0x4] sm:$0xf] %vm416_vm5, %v2243_v29  ;;  %v2238_v34 = vadd.f32 %v2230_v61, %v2222_v9  ;;  %v2225_v54 = vmul.f32 %v2217_v50, %v3338_v19  ;;  %v2215_v44 = vmul.f32 %v2708_v42, %v2191_v18 }
 0x26a   : > { %v2248_v20 = vpack.c.bf16 %v2240_v56, %v2240_v56 }
 0x26b   : > { %v2246_v27 = vpack.c.bf16 %v2238_v34, %v2238_v34  ;;  %v2241_v48 = vadd.f32 %v2233_v16, %v2225_v54  ;;  %v2223_v0 = vmul.f32 %v2215_v44, %v3341_v58 }
 0x26c   : > { %2256 = vst.msk [vmem:[%s3353_s29 + $0x18] sm:$0xf] %vm416_vm5, %v2248_v20 }
 0x26d   : > { %2254 = vst.msk [vmem:[%s3353_s29 + $0x10] sm:$0xf] %vm416_vm5, %v2246_v27  ;;  %v2249_v62 = vpack.c.bf16 %v2241_v48, %v2241_v48  ;;  %v2239_v6 = vadd.f32 %v2231_v23, %v2223_v0 }
 0x26f   : > { %2257 = vst.msk [vmem:[%s3353_s29 + $0x1c] sm:$0xf] %vm416_vm5, %v2249_v62  ;;  %v2247_v52 = vpack.c.bf16 %v2239_v6, %v2239_v6 }
 0x271   : > { %2255 = vst.msk [vmem:[%s3353_s29 + $0x14] sm:$0xf] %vm416_vm5, %v2247_v52 }
 0x272 PF: > { %s15_s18 = sadd.s32 1, %s2720_s18  }
 0x273   : > { %p12_p4 = scmp.ge.s32.totalorder %s15_s18, 4  }
 0x275   :  { %14 = sbr.rel (!%p12_p4) target bundleno = 1 (0x1), region = 81 }

</bundles_post_ra>
